<compile_context>
chip_gen: v6e
topology: v6e:2x2x1
jax: 0.10.0
libtpu: 0.0.40
codegen_flags: <defaults>
</compile_context>

<pallas_src>
import functools

import numpy as np
import jax
import jax.numpy as jnp
from jax.experimental import pallas as pl
from jax.experimental.pallas import tpu as pltpu


BT = 8  # images per grid step; multiple of 8 so (rows, BT)->(rows*BT) merges stay sublane-aligned
assert BT % 8 == 0


# ---------------------------------------------------------------------------
# The fused kernel: conv1+relu+pool1 -> conv2+relu+pool2 -> fc1+relu -> fc2+relu
# All activations stay in VMEM/vregs; layout is (rows, batch, folded_lanes).
# ---------------------------------------------------------------------------
def _fe_fused_kernel(x_ref, w1_ref, b1_ref, w2_ref, b2_ref,
                     wf1_ref, bf1_ref, wf2_ref, bf2_ref, o_ref):
    bt = x_ref.shape[1]

    # ---- conv1: 5x5 valid conv as 5 row-Toeplitz 2-D matmuls ----------------
    # Input lane layout: 8*w_in + c_in (c_in padded 3->8).  For kernel-row tap
    # di the operand is input rows di..di+27 of every image -> (28*bt, 256).
    acc1 = None
    for di in range(5):
        xd = x_ref[di:di + 28].reshape(28 * bt, 256)        # aligned merge (bt % 8 == 0)
        z = jnp.dot(xd, w1_ref[di], preferred_element_type=jnp.float32)
        acc1 = z if acc1 is None else acc1 + z
    # Output lane layout: 8*w_out + c_out (c_out padded 6->8; pad channels stay exactly 0).
    y1 = jnp.maximum(acc1 + b1_ref[...], 0.0).reshape(14, 2, bt, 224)

    # ---- pool1: 2x2 / stride 2 max ------------------------------------------
    t1 = jnp.maximum(y1[:, 0], y1[:, 1])                    # H pairs -> (14, bt, 224)
    # W pairs via lane-shifted max; valid lanes are 16*w + c, the stale odd
    # 8-groups are killed by zero rows in w2's Toeplitz matrix.
    p1 = jnp.maximum(t1[:, :, :216], t1[:, :, 8:])          # (14, bt, 216)

    # ---- conv2: 5x5 valid conv, same row-Toeplitz scheme ---------------------
    acc2 = None
    for di in range(5):
        pd = p1[di:di + 10].reshape(10 * bt, 216)
        z = jnp.dot(pd, w2_ref[di], preferred_element_type=jnp.float32)
        acc2 = z if acc2 is None else acc2 + z
    y2 = jnp.maximum(acc2 + b2_ref[...], 0.0).reshape(5, 2, bt, 160)  # lane = 16*w + c_out

    # ---- pool2: 2x2 / stride 2 max ------------------------------------------
    t2 = jnp.maximum(y2[:, 0], y2[:, 1])                    # (5, bt, 160)
    p2 = jnp.maximum(t2[:, :, :144], t2[:, :, 16:])         # valid lane = 32*w + c

    # ---- fc1: accumulate over the 5 pooled rows ------------------------------
    # torch's NCHW .view(-1, 400) order is baked into wf1's rows; stale lanes
    # of p2 hit zero rows.  Output padded to a multiple of 128 lanes.
    acc3 = None
    for h in range(5):
        z = jnp.dot(p2[h], wf1_ref[h], preferred_element_type=jnp.float32)
        acc3 = z if acc3 is None else acc3 + z
    h1 = jnp.maximum(acc3 + bf1_ref[...], 0.0)              # (bt, 128)

    # ---- fc2 + ReLU (as in the reference forward), lane-dense 128-wide store --
    h2 = jnp.dot(h1, wf2_ref[...], preferred_element_type=jnp.float32) + bf2_ref[...]
    o_ref[...] = jnp.maximum(h2, 0.0)


# ---------------------------------------------------------------------------
# Parameters (PyTorch-convention shapes) and one-time packing
# ---------------------------------------------------------------------------
def init_params(key, input_dim=400, hidden_dims=(120, 84)):
    ks = jax.random.split(key, 8)
    return {
        "conv1_w": jax.random.normal(ks[0], (6, 3, 5, 5), jnp.float32) * 0.1,   # (O,I,kh,kw)
        "conv1_b": jax.random.normal(ks[1], (6,), jnp.float32) * 0.1,
        "conv2_w": jax.random.normal(ks[2], (16, 6, 5, 5), jnp.float32) * 0.1,
        "conv2_b": jax.random.normal(ks[3], (16,), jnp.float32) * 0.1,
        # fc weights stored as (in, out)  (== torch weight.T)
        "fc1_w": jax.random.normal(ks[4], (input_dim, hidden_dims[0]), jnp.float32) * 0.05,
        "fc1_b": jax.random.normal(ks[5], (hidden_dims[0],), jnp.float32) * 0.05,
        "fc2_w": jax.random.normal(ks[6], (hidden_dims[0], hidden_dims[1]), jnp.float32) * 0.05,
        "fc2_b": jax.random.normal(ks[7], (hidden_dims[1],), jnp.float32) * 0.05,
    }


def prepare_params(params):
    """Pack weights into Toeplitz / lane-folded layouts (done once, on host)."""
    f32 = np.float32
    w1 = np.asarray(params["conv1_w"], f32)        # (6,3,5,5)
    b1 = np.asarray(params["conv1_b"], f32)
    w2 = np.asarray(params["conv2_w"], f32)        # (16,6,5,5)
    b2 = np.asarray(params["conv2_b"], f32)
    f1 = np.asarray(params["fc1_w"], f32)          # (400, H1)
    g1 = np.asarray(params["fc1_b"], f32)
    f2 = np.asarray(params["fc2_w"], f32)          # (H1, H2)
    g2 = np.asarray(params["fc2_b"], f32)
    assert f1.shape[0] == 400, "FE expects 32x32 inputs (input_dim = 16*5*5)"

    H1, H2 = f1.shape[1], f2.shape[1]
    H1p = ((H1 + 127) // 128) * 128
    H2p = ((H2 + 127) // 128) * 128

    # conv1 row-Toeplitz: (5, 32*8, 28*8); in-lane = 8*w_in + c_in, out-lane = 8*j + c_out
    w1t = np.zeros((5, 256, 224), f32)
    for di in range(5):
        for dj in range(5):
            for j in range(28):
                w1t[di, (j + dj) * 8:(j + dj) * 8 + 3, j * 8:j * 8 + 6] = w1[:, :, di, dj].T
    b1f = np.zeros((1, 224), f32)
    b1f[0] = np.tile(np.concatenate([b1, np.zeros(2, f32)]), 28)

    # conv2 row-Toeplitz: (5, 216, 160); in-lane = 16*w + c_in (odd 8-groups -> zero rows),
    # out-lane = 16*j + c_out
    w2t = np.zeros((5, 216, 160), f32)
    for di in range(5):
        for dj in range(5):
            for j in range(10):
                w2t[di, (j + dj) * 16:(j + dj) * 16 + 6, j * 16:j * 16 + 16] = w2[:, :, di, dj].T
    b2f = np.zeros((1, 160), f32)
    b2f[0] = np.tile(b2, 10)

    # fc1 per-pooled-row taps: (5, 144, H1p); in-lane = 32*w + c, torch flatten k = c*25 + h*5 + w
    wf1 = np.zeros((5, 144, H1p), f32)
    for h in range(5):
        for w in range(5):
            for c in range(16):
                wf1[h, 32 * w + c, :H1] = f1[c * 25 + h * 5 + w]
    bf1 = np.zeros((1, H1p), f32)
    bf1[0, :H1] = g1

    wf2 = np.zeros((H1p, H2p), f32)
    wf2[:H1, :H2] = f2
    bf2 = np.zeros((1, H2p), f32)
    bf2[0, :H2] = g2

    packed = dict(w1t=w1t, b1f=b1f, w2t=w2t, b2f=b2f,
                  wf1=wf1, bf1=bf1, wf2=wf2, bf2=bf2)
    return {k: jnp.asarray(v) for k, v in packed.items()}


# ---------------------------------------------------------------------------
# Forward: lane-dense input repack + ONE pallas_call over batch tiles
# ---------------------------------------------------------------------------
@functools.partial(jax.jit, static_argnames=("n_out",))
def fe_forward(prep, x_nchw, *, n_out):
    """x_nchw: (B, 3, 32, 32) like the PyTorch module.  Returns (B, n_out)."""
    B = x_nchw.shape[0]
    b_pad = pl.cdiv(B, BT) * BT
    n_out_pad = prep["wf2"].shape[1]

    # NCHW -> NHWC, pad Cin 3->8, fold (W, C) into a dense 256-lane dim, put H
    # in front of batch so every in-kernel (rows, BT) merge is sublane-aligned.
    x = jnp.transpose(x_nchw.astype(jnp.float32), (0, 2, 3, 1))        # (B, 32, 32, 3)
    x = jnp.pad(x, ((0, b_pad - B), (0, 0), (0, 0), (0, 5)))           # (Bp, 32, 32, 8)
    x = jnp.transpose(x.reshape(b_pad, 32, 256), (1, 0, 2))            # (32, Bp, 256)

    def full_spec(a):
        return pl.BlockSpec(a.shape, lambda g: (0,) * a.ndim)

    out = pl.pallas_call(
        _fe_fused_kernel,
        out_shape=jax.ShapeDtypeStruct((b_pad, n_out_pad), jnp.float32),
        grid=(b_pad // BT,),
        in_specs=[
            pl.BlockSpec((32, BT, 256), lambda g: (0, g, 0)),
            full_spec(prep["w1t"]), full_spec(prep["b1f"]),
            full_spec(prep["w2t"]), full_spec(prep["b2f"]),
            full_spec(prep["wf1"]), full_spec(prep["bf1"]),
            full_spec(prep["wf2"]), full_spec(prep["bf2"]),
        ],
        out_specs=pl.BlockSpec((BT, n_out_pad), lambda g: (g, 0)),
        compiler_params=pltpu.CompilerParams(
            dimension_semantics=("parallel",),       # v7x: two TCs split the batch grid
            vmem_limit_bytes=32 * 1024 * 1024,
        ),
    )(x, prep["w1t"], prep["b1f"], prep["w2t"], prep["b2f"],
      prep["wf1"], prep["bf1"], prep["wf2"], prep["bf2"])

    return out[:B, :n_out]


# ---------------------------------------------------------------------------
# Pure-JAX reference (mirrors the PyTorch FE.forward) for a correctness check
# ---------------------------------------------------------------------------
def fe_reference(params, x):
    dn = ('NCHW', 'OIHW', 'NCHW')
    hp = jax.lax.Precision.HIGHEST

    def pool(y):
        return jax.lax.reduce_window(y, jnp.array(-jnp.inf, y.dtype), jax.lax.max,
                                     (1, 1, 2, 2), (1, 1, 2, 2), 'VALID')

    y = jax.lax.conv_general_dilated(x, params["conv1_w"], (1, 1), 'VALID',
                                     dimension_numbers=dn, precision=hp)
    y = pool(jnp.maximum(y + params["conv1_b"][None, :, None, None], 0.0))
    y = jax.lax.conv_general_dilated(y, params["conv2_w"], (1, 1), 'VALID',
                                     dimension_numbers=dn, precision=hp)
    y = pool(jnp.maximum(y + params["conv2_b"][None, :, None, None], 0.0))
    y = y.reshape(y.shape[0], -1)                                  # torch .view(-1, 400)
    y = jnp.maximum(jnp.dot(y, params["fc1_w"], precision=hp) + params["fc1_b"], 0.0)
    y = jnp.maximum(jnp.dot(y, params["fc2_w"], precision=hp) + params["fc2_b"], 0.0)
    return y


if __name__ == "__main__":
    key = jax.random.PRNGKey(0)
    pkey, xkey = jax.random.split(key)

    input_dim, hidden_dims = 16 * 5 * 5, (120, 84)
    params = init_params(pkey, input_dim, hidden_dims)
    prep = prepare_params(params)                        # one-time weight packing

    # Small NCHW batch (padded to a multiple of BT=8 inside the wrapper; 16/8=2
    # grid steps keeps the grid length even for v7x's two TensorCores).
    x = jax.random.normal(xkey, (16, 3, 32, 32), jnp.float32)

    out = jax.block_until_ready(fe_forward(prep, x, n_out=hidden_dims[1]))
    assert out.shape == (16, hidden_dims[1]), out.shape

    ref = fe_reference(params, x)
    max_err = float(jnp.max(jnp.abs(out - ref)))
    assert max_err < 5e-2, f"kernel/reference mismatch: max|diff| = {max_err}"

    print("KERNEL_OK")
</pallas_src>

<mosaic_0001>
module attributes {stable_mosaic.version = 11 : i64} {
  func.func @_fe_fused_kernel(%arg0: i32, %arg1: memref<32x8x256xf32, #tpu.memory_space<vmem>>, %arg2: memref<5x256x224xf32, #tpu.memory_space<vmem>>, %arg3: memref<1x224xf32, #tpu.memory_space<vmem>>, %arg4: memref<5x216x160xf32, #tpu.memory_space<vmem>>, %arg5: memref<1x160xf32, #tpu.memory_space<vmem>>, %arg6: memref<5x144x128xf32, #tpu.memory_space<vmem>>, %arg7: memref<1x128xf32, #tpu.memory_space<vmem>>, %arg8: memref<128x128xf32, #tpu.memory_space<vmem>>, %arg9: memref<1x128xf32, #tpu.memory_space<vmem>>, %arg10: memref<8x128xf32, #tpu.memory_space<vmem>>) attributes {dimension_semantics = [#tpu.dimension_semantics<parallel>], iteration_bounds = array<i64: 2>, scalar_prefetch = 0 : i64, scratch_operands = 0 : i64, tpu.core_type = #tpu.core_type<tc>, window_params = [{transform_indices = @transform_0, window_bounds = array<i64: 32, 8, 256>}, {pipeline_mode = #tpu.pipeline_mode<synchronous>, transform_indices = @transform_1, window_bounds = array<i64: 5, 256, 224>}, {pipeline_mode = #tpu.pipeline_mode<synchronous>, transform_indices = @transform_2, window_bounds = array<i64: 1, 224>}, {pipeline_mode = #tpu.pipeline_mode<synchronous>, transform_indices = @transform_3, window_bounds = array<i64: 5, 216, 160>}, {pipeline_mode = #tpu.pipeline_mode<synchronous>, transform_indices = @transform_4, window_bounds = array<i64: 1, 160>}, {pipeline_mode = #tpu.pipeline_mode<synchronous>, transform_indices = @transform_5, window_bounds = array<i64: 5, 144, 128>}, {pipeline_mode = #tpu.pipeline_mode<synchronous>, transform_indices = @transform_6, window_bounds = array<i64: 1, 128>}, {pipeline_mode = #tpu.pipeline_mode<synchronous>, transform_indices = @transform_7, window_bounds = array<i64: 128, 128>}, {pipeline_mode = #tpu.pipeline_mode<synchronous>, transform_indices = @transform_8, window_bounds = array<i64: 1, 128>}, {transform_indices = @transform_9, window_bounds = array<i64: 8, 128>}]} {
    %c0 = arith.constant 0 : index
    %c0_0 = arith.constant 0 : index
    %c0_1 = arith.constant 0 : index
    %0 = vector.load %arg1[%c0, %c0_0, %c0_1] : memref<32x8x256xf32, #tpu.memory_space<vmem>>, vector<28x8x256xf32>
    %1 = vector.shape_cast %0 : vector<28x8x256xf32> to vector<224x256xf32>
    %c0_2 = arith.constant 0 : index
    %c0_3 = arith.constant 0 : index
    %c0_4 = arith.constant 0 : index
    %2 = vector.load %arg2[%c0_2, %c0_3, %c0_4] : memref<5x256x224xf32, #tpu.memory_space<vmem>>, vector<1x256x224xf32>
    %3 = vector.shape_cast %2 : vector<1x256x224xf32> to vector<256x224xf32>
    %cst = arith.constant dense<0.000000e+00> : vector<224x224xf32>
    %4 = tpu.matmul %1, %3, %cst {dimension_numbers = #tpu.dot_dimension_numbers<[1], [0], [0], [1], [0, 0, 1, 1], [], []>} : vector<224x256xf32>, vector<256x224xf32>, vector<224x224xf32> -> vector<224x224xf32>
    %c1 = arith.constant 1 : index
    %c0_5 = arith.constant 0 : index
    %c0_6 = arith.constant 0 : index
    %5 = vector.load %arg1[%c1, %c0_5, %c0_6] : memref<32x8x256xf32, #tpu.memory_space<vmem>>, vector<28x8x256xf32>
    %6 = vector.shape_cast %5 : vector<28x8x256xf32> to vector<224x256xf32>
    %c1_7 = arith.constant 1 : index
    %c0_8 = arith.constant 0 : index
    %c0_9 = arith.constant 0 : index
    %7 = vector.load %arg2[%c1_7, %c0_8, %c0_9] : memref<5x256x224xf32, #tpu.memory_space<vmem>>, vector<1x256x224xf32>
    %8 = vector.shape_cast %7 : vector<1x256x224xf32> to vector<256x224xf32>
    %cst_10 = arith.constant dense<0.000000e+00> : vector<224x224xf32>
    %9 = tpu.matmul %6, %8, %cst_10 {dimension_numbers = #tpu.dot_dimension_numbers<[1], [0], [0], [1], [0, 0, 1, 1], [], []>} : vector<224x256xf32>, vector<256x224xf32>, vector<224x224xf32> -> vector<224x224xf32>
    %10 = arith.addf %4, %9 : vector<224x224xf32>
    %c2 = arith.constant 2 : index
    %c0_11 = arith.constant 0 : index
    %c0_12 = arith.constant 0 : index
    %11 = vector.load %arg1[%c2, %c0_11, %c0_12] : memref<32x8x256xf32, #tpu.memory_space<vmem>>, vector<28x8x256xf32>
    %12 = vector.shape_cast %11 : vector<28x8x256xf32> to vector<224x256xf32>
    %c2_13 = arith.constant 2 : index
    %c0_14 = arith.constant 0 : index
    %c0_15 = arith.constant 0 : index
    %13 = vector.load %arg2[%c2_13, %c0_14, %c0_15] : memref<5x256x224xf32, #tpu.memory_space<vmem>>, vector<1x256x224xf32>
    %14 = vector.shape_cast %13 : vector<1x256x224xf32> to vector<256x224xf32>
    %cst_16 = arith.constant dense<0.000000e+00> : vector<224x224xf32>
    %15 = tpu.matmul %12, %14, %cst_16 {dimension_numbers = #tpu.dot_dimension_numbers<[1], [0], [0], [1], [0, 0, 1, 1], [], []>} : vector<224x256xf32>, vector<256x224xf32>, vector<224x224xf32> -> vector<224x224xf32>
    %16 = arith.addf %10, %15 : vector<224x224xf32>
    %c3 = arith.constant 3 : index
    %c0_17 = arith.constant 0 : index
    %c0_18 = arith.constant 0 : index
    %17 = vector.load %arg1[%c3, %c0_17, %c0_18] : memref<32x8x256xf32, #tpu.memory_space<vmem>>, vector<28x8x256xf32>
    %18 = vector.shape_cast %17 : vector<28x8x256xf32> to vector<224x256xf32>
    %c3_19 = arith.constant 3 : index
    %c0_20 = arith.constant 0 : index
    %c0_21 = arith.constant 0 : index
    %19 = vector.load %arg2[%c3_19, %c0_20, %c0_21] : memref<5x256x224xf32, #tpu.memory_space<vmem>>, vector<1x256x224xf32>
    %20 = vector.shape_cast %19 : vector<1x256x224xf32> to vector<256x224xf32>
    %cst_22 = arith.constant dense<0.000000e+00> : vector<224x224xf32>
    %21 = tpu.matmul %18, %20, %cst_22 {dimension_numbers = #tpu.dot_dimension_numbers<[1], [0], [0], [1], [0, 0, 1, 1], [], []>} : vector<224x256xf32>, vector<256x224xf32>, vector<224x224xf32> -> vector<224x224xf32>
    %22 = arith.addf %16, %21 : vector<224x224xf32>
    %c4 = arith.constant 4 : index
    %c0_23 = arith.constant 0 : index
    %c0_24 = arith.constant 0 : index
    %23 = vector.load %arg1[%c4, %c0_23, %c0_24] : memref<32x8x256xf32, #tpu.memory_space<vmem>>, vector<28x8x256xf32>
    %24 = vector.shape_cast %23 : vector<28x8x256xf32> to vector<224x256xf32>
    %c4_25 = arith.constant 4 : index
    %c0_26 = arith.constant 0 : index
    %c0_27 = arith.constant 0 : index
    %25 = vector.load %arg2[%c4_25, %c0_26, %c0_27] : memref<5x256x224xf32, #tpu.memory_space<vmem>>, vector<1x256x224xf32>
    %26 = vector.shape_cast %25 : vector<1x256x224xf32> to vector<256x224xf32>
    %cst_28 = arith.constant dense<0.000000e+00> : vector<224x224xf32>
    %27 = tpu.matmul %24, %26, %cst_28 {dimension_numbers = #tpu.dot_dimension_numbers<[1], [0], [0], [1], [0, 0, 1, 1], [], []>} : vector<224x256xf32>, vector<256x224xf32>, vector<224x224xf32> -> vector<224x224xf32>
    %28 = arith.addf %22, %27 : vector<224x224xf32>
    %c0_29 = arith.constant 0 : index
    %c0_30 = arith.constant 0 : index
    %29 = vector.load %arg3[%c0_29, %c0_30] : memref<1x224xf32, #tpu.memory_space<vmem>>, vector<1x224xf32>
    %30 = vector.broadcast %29 : vector<1x224xf32> to vector<224x224xf32>
    %31 = arith.addf %28, %30 : vector<224x224xf32>
    %cst_31 = arith.constant 0.000000e+00 : f32
    %32 = vector.broadcast %cst_31 : f32 to vector<224x224xf32>
    %33 = arith.maximumf %31, %32 : vector<224x224xf32>
    %34 = vector.shape_cast %33 : vector<224x224xf32> to vector<14x2x8x224xf32>
    %35 = vector.extract_strided_slice %34 {offsets = [0, 0, 0, 0], sizes = [14, 1, 8, 224], strides = [1, 1, 1, 1]} : vector<14x2x8x224xf32> to vector<14x1x8x224xf32>
    %36 = vector.shape_cast %35 : vector<14x1x8x224xf32> to vector<14x8x224xf32>
    %37 = vector.extract_strided_slice %34 {offsets = [0, 1, 0, 0], sizes = [14, 1, 8, 224], strides = [1, 1, 1, 1]} : vector<14x2x8x224xf32> to vector<14x1x8x224xf32>
    %38 = vector.shape_cast %37 : vector<14x1x8x224xf32> to vector<14x8x224xf32>
    %39 = arith.maximumf %36, %38 : vector<14x8x224xf32>
    %40 = vector.extract_strided_slice %39 {offsets = [0, 0, 0], sizes = [14, 8, 216], strides = [1, 1, 1]} : vector<14x8x224xf32> to vector<14x8x216xf32>
    %41 = vector.extract_strided_slice %39 {offsets = [0, 0, 8], sizes = [14, 8, 216], strides = [1, 1, 1]} : vector<14x8x224xf32> to vector<14x8x216xf32>
    %42 = arith.maximumf %40, %41 : vector<14x8x216xf32>
    %43 = vector.extract_strided_slice %42 {offsets = [0, 0, 0], sizes = [10, 8, 216], strides = [1, 1, 1]} : vector<14x8x216xf32> to vector<10x8x216xf32>
    %44 = vector.shape_cast %43 : vector<10x8x216xf32> to vector<80x216xf32>
    %c0_32 = arith.constant 0 : index
    %c0_33 = arith.constant 0 : index
    %c0_34 = arith.constant 0 : index
    %45 = vector.load %arg4[%c0_32, %c0_33, %c0_34] : memref<5x216x160xf32, #tpu.memory_space<vmem>>, vector<1x216x160xf32>
    %46 = vector.shape_cast %45 : vector<1x216x160xf32> to vector<216x160xf32>
    %cst_35 = arith.constant dense<0.000000e+00> : vector<80x160xf32>
    %47 = tpu.matmul %44, %46, %cst_35 {dimension_numbers = #tpu.dot_dimension_numbers<[1], [0], [0], [1], [0, 0, 1, 1], [], []>} : vector<80x216xf32>, vector<216x160xf32>, vector<80x160xf32> -> vector<80x160xf32>
    %48 = vector.extract_strided_slice %42 {offsets = [1, 0, 0], sizes = [10, 8, 216], strides = [1, 1, 1]} : vector<14x8x216xf32> to vector<10x8x216xf32>
    %49 = vector.shape_cast %48 : vector<10x8x216xf32> to vector<80x216xf32>
    %c1_36 = arith.constant 1 : index
    %c0_37 = arith.constant 0 : index
    %c0_38 = arith.constant 0 : index
    %50 = vector.load %arg4[%c1_36, %c0_37, %c0_38] : memref<5x216x160xf32, #tpu.memory_space<vmem>>, vector<1x216x160xf32>
    %51 = vector.shape_cast %50 : vector<1x216x160xf32> to vector<216x160xf32>
    %cst_39 = arith.constant dense<0.000000e+00> : vector<80x160xf32>
    %52 = tpu.matmul %49, %51, %cst_39 {dimension_numbers = #tpu.dot_dimension_numbers<[1], [0], [0], [1], [0, 0, 1, 1], [], []>} : vector<80x216xf32>, vector<216x160xf32>, vector<80x160xf32> -> vector<80x160xf32>
    %53 = arith.addf %47, %52 : vector<80x160xf32>
    %54 = vector.extract_strided_slice %42 {offsets = [2, 0, 0], sizes = [10, 8, 216], strides = [1, 1, 1]} : vector<14x8x216xf32> to vector<10x8x216xf32>
    %55 = vector.shape_cast %54 : vector<10x8x216xf32> to vector<80x216xf32>
    %c2_40 = arith.constant 2 : index
    %c0_41 = arith.constant 0 : index
    %c0_42 = arith.constant 0 : index
    %56 = vector.load %arg4[%c2_40, %c0_41, %c0_42] : memref<5x216x160xf32, #tpu.memory_space<vmem>>, vector<1x216x160xf32>
    %57 = vector.shape_cast %56 : vector<1x216x160xf32> to vector<216x160xf32>
    %cst_43 = arith.constant dense<0.000000e+00> : vector<80x160xf32>
    %58 = tpu.matmul %55, %57, %cst_43 {dimension_numbers = #tpu.dot_dimension_numbers<[1], [0], [0], [1], [0, 0, 1, 1], [], []>} : vector<80x216xf32>, vector<216x160xf32>, vector<80x160xf32> -> vector<80x160xf32>
    %59 = arith.addf %53, %58 : vector<80x160xf32>
    %60 = vector.extract_strided_slice %42 {offsets = [3, 0, 0], sizes = [10, 8, 216], strides = [1, 1, 1]} : vector<14x8x216xf32> to vector<10x8x216xf32>
    %61 = vector.shape_cast %60 : vector<10x8x216xf32> to vector<80x216xf32>
    %c3_44 = arith.constant 3 : index
    %c0_45 = arith.constant 0 : index
    %c0_46 = arith.constant 0 : index
    %62 = vector.load %arg4[%c3_44, %c0_45, %c0_46] : memref<5x216x160xf32, #tpu.memory_space<vmem>>, vector<1x216x160xf32>
    %63 = vector.shape_cast %62 : vector<1x216x160xf32> to vector<216x160xf32>
    %cst_47 = arith.constant dense<0.000000e+00> : vector<80x160xf32>
    %64 = tpu.matmul %61, %63, %cst_47 {dimension_numbers = #tpu.dot_dimension_numbers<[1], [0], [0], [1], [0, 0, 1, 1], [], []>} : vector<80x216xf32>, vector<216x160xf32>, vector<80x160xf32> -> vector<80x160xf32>
    %65 = arith.addf %59, %64 : vector<80x160xf32>
    %66 = vector.extract_strided_slice %42 {offsets = [4, 0, 0], sizes = [10, 8, 216], strides = [1, 1, 1]} : vector<14x8x216xf32> to vector<10x8x216xf32>
    %67 = vector.shape_cast %66 : vector<10x8x216xf32> to vector<80x216xf32>
    %c4_48 = arith.constant 4 : index
    %c0_49 = arith.constant 0 : index
    %c0_50 = arith.constant 0 : index
    %68 = vector.load %arg4[%c4_48, %c0_49, %c0_50] : memref<5x216x160xf32, #tpu.memory_space<vmem>>, vector<1x216x160xf32>
    %69 = vector.shape_cast %68 : vector<1x216x160xf32> to vector<216x160xf32>
    %cst_51 = arith.constant dense<0.000000e+00> : vector<80x160xf32>
    %70 = tpu.matmul %67, %69, %cst_51 {dimension_numbers = #tpu.dot_dimension_numbers<[1], [0], [0], [1], [0, 0, 1, 1], [], []>} : vector<80x216xf32>, vector<216x160xf32>, vector<80x160xf32> -> vector<80x160xf32>
    %71 = arith.addf %65, %70 : vector<80x160xf32>
    %c0_52 = arith.constant 0 : index
    %c0_53 = arith.constant 0 : index
    %72 = vector.load %arg5[%c0_52, %c0_53] : memref<1x160xf32, #tpu.memory_space<vmem>>, vector<1x160xf32>
    %73 = vector.broadcast %72 : vector<1x160xf32> to vector<80x160xf32>
    %74 = arith.addf %71, %73 : vector<80x160xf32>
    %cst_54 = arith.constant 0.000000e+00 : f32
    %75 = vector.broadcast %cst_54 : f32 to vector<80x160xf32>
    %76 = arith.maximumf %74, %75 : vector<80x160xf32>
    %77 = vector.shape_cast %76 : vector<80x160xf32> to vector<5x2x8x160xf32>
    %78 = vector.extract_strided_slice %77 {offsets = [0, 0, 0, 0], sizes = [5, 1, 8, 160], strides = [1, 1, 1, 1]} : vector<5x2x8x160xf32> to vector<5x1x8x160xf32>
    %79 = vector.shape_cast %78 : vector<5x1x8x160xf32> to vector<5x8x160xf32>
    %80 = vector.extract_strided_slice %77 {offsets = [0, 1, 0, 0], sizes = [5, 1, 8, 160], strides = [1, 1, 1, 1]} : vector<5x2x8x160xf32> to vector<5x1x8x160xf32>
    %81 = vector.shape_cast %80 : vector<5x1x8x160xf32> to vector<5x8x160xf32>
    %82 = arith.maximumf %79, %81 : vector<5x8x160xf32>
    %83 = vector.extract_strided_slice %82 {offsets = [0, 0, 0], sizes = [5, 8, 144], strides = [1, 1, 1]} : vector<5x8x160xf32> to vector<5x8x144xf32>
    %84 = vector.extract_strided_slice %82 {offsets = [0, 0, 16], sizes = [5, 8, 144], strides = [1, 1, 1]} : vector<5x8x160xf32> to vector<5x8x144xf32>
    %85 = arith.maximumf %83, %84 : vector<5x8x144xf32>
    %86 = vector.extract_strided_slice %85 {offsets = [0, 0, 0], sizes = [1, 8, 144], strides = [1, 1, 1]} : vector<5x8x144xf32> to vector<1x8x144xf32>
    %87 = vector.shape_cast %86 : vector<1x8x144xf32> to vector<8x144xf32>
    %c0_55 = arith.constant 0 : index
    %c0_56 = arith.constant 0 : index
    %c0_57 = arith.constant 0 : index
    %88 = vector.load %arg6[%c0_55, %c0_56, %c0_57] : memref<5x144x128xf32, #tpu.memory_space<vmem>>, vector<1x144x128xf32>
    %89 = vector.shape_cast %88 : vector<1x144x128xf32> to vector<144x128xf32>
    %cst_58 = arith.constant dense<0.000000e+00> : vector<8x128xf32>
    %90 = tpu.matmul %87, %89, %cst_58 {dimension_numbers = #tpu.dot_dimension_numbers<[1], [0], [0], [1], [0, 0, 1, 1], [], []>} : vector<8x144xf32>, vector<144x128xf32>, vector<8x128xf32> -> vector<8x128xf32>
    %91 = vector.extract_strided_slice %85 {offsets = [1, 0, 0], sizes = [1, 8, 144], strides = [1, 1, 1]} : vector<5x8x144xf32> to vector<1x8x144xf32>
    %92 = vector.shape_cast %91 : vector<1x8x144xf32> to vector<8x144xf32>
    %c1_59 = arith.constant 1 : index
    %c0_60 = arith.constant 0 : index
    %c0_61 = arith.constant 0 : index
    %93 = vector.load %arg6[%c1_59, %c0_60, %c0_61] : memref<5x144x128xf32, #tpu.memory_space<vmem>>, vector<1x144x128xf32>
    %94 = vector.shape_cast %93 : vector<1x144x128xf32> to vector<144x128xf32>
    %cst_62 = arith.constant dense<0.000000e+00> : vector<8x128xf32>
    %95 = tpu.matmul %92, %94, %cst_62 {dimension_numbers = #tpu.dot_dimension_numbers<[1], [0], [0], [1], [0, 0, 1, 1], [], []>} : vector<8x144xf32>, vector<144x128xf32>, vector<8x128xf32> -> vector<8x128xf32>
    %96 = arith.addf %90, %95 : vector<8x128xf32>
    %97 = vector.extract_strided_slice %85 {offsets = [2, 0, 0], sizes = [1, 8, 144], strides = [1, 1, 1]} : vector<5x8x144xf32> to vector<1x8x144xf32>
    %98 = vector.shape_cast %97 : vector<1x8x144xf32> to vector<8x144xf32>
    %c2_63 = arith.constant 2 : index
    %c0_64 = arith.constant 0 : index
    %c0_65 = arith.constant 0 : index
    %99 = vector.load %arg6[%c2_63, %c0_64, %c0_65] : memref<5x144x128xf32, #tpu.memory_space<vmem>>, vector<1x144x128xf32>
    %100 = vector.shape_cast %99 : vector<1x144x128xf32> to vector<144x128xf32>
    %cst_66 = arith.constant dense<0.000000e+00> : vector<8x128xf32>
    %101 = tpu.matmul %98, %100, %cst_66 {dimension_numbers = #tpu.dot_dimension_numbers<[1], [0], [0], [1], [0, 0, 1, 1], [], []>} : vector<8x144xf32>, vector<144x128xf32>, vector<8x128xf32> -> vector<8x128xf32>
    %102 = arith.addf %96, %101 : vector<8x128xf32>
    %103 = vector.extract_strided_slice %85 {offsets = [3, 0, 0], sizes = [1, 8, 144], strides = [1, 1, 1]} : vector<5x8x144xf32> to vector<1x8x144xf32>
    %104 = vector.shape_cast %103 : vector<1x8x144xf32> to vector<8x144xf32>
    %c3_67 = arith.constant 3 : index
    %c0_68 = arith.constant 0 : index
    %c0_69 = arith.constant 0 : index
    %105 = vector.load %arg6[%c3_67, %c0_68, %c0_69] : memref<5x144x128xf32, #tpu.memory_space<vmem>>, vector<1x144x128xf32>
    %106 = vector.shape_cast %105 : vector<1x144x128xf32> to vector<144x128xf32>
    %cst_70 = arith.constant dense<0.000000e+00> : vector<8x128xf32>
    %107 = tpu.matmul %104, %106, %cst_70 {dimension_numbers = #tpu.dot_dimension_numbers<[1], [0], [0], [1], [0, 0, 1, 1], [], []>} : vector<8x144xf32>, vector<144x128xf32>, vector<8x128xf32> -> vector<8x128xf32>
    %108 = arith.addf %102, %107 : vector<8x128xf32>
    %109 = vector.extract_strided_slice %85 {offsets = [4, 0, 0], sizes = [1, 8, 144], strides = [1, 1, 1]} : vector<5x8x144xf32> to vector<1x8x144xf32>
    %110 = vector.shape_cast %109 : vector<1x8x144xf32> to vector<8x144xf32>
    %c4_71 = arith.constant 4 : index
    %c0_72 = arith.constant 0 : index
    %c0_73 = arith.constant 0 : index
    %111 = vector.load %arg6[%c4_71, %c0_72, %c0_73] : memref<5x144x128xf32, #tpu.memory_space<vmem>>, vector<1x144x128xf32>
    %112 = vector.shape_cast %111 : vector<1x144x128xf32> to vector<144x128xf32>
    %cst_74 = arith.constant dense<0.000000e+00> : vector<8x128xf32>
    %113 = tpu.matmul %110, %112, %cst_74 {dimension_numbers = #tpu.dot_dimension_numbers<[1], [0], [0], [1], [0, 0, 1, 1], [], []>} : vector<8x144xf32>, vector<144x128xf32>, vector<8x128xf32> -> vector<8x128xf32>
    %114 = arith.addf %108, %113 : vector<8x128xf32>
    %c0_75 = arith.constant 0 : index
    %c0_76 = arith.constant 0 : index
    %115 = vector.load %arg7[%c0_75, %c0_76] : memref<1x128xf32, #tpu.memory_space<vmem>>, vector<1x128xf32>
    %116 = vector.broadcast %115 : vector<1x128xf32> to vector<8x128xf32>
    %117 = arith.addf %114, %116 : vector<8x128xf32>
    %cst_77 = arith.constant 0.000000e+00 : f32
    %118 = vector.broadcast %cst_77 : f32 to vector<8x128xf32>
    %119 = arith.maximumf %117, %118 : vector<8x128xf32>
    %c0_78 = arith.constant 0 : index
    %c0_79 = arith.constant 0 : index
    %120 = vector.load %arg8[%c0_78, %c0_79] : memref<128x128xf32, #tpu.memory_space<vmem>>, vector<128x128xf32>
    %cst_80 = arith.constant dense<0.000000e+00> : vector<8x128xf32>
    %121 = tpu.matmul %119, %120, %cst_80 {dimension_numbers = #tpu.dot_dimension_numbers<[1], [0], [0], [1], [0, 0, 1, 1], [], []>} : vector<8x128xf32>, vector<128x128xf32>, vector<8x128xf32> -> vector<8x128xf32>
    %c0_81 = arith.constant 0 : index
    %c0_82 = arith.constant 0 : index
    %122 = vector.load %arg9[%c0_81, %c0_82] : memref<1x128xf32, #tpu.memory_space<vmem>>, vector<1x128xf32>
    %123 = vector.broadcast %122 : vector<1x128xf32> to vector<8x128xf32>
    %124 = arith.addf %121, %123 : vector<8x128xf32>
    %cst_83 = arith.constant 0.000000e+00 : f32
    %125 = vector.broadcast %cst_83 : f32 to vector<8x128xf32>
    %126 = arith.maximumf %124, %125 : vector<8x128xf32>
    %c0_84 = arith.constant 0 : index
    %c0_85 = arith.constant 0 : index
    %127 = vector.load %arg10[%c0_84, %c0_85] : memref<8x128xf32, #tpu.memory_space<vmem>>, vector<8x128xf32>
    tpu.vector_store %arg10[%c0_84, %c0_85], %126 {strides = array<i32>} : memref<8x128xf32, #tpu.memory_space<vmem>>, vector<8x128xf32>,
    return
  }
  func.func @transform_0(%arg0: i32) -> (i32, i32, i32) {
    %c0_i32 = arith.constant 0 : i32
    %c0_i32_0 = arith.constant 0 : i32
    %c0_i32_1 = arith.constant 0 : i32
    return %c0_i32, %arg0, %c0_i32_0 : i32, i32, i32
  }
  func.func @transform_1(%arg0: i32) -> (i32, i32, i32) {
    %c0_i32 = arith.constant 0 : i32
    %c0_i32_0 = arith.constant 0 : i32
    %c0_i32_1 = arith.constant 0 : i32
    %c0_i32_2 = arith.constant 0 : i32
    return %c0_i32, %c0_i32_0, %c0_i32_1 : i32, i32, i32
  }
  func.func @transform_2(%arg0: i32) -> (i32, i32) {
    %c0_i32 = arith.constant 0 : i32
    %c0_i32_0 = arith.constant 0 : i32
    %c0_i32_1 = arith.constant 0 : i32
    return %c0_i32, %c0_i32_0 : i32, i32
  }
  func.func @transform_3(%arg0: i32) -> (i32, i32, i32) {
    %c0_i32 = arith.constant 0 : i32
    %c0_i32_0 = arith.constant 0 : i32
    %c0_i32_1 = arith.constant 0 : i32
    %c0_i32_2 = arith.constant 0 : i32
    return %c0_i32, %c0_i32_0, %c0_i32_1 : i32, i32, i32
  }
  func.func @transform_4(%arg0: i32) -> (i32, i32) {
    %c0_i32 = arith.constant 0 : i32
    %c0_i32_0 = arith.constant 0 : i32
    %c0_i32_1 = arith.constant 0 : i32
    return %c0_i32, %c0_i32_0 : i32, i32
  }
  func.func @transform_5(%arg0: i32) -> (i32, i32, i32) {
    %c0_i32 = arith.constant 0 : i32
    %c0_i32_0 = arith.constant 0 : i32
    %c0_i32_1 = arith.constant 0 : i32
    %c0_i32_2 = arith.constant 0 : i32
    return %c0_i32, %c0_i32_0, %c0_i32_1 : i32, i32, i32
  }
  func.func @transform_6(%arg0: i32) -> (i32, i32) {
    %c0_i32 = arith.constant 0 : i32
    %c0_i32_0 = arith.constant 0 : i32
    %c0_i32_1 = arith.constant 0 : i32
    return %c0_i32, %c0_i32_0 : i32, i32
  }
  func.func @transform_7(%arg0: i32) -> (i32, i32) {
    %c0_i32 = arith.constant 0 : i32
    %c0_i32_0 = arith.constant 0 : i32
    %c0_i32_1 = arith.constant 0 : i32
    return %c0_i32, %c0_i32_0 : i32, i32
  }
  func.func @transform_8(%arg0: i32) -> (i32, i32) {
    %c0_i32 = arith.constant 0 : i32
    %c0_i32_0 = arith.constant 0 : i32
    %c0_i32_1 = arith.constant 0 : i32
    return %c0_i32, %c0_i32_0 : i32, i32
  }
  func.func @transform_9(%arg0: i32) -> (i32, i32) {
    %c0_i32 = arith.constant 0 : i32
    %c0_i32_0 = arith.constant 0 : i32
    return %arg0, %c0_i32 : i32, i32
  }
}

</mosaic_0001>

<bundles_post_ra>
// kernel: fe_forward.1
= control target key start
LH: loop header
LB: loop body
LE: loop exit
PB: predicated region body
PF: predicated region fallthrough
CT: control target
= control target key end

     0   :  { %14 = vsyncpa [#allocation4], 0  ;;  %s9630_s0 = inlined_call_operand.vmem [shape: f32[32,16,256], index: 0, kind: input, shape index: {}]   ;;  %s9631_s1 = inlined_call_operand.vmem [shape: f32[5,256,224], index: 1, kind: input, shape index: {}]   ;;  %s9632_s2 = inlined_call_operand.vmem [shape: f32[1,224], index: 2, kind: input, shape index: {}]   ;;  %s9633_s3 = inlined_call_operand.vmem [shape: f32[5,216,160], index: 3, kind: input, shape index: {}]   ;;  %s9634_s4 = inlined_call_operand.vmem [shape: f32[1,160], index: 4, kind: input, shape index: {}]   ;;  %s9635_s5 = inlined_call_operand.vmem [shape: f32[5,144,128], index: 5, kind: input, shape index: {}]   ;;  %s9636_s6 = inlined_call_operand.vmem [shape: f32[1,128], index: 6, kind: input, shape index: {}]   ;;  %s9637_s7 = inlined_call_operand.vmem [shape: f32[128,128], index: 7, kind: input, shape index: {}]   ;;  %s9638_s8 = inlined_call_operand.vmem [shape: f32[1,128], index: 8, kind: input, shape index: {}]   ;;  %s9639_s9 = inlined_call_operand.hbm [shape: f32[16,128], index: 9, kind: output, shape index: {}]  }
   0x1   :  { %16 = vsyncpa [#allocation4 + $0x1], 0  ;;  %s5552_s30 = smov 0   ;;  %s5554_s10 = smov 0  }
   0x2   :  { %s5556_s11 = smov 0   ;;  %s5558_s12 = smov 0  }
   0x3 LB: > { %s4490_s13 = sadd.s32 4294967295, %s5495_s12   ;;  %s4491_s14 = sadd.s32 4294967294, %s5495_s12   ;;  %s5495_s12 = sphi %s5558_s12, %s9812_s12   ;;  %s5491_s11 = sphi %s5556_s11, %s9811_s11   ;;  %s5487_s10 = sphi %s5554_s10, %s9810_s10   ;;  %s5483_s30 = sphi %s5552_s30, %s9809_s30  }
   0x4   : > { %s5575_s15 = sadd.s32 1, %s5495_s12   ;;  %s29_s16 = sadd.s32 1, %s5491_s11 }
   0x5   : > { %s26_s17 = ssub.s32 %s5495_s12, %s5575_s15  ;;  %p36_p0 = scmp.ne.s32.totalorder %s5491_s11, %s5487_s10 }
   0x6   : > { %p27_p1 = scmp.eq.s32.totalorder %s26_s17, 0  ;;  %p37_p2 = scmp.eq.s32.totalorder %s5495_s12, 0 }
   0x7   : > { %p234_p3 = scmp.eq.s32.totalorder %s4490_s13, 1  ;;  %p239_p4 = scmp.ne.s32.totalorder %s5487_s10, %s5483_s30 }
   0x8   : > { %s5588_s18 = scalar_select %p27_p1, %s5491_s11, %s29_s16  }
   0x9   : > { %p38_p5 = por %p37_p2, %p36_p0  ;;  %p5590_p6 = por %p234_p3, %p36_p0 }
   0xa   : > { %p240_p7 = scmp.eq.s32.totalorder %s4491_s14, 1  ;;  %p9642_p9 = scmp.ge.s32.totalorder %s5495_s12, 2 }
   0xc   : > { %p5594_p8 = por %p240_p7, %p239_p4  ;;  %280 = sbr.rel (%p9642_p9) target bundleno = 53 (0x35), region = 48 }
  0x11   : > { %283 = sbr.rel (!%p38_p5) target bundleno = 53 (0x35), region = 52  ;;  %s285_s21 = sand.u32 (%p38_p5), 1, %s5491_s11  }
  0x12   : > { %s5329_s22 = sshll.u32 (%p38_p5), %s5495_s12, 4  ;;  %s4494_s23 = sshll.u32 (%p38_p5), %s285_s21, 9 }
  0x13   : > { %s5606_s26 = scalar_lea.vmem (%p38_p5), %s9630_s0, %s5329_s22  ;;  %s5611_s27 = scalar_lea.vmem (%p38_p5), [#allocation2], %s4494_s23 }
  0x14   : > { %v303_v0 = vld [vmem:[%s5606_s26] sm:$0xff] (%p38_p5)  ;;  %v305_v1 = vld [vmem:[%s5606_s26 + $0x8] sm:$0xff] (%p38_p5) }
  0x15   : > { %v307_v2 = vld [vmem:[%s5606_s26 + $0x20] sm:$0xff] (%p38_p5)  ;;  %304 = vst [vmem:[%s5611_s27] sm:$0xff] (%p38_p5), %v303_v0  ;;  %306 = vst [vmem:[%s5611_s27 + $0x8] sm:$0xff] (%p38_p5), %v305_v1  ;;  %v309_v3 = vld [vmem:[%s5606_s26 + $0x28] sm:$0xff] (%p38_p5) }
  0x16   : > { %308 = vst [vmem:[%s5611_s27 + $0x10] sm:$0xff] %v307_v2  ;;  %v311_v4 = vld [vmem:[%s5606_s26 + $0x40] sm:$0xff]  ;;  %v313_v5 = vld [vmem:[%s5606_s26 + $0x48] sm:$0xff]  ;;  %310 = vst [vmem:[%s5611_s27 + $0x18] sm:$0xff] %v309_v3 }
  0x17   : > { %312 = vst [vmem:[%s5611_s27 + $0x20] sm:$0xff] %v311_v4  ;;  %314 = vst [vmem:[%s5611_s27 + $0x28] sm:$0xff] %v313_v5  ;;  %v315_v6 = vld [vmem:[%s5606_s26 + $0x60] sm:$0xff]  ;;  %v317_v7 = vld [vmem:[%s5606_s26 + $0x68] sm:$0xff] }
  0x18   : > { %v319_v8 = vld [vmem:[%s5606_s26 + $0x80] sm:$0xff]  ;;  %316 = vst [vmem:[%s5611_s27 + $0x30] sm:$0xff] %v315_v6  ;;  %318 = vst [vmem:[%s5611_s27 + $0x38] sm:$0xff] %v317_v7  ;;  %v321_v9 = vld [vmem:[%s5606_s26 + $0x88] sm:$0xff] }
  0x19   : > { %320 = vst [vmem:[%s5611_s27 + $0x40] sm:$0xff] %v319_v8  ;;  %v323_v10 = vld [vmem:[%s5606_s26 + $0xa0] sm:$0xff]  ;;  %v325_v11 = vld [vmem:[%s5606_s26 + $0xa8] sm:$0xff]  ;;  %322 = vst [vmem:[%s5611_s27 + $0x48] sm:$0xff] %v321_v9 }
  0x1a   : > { %324 = vst [vmem:[%s5611_s27 + $0x50] sm:$0xff] %v323_v10  ;;  %326 = vst [vmem:[%s5611_s27 + $0x58] sm:$0xff] %v325_v11  ;;  %v327_v12 = vld [vmem:[%s5606_s26 + $0xc0] sm:$0xff]  ;;  %v329_v13 = vld [vmem:[%s5606_s26 + $0xc8] sm:$0xff] }
  0x1b   : > { %v331_v14 = vld [vmem:[%s5606_s26 + $0xe0] sm:$0xff]  ;;  %328 = vst [vmem:[%s5611_s27 + $0x60] sm:$0xff] %v327_v12  ;;  %330 = vst [vmem:[%s5611_s27 + $0x68] sm:$0xff] %v329_v13  ;;  %v333_v15 = vld [vmem:[%s5606_s26 + $0xe8] sm:$0xff] }
  0x1c   : > { %332 = vst [vmem:[%s5611_s27 + $0x70] sm:$0xff] %v331_v14  ;;  %v335_v16 = vld [vmem:[%s5606_s26 + $0x100] sm:$0xff]  ;;  %v337_v17 = vld [vmem:[%s5606_s26 + $0x108] sm:$0xff]  ;;  %334 = vst [vmem:[%s5611_s27 + $0x78] sm:$0xff] %v333_v15 }
  0x1d   : > { %336 = vst [vmem:[%s5611_s27 + $0x80] sm:$0xff] %v335_v16  ;;  %338 = vst [vmem:[%s5611_s27 + $0x88] sm:$0xff] %v337_v17  ;;  %v339_v18 = vld [vmem:[%s5606_s26 + $0x120] sm:$0xff]  ;;  %v341_v19 = vld [vmem:[%s5606_s26 + $0x128] sm:$0xff] }
  0x1e   : > { %v343_v20 = vld [vmem:[%s5606_s26 + $0x140] sm:$0xff]  ;;  %340 = vst [vmem:[%s5611_s27 + $0x90] sm:$0xff] %v339_v18  ;;  %342 = vst [vmem:[%s5611_s27 + $0x98] sm:$0xff] %v341_v19  ;;  %v345_v21 = vld [vmem:[%s5606_s26 + $0x148] sm:$0xff] }
  0x1f   : > { %344 = vst [vmem:[%s5611_s27 + $0xa0] sm:$0xff] %v343_v20  ;;  %v347_v22 = vld [vmem:[%s5606_s26 + $0x160] sm:$0xff]  ;;  %v349_v23 = vld [vmem:[%s5606_s26 + $0x168] sm:$0xff]  ;;  %346 = vst [vmem:[%s5611_s27 + $0xa8] sm:$0xff] %v345_v21 }
  0x20   : > { %348 = vst [vmem:[%s5611_s27 + $0xb0] sm:$0xff] %v347_v22  ;;  %350 = vst [vmem:[%s5611_s27 + $0xb8] sm:$0xff] %v349_v23  ;;  %v351_v24 = vld [vmem:[%s5606_s26 + $0x180] sm:$0xff]  ;;  %v353_v25 = vld [vmem:[%s5606_s26 + $0x188] sm:$0xff] }
  0x21   : > { %v355_v26 = vld [vmem:[%s5606_s26 + $0x1a0] sm:$0xff]  ;;  %352 = vst [vmem:[%s5611_s27 + $0xc0] sm:$0xff] %v351_v24  ;;  %354 = vst [vmem:[%s5611_s27 + $0xc8] sm:$0xff] %v353_v25  ;;  %v357_v27 = vld [vmem:[%s5606_s26 + $0x1a8] sm:$0xff] }
  0x22   : > { %356 = vst [vmem:[%s5611_s27 + $0xd0] sm:$0xff] %v355_v26  ;;  %v359_v28 = vld [vmem:[%s5606_s26 + $0x1c0] sm:$0xff]  ;;  %v361_v29 = vld [vmem:[%s5606_s26 + $0x1c8] sm:$0xff]  ;;  %358 = vst [vmem:[%s5611_s27 + $0xd8] sm:$0xff] %v357_v27 }
  0x23   : > { %360 = vst [vmem:[%s5611_s27 + $0xe0] sm:$0xff] %v359_v28  ;;  %362 = vst [vmem:[%s5611_s27 + $0xe8] sm:$0xff] %v361_v29  ;;  %v363_v30 = vld [vmem:[%s5606_s26 + $0x1e0] sm:$0xff]  ;;  %v365_v31 = vld [vmem:[%s5606_s26 + $0x1e8] sm:$0xff] }
  0x24   : > { %v367_v32 = vld [vmem:[%s5606_s26 + $0x200] sm:$0xff]  ;;  %364 = vst [vmem:[%s5611_s27 + $0xf0] sm:$0xff] %v363_v30  ;;  %366 = vst [vmem:[%s5611_s27 + $0xf8] sm:$0xff] %v365_v31  ;;  %v369_v33 = vld [vmem:[%s5606_s26 + $0x208] sm:$0xff] }
  0x25   : > { %368 = vst [vmem:[%s5611_s27 + $0x100] sm:$0xff] %v367_v32  ;;  %v371_v34 = vld [vmem:[%s5606_s26 + $0x220] sm:$0xff]  ;;  %v373_v35 = vld [vmem:[%s5606_s26 + $0x228] sm:$0xff]  ;;  %370 = vst [vmem:[%s5611_s27 + $0x108] sm:$0xff] %v369_v33 }
  0x26   : > { %372 = vst [vmem:[%s5611_s27 + $0x110] sm:$0xff] %v371_v34  ;;  %374 = vst [vmem:[%s5611_s27 + $0x118] sm:$0xff] %v373_v35  ;;  %v375_v36 = vld [vmem:[%s5606_s26 + $0x240] sm:$0xff]  ;;  %v377_v37 = vld [vmem:[%s5606_s26 + $0x248] sm:$0xff] }
  0x27   : > { %v379_v38 = vld [vmem:[%s5606_s26 + $0x260] sm:$0xff]  ;;  %376 = vst [vmem:[%s5611_s27 + $0x120] sm:$0xff] %v375_v36  ;;  %378 = vst [vmem:[%s5611_s27 + $0x128] sm:$0xff] %v377_v37  ;;  %v381_v39 = vld [vmem:[%s5606_s26 + $0x268] sm:$0xff] }
  0x28   : > { %380 = vst [vmem:[%s5611_s27 + $0x130] sm:$0xff] %v379_v38  ;;  %v383_v40 = vld [vmem:[%s5606_s26 + $0x280] sm:$0xff]  ;;  %v385_v41 = vld [vmem:[%s5606_s26 + $0x288] sm:$0xff]  ;;  %382 = vst [vmem:[%s5611_s27 + $0x138] sm:$0xff] %v381_v39 }
  0x29   : > { %384 = vst [vmem:[%s5611_s27 + $0x140] sm:$0xff] %v383_v40  ;;  %386 = vst [vmem:[%s5611_s27 + $0x148] sm:$0xff] %v385_v41  ;;  %v387_v42 = vld [vmem:[%s5606_s26 + $0x2a0] sm:$0xff]  ;;  %v389_v43 = vld [vmem:[%s5606_s26 + $0x2a8] sm:$0xff] }
  0x2a   : > { %v391_v44 = vld [vmem:[%s5606_s26 + $0x2c0] sm:$0xff]  ;;  %388 = vst [vmem:[%s5611_s27 + $0x150] sm:$0xff] %v387_v42  ;;  %390 = vst [vmem:[%s5611_s27 + $0x158] sm:$0xff] %v389_v43  ;;  %v393_v45 = vld [vmem:[%s5606_s26 + $0x2c8] sm:$0xff] }
  0x2b   : > { %392 = vst [vmem:[%s5611_s27 + $0x160] sm:$0xff] %v391_v44  ;;  %v395_v46 = vld [vmem:[%s5606_s26 + $0x2e0] sm:$0xff]  ;;  %v397_v47 = vld [vmem:[%s5606_s26 + $0x2e8] sm:$0xff]  ;;  %394 = vst [vmem:[%s5611_s27 + $0x168] sm:$0xff] %v393_v45 }
  0x2c   : > { %396 = vst [vmem:[%s5611_s27 + $0x170] sm:$0xff] %v395_v46  ;;  %398 = vst [vmem:[%s5611_s27 + $0x178] sm:$0xff] %v397_v47  ;;  %v399_v48 = vld [vmem:[%s5606_s26 + $0x300] sm:$0xff]  ;;  %v401_v49 = vld [vmem:[%s5606_s26 + $0x308] sm:$0xff] }
  0x2d   : > { %v403_v50 = vld [vmem:[%s5606_s26 + $0x320] sm:$0xff]  ;;  %400 = vst [vmem:[%s5611_s27 + $0x180] sm:$0xff] %v399_v48  ;;  %402 = vst [vmem:[%s5611_s27 + $0x188] sm:$0xff] %v401_v49  ;;  %v405_v51 = vld [vmem:[%s5606_s26 + $0x328] sm:$0xff] }
  0x2e   : > { %404 = vst [vmem:[%s5611_s27 + $0x190] sm:$0xff] %v403_v50  ;;  %v407_v52 = vld [vmem:[%s5606_s26 + $0x340] sm:$0xff]  ;;  %v409_v53 = vld [vmem:[%s5606_s26 + $0x348] sm:$0xff]  ;;  %406 = vst [vmem:[%s5611_s27 + $0x198] sm:$0xff] %v405_v51 }
  0x2f   : > { %408 = vst [vmem:[%s5611_s27 + $0x1a0] sm:$0xff] %v407_v52  ;;  %410 = vst [vmem:[%s5611_s27 + $0x1a8] sm:$0xff] %v409_v53  ;;  %v411_v54 = vld [vmem:[%s5606_s26 + $0x360] sm:$0xff]  ;;  %v413_v55 = vld [vmem:[%s5606_s26 + $0x368] sm:$0xff] }
  0x30   : > { %v415_v56 = vld [vmem:[%s5606_s26 + $0x380] sm:$0xff]  ;;  %412 = vst [vmem:[%s5611_s27 + $0x1b0] sm:$0xff] %v411_v54  ;;  %414 = vst [vmem:[%s5611_s27 + $0x1b8] sm:$0xff] %v413_v55  ;;  %v417_v57 = vld [vmem:[%s5606_s26 + $0x388] sm:$0xff] }
  0x31   : > { %416 = vst [vmem:[%s5611_s27 + $0x1c0] sm:$0xff] %v415_v56  ;;  %v419_v58 = vld [vmem:[%s5606_s26 + $0x3a0] sm:$0xff]  ;;  %v421_v59 = vld [vmem:[%s5606_s26 + $0x3a8] sm:$0xff]  ;;  %418 = vst [vmem:[%s5611_s27 + $0x1c8] sm:$0xff] %v417_v57 }
  0x32   : > { %420 = vst [vmem:[%s5611_s27 + $0x1d0] sm:$0xff] %v419_v58  ;;  %422 = vst [vmem:[%s5611_s27 + $0x1d8] sm:$0xff] %v421_v59  ;;  %v423_v60 = vld [vmem:[%s5606_s26 + $0x3c0] sm:$0xff]  ;;  %v425_v61 = vld [vmem:[%s5606_s26 + $0x3c8] sm:$0xff] }
  0x33   : > { %v427_v62 = vld [vmem:[%s5606_s26 + $0x3e0] sm:$0xff]  ;;  %424 = vst [vmem:[%s5611_s27 + $0x1e0] sm:$0xff] %v423_v60  ;;  %426 = vst [vmem:[%s5611_s27 + $0x1e8] sm:$0xff] %v425_v61  ;;  %v429_v63 = vld [vmem:[%s5606_s26 + $0x3e8] sm:$0xff] }
  0x34   : > { %428 = vst [vmem:[%s5611_s27 + $0x1f0] sm:$0xff] %v427_v62  ;;  %430 = vst [vmem:[%s5611_s27 + $0x1f8] sm:$0xff] %v429_v63 }
  0x35 PF: > { %p4497_p10 = scmp.ge.s32.totalorder %s5495_s12, 1  ;;  %p435_p11 = scmp.lt.s32.totalorder %s5495_s12, 3 }
  0x37   : > { %p436_p12 = pnand %p4497_p10, %p435_p11 }
  0x39   : > { %439 = sbr.rel (%p436_p12) target bundleno = 1694 (0x69e), region = 75 }
  0x3e   : > { %v4587_v0 = vld [vmem:[%s9631_s1 + $0x2f8] sm:$0xff]  ;;  %v4586_v2 = vld [vmem:[%s9631_s1 + $0x2f0] sm:$0xff]  ;;  %v4585_v4 = vld [vmem:[%s9631_s1 + $0x2e8] sm:$0xff]  ;;  %s6071_s17 = sand.u32 1, %s5487_s10   ;;  %s5497_s27 = smov 120   ;;  %vm2654_vm0 = vcmask 982016  }
  0x3f   : > { %v564_v1 = vld [vmem:[%s9631_s1 + $0xf8] sm:$0xff]  ;;  %719 = vmatprep.subr.mxu0 %v4587_v0  ;;  %v563_v3 = vld [vmem:[%s9631_s1 + $0xf0] sm:$0xff]  ;;  %v562_v5 = vld [vmem:[%s9631_s1 + $0xe8] sm:$0xff]  ;;  %s4498_s22 = sshll.u32 %s6071_s17, 9  ;;  %vm2834_vm1 = vcmask 719872   ;;  %s5499_s29 = smov 112  }
  0x40   : > { %952 = vmatprep.subr.mxu1 %v564_v1  ;;  %720 = vmatpush1.msra.mxu0 %v4586_v2  ;;  %v4584_v6 = vld [vmem:[%s9631_s1 + $0x2e0] sm:$0xff]  ;;  %v4583_v8 = vld [vmem:[%s9631_s1 + $0x2d8] sm:$0xff]  ;;  %v4582_v10 = vld [vmem:[%s9631_s1 + $0x2d0] sm:$0xff]  ;;  %s6125_s25 = scalar_lea.vmem [#allocation2], %s4498_s22  ;;  %vm3819_vm2 = vcmask 916480   ;;  %vm3882_vm3 = vcmask 130048  }
  0x41   : > { %953 = vmatpush1.msra.mxu1 %v563_v3  ;;  %v561_v7 = vld [vmem:[%s9631_s1 + $0xe0] sm:$0xff]  ;;  %721 = vmatprep.subr.mxu0 %v4585_v4  ;;  %v560_v9 = vld [vmem:[%s9631_s1 + $0xd8] sm:$0xff]  ;;  %v559_v11 = vld [vmem:[%s9631_s1 + $0xd0] sm:$0xff]  ;;  %vm5500_vm4 = vmmov 0   ;;  %s4499_s21 = sshll.u32 %s6071_s17, 3  ;;  %s5326_s24 = sshll.u32 %s4490_s13, 7 }
  0x42   : > { %954 = vmatprep.subr.mxu1 %v562_v5  ;;  %722 = vmatpush1.msra.mxu0 %v4584_v6  ;;  %v4581_v12 = vld [vmem:[%s9631_s1 + $0x2c8] sm:$0xff]  ;;  %v4580_v14 = vld [vmem:[%s9631_s1 + $0x2c0] sm:$0xff]  ;;  %v4579_v16 = vld [vmem:[%s9631_s1 + $0x2b8] sm:$0xff]  ;;  %s476_s26 = scalar_lea.vmem [#allocation3], %s4499_s21  ;;  %s4424_s14 = scalar_lea.hbm %s9639_s9, %s5326_s24 }
  0x43   : > { %955 = vmatpush1.msra.mxu1 %v561_v7  ;;  %v558_v13 = vld [vmem:[%s9631_s1 + $0xc8] sm:$0xff]  ;;  %723 = vmatprep.subr.mxu0 %v4583_v8  ;;  %v557_v15 = vld [vmem:[%s9631_s1 + $0xc0] sm:$0xff]  ;;  %v556_v17 = vld [vmem:[%s9631_s1 + $0xb8] sm:$0xff]  ;;  %s4426_s22 = sshll.u32 %s476_s26, 4  ;;  %s5501_s23 = smov [#allocation3]   ;;  %s4427_s22 = int_to_ptr.vmem [resolvable:$true] %s4426_s22 }
  0x44   : > { %956 = vmatprep.subr.mxu1 %v560_v9  ;;  %724 = vmatpush1.msra.mxu0 %v4582_v10  ;;  %v4578_v18 = vld [vmem:[%s9631_s1 + $0x2b0] sm:$0xff]  ;;  %v4577_v20 = vld [vmem:[%s9631_s1 + $0x2a8] sm:$0xff]  ;;  %v4576_v22 = vld [vmem:[%s9631_s1 + $0x2a0] sm:$0xff]  ;;  %s5435_s16 = scalar_lea.vmem %s4427_s22, 128 }
  0x45   : > { %957 = vmatpush1.msra.mxu1 %v559_v11  ;;  %725 = vmatprep.subr.mxu0 %v4581_v12  ;;  %v555_v19 = vld [vmem:[%s9631_s1 + $0xb0] sm:$0xff]  ;;  %v554_v21 = vld [vmem:[%s9631_s1 + $0xa8] sm:$0xff]  ;;  %v553_v23 = vld [vmem:[%s9631_s1 + $0xa0] sm:$0xff]  ;;  %p5436_p13 = scmp.ne.s32.totalorder %s4427_s22, %s5435_s16 }
  0x46   : > { %958 = vmatprep.subr.mxu1 %v558_v13  ;;  %726 = vmatpush1.msra.mxu0 %v4580_v14  ;;  %v4575_v24 = vld [vmem:[%s9631_s1 + $0x298] sm:$0xff]  ;;  %v4574_v26 = vld [vmem:[%s9631_s1 + $0x290] sm:$0xff]  ;;  %v4573_v28 = vld [vmem:[%s9631_s1 + $0x288] sm:$0xff] }
  0x47   : > { %959 = vmatpush1.msra.mxu1 %v557_v15  ;;  %727 = vmatprep.subr.mxu0 %v4579_v16  ;;  %v552_v25 = vld [vmem:[%s9631_s1 + $0x98] sm:$0xff]  ;;  %v551_v27 = vld [vmem:[%s9631_s1 + $0x90] sm:$0xff]  ;;  %v550_v29 = vld [vmem:[%s9631_s1 + $0x88] sm:$0xff]  ;;  %p5437_p0 = pnand %p5436_p13, %p5590_p6 }
  0x48   : > { %960 = vmatprep.subr.mxu1 %v556_v17  ;;  %728 = vmatpush1.msra.mxu0 %v4578_v18  ;;  %v4572_v30 = vld [vmem:[%s9631_s1 + $0x280] sm:$0xff]  ;;  %v4571_v32 = vld [vmem:[%s9631_s1 + $0x278] sm:$0xff]  ;;  %v4570_v34 = vld [vmem:[%s9631_s1 + $0x270] sm:$0xff] }
  0x49   : > { %961 = vmatpush1.msra.mxu1 %v555_v19  ;;  %729 = vmatprep.subr.mxu0 %v4577_v20  ;;  %v549_v31 = vld [vmem:[%s9631_s1 + $0x80] sm:$0xff]  ;;  %v548_v33 = vld [vmem:[%s9631_s1 + $0x78] sm:$0xff]  ;;  %v547_v35 = vld [vmem:[%s9631_s1 + $0x70] sm:$0xff]  ;;  %p5438_p1 = pneg %p5437_p0 }
  0x4a   : > { %962 = vmatprep.subr.mxu1 %v554_v21  ;;  %730 = vmatpush1.msra.mxu0 %v4576_v22  ;;  %v4569_v36 = vld [vmem:[%s9631_s1 + $0x268] sm:$0xff]  ;;  %v4568_v38 = vld [vmem:[%s9631_s1 + $0x260] sm:$0xff]  ;;  %v4567_v40 = vld [vmem:[%s9631_s1 + $0x258] sm:$0xff] }
  0x4b   : > { %963 = vmatpush1.msra.mxu1 %v553_v23  ;;  %731 = vmatprep.subr.mxu0 %v4575_v24  ;;  %v546_v37 = vld [vmem:[%s9631_s1 + $0x68] sm:$0xff]  ;;  %v545_v39 = vld [vmem:[%s9631_s1 + $0x60] sm:$0xff]  ;;  %v544_v41 = vld [vmem:[%s9631_s1 + $0x58] sm:$0xff] }
  0x4c   : > { %964 = vmatprep.subr.mxu1 %v552_v25  ;;  %732 = vmatpush1.msra.mxu0 %v4574_v26  ;;  %v4566_v42 = vld [vmem:[%s9631_s1 + $0x250] sm:$0xff]  ;;  %v4565_v44 = vld [vmem:[%s9631_s1 + $0x248] sm:$0xff]  ;;  %v4564_v46 = vld [vmem:[%s9631_s1 + $0x240] sm:$0xff] }
  0x4d   : > { %965 = vmatpush1.msra.mxu1 %v551_v27  ;;  %733 = vmatprep.subr.mxu0 %v4573_v28  ;;  %v543_v43 = vld [vmem:[%s9631_s1 + $0x50] sm:$0xff]  ;;  %v542_v45 = vld [vmem:[%s9631_s1 + $0x48] sm:$0xff]  ;;  %v541_v47 = vld [vmem:[%s9631_s1 + $0x40] sm:$0xff] }
  0x4e   : > { %966 = vmatprep.subr.mxu1 %v550_v29  ;;  %734 = vmatpush1.msra.mxu0 %v4572_v30  ;;  %v4563_v48 = vld [vmem:[%s9631_s1 + $0x238] sm:$0xff]  ;;  %v4562_v50 = vld [vmem:[%s9631_s1 + $0x230] sm:$0xff]  ;;  %v4561_v52 = vld [vmem:[%s9631_s1 + $0x228] sm:$0xff] }
  0x4f   : > { %967 = vmatpush1.msra.mxu1 %v549_v31  ;;  %735 = vmatprep.subr.mxu0 %v4571_v32  ;;  %v540_v49 = vld [vmem:[%s9631_s1 + $0x38] sm:$0xff]  ;;  %v539_v51 = vld [vmem:[%s9631_s1 + $0x30] sm:$0xff]  ;;  %v538_v53 = vld [vmem:[%s9631_s1 + $0x28] sm:$0xff] }
  0x50   : > { %968 = vmatprep.subr.mxu1 %v548_v33  ;;  %736 = vmatpush1.msra.mxu0 %v4570_v34  ;;  %v4560_v54 = vld [vmem:[%s9631_s1 + $0x220] sm:$0xff]  ;;  %v4559_v56 = vld [vmem:[%s9631_s1 + $0x218] sm:$0xff]  ;;  %v4558_v58 = vld [vmem:[%s9631_s1 + $0x210] sm:$0xff] }
  0x51   : > { %969 = vmatpush1.msra.mxu1 %v547_v35  ;;  %737 = vmatprep.subr.mxu0 %v4569_v36  ;;  %v537_v55 = vld [vmem:[%s9631_s1 + $0x20] sm:$0xff]  ;;  %v536_v57 = vld [vmem:[%s9631_s1 + $0x18] sm:$0xff]  ;;  %v535_v59 = vld [vmem:[%s9631_s1 + $0x10] sm:$0xff] }
  0x52   : > { %970 = vmatprep.subr.mxu1 %v546_v37  ;;  %738 = vmatpush1.msra.mxu0 %v4568_v38  ;;  %v4557_v60 = vld [vmem:[%s9631_s1 + $0x208] sm:$0xff]  ;;  %v4556_v62 = vld [vmem:[%s9631_s1 + $0x200] sm:$0xff]  ;;  %v4619_v0 = vld [vmem:[%s9631_s1 + $0x3f8] sm:$0xff] }
  0x53   : > { %971 = vmatpush1.msra.mxu1 %v545_v39  ;;  %739 = vmatprep.subr.mxu0 %v4567_v40  ;;  %v534_v61 = vld [vmem:[%s9631_s1 + $0x8] sm:$0xff]  ;;  %v533_v63 = vld [vmem:[%s9631_s1] sm:$0xff]  ;;  %v596_v1 = vld [vmem:[%s9631_s1 + $0x1f8] sm:$0xff] }
  0x54   : > { %972 = vmatprep.subr.mxu1 %v544_v41  ;;  %740 = vmatpush1.msra.mxu0 %v4566_v42  ;;  %v4618_v2 = vld [vmem:[%s9631_s1 + $0x3f0] sm:$0xff]  ;;  %v4617_v4 = vld [vmem:[%s9631_s1 + $0x3e8] sm:$0xff]  ;;  %v4616_v6 = vld [vmem:[%s9631_s1 + $0x3e0] sm:$0xff] }
  0x55   : > { %973 = vmatpush1.msra.mxu1 %v543_v43  ;;  %741 = vmatprep.subr.mxu0 %v4565_v44  ;;  %v595_v3 = vld [vmem:[%s9631_s1 + $0x1f0] sm:$0xff]  ;;  %v594_v5 = vld [vmem:[%s9631_s1 + $0x1e8] sm:$0xff]  ;;  %v593_v7 = vld [vmem:[%s9631_s1 + $0x1e0] sm:$0xff] }
  0x56   : > { %974 = vmatprep.subr.mxu1 %v542_v45  ;;  %742 = vmatpush1.msra.mxu0 %v4564_v46  ;;  %v4615_v8 = vld [vmem:[%s9631_s1 + $0x3d8] sm:$0xff]  ;;  %v4614_v10 = vld [vmem:[%s9631_s1 + $0x3d0] sm:$0xff]  ;;  %v4613_v12 = vld [vmem:[%s9631_s1 + $0x3c8] sm:$0xff] }
  0x57   : > { %975 = vmatpush1.msra.mxu1 %v541_v47  ;;  %743 = vmatprep.subr.mxu0 %v4563_v48  ;;  %v592_v9 = vld [vmem:[%s9631_s1 + $0x1d8] sm:$0xff]  ;;  %v591_v11 = vld [vmem:[%s9631_s1 + $0x1d0] sm:$0xff]  ;;  %v590_v13 = vld [vmem:[%s9631_s1 + $0x1c8] sm:$0xff] }
  0x58   : > { %976 = vmatprep.subr.mxu1 %v540_v49  ;;  %744 = vmatpush1.msra.mxu0 %v4562_v50  ;;  %v4612_v14 = vld [vmem:[%s9631_s1 + $0x3c0] sm:$0xff]  ;;  %v4611_v16 = vld [vmem:[%s9631_s1 + $0x3b8] sm:$0xff]  ;;  %v4610_v18 = vld [vmem:[%s9631_s1 + $0x3b0] sm:$0xff] }
  0x59   : > { %977 = vmatpush1.msra.mxu1 %v539_v51  ;;  %745 = vmatprep.subr.mxu0 %v4561_v52  ;;  %v589_v15 = vld [vmem:[%s9631_s1 + $0x1c0] sm:$0xff]  ;;  %v588_v17 = vld [vmem:[%s9631_s1 + $0x1b8] sm:$0xff]  ;;  %v587_v19 = vld [vmem:[%s9631_s1 + $0x1b0] sm:$0xff] }
  0x5a   : > { %978 = vmatprep.subr.mxu1 %v538_v53  ;;  %746 = vmatpush1.msra.mxu0 %v4560_v54  ;;  %v4609_v20 = vld [vmem:[%s9631_s1 + $0x3a8] sm:$0xff]  ;;  %v4608_v22 = vld [vmem:[%s9631_s1 + $0x3a0] sm:$0xff]  ;;  %v4607_v24 = vld [vmem:[%s9631_s1 + $0x398] sm:$0xff] }
  0x5b   : > { %979 = vmatpush1.msra.mxu1 %v537_v55  ;;  %747 = vmatprep.subr.mxu0 %v4559_v56  ;;  %v586_v21 = vld [vmem:[%s9631_s1 + $0x1a8] sm:$0xff]  ;;  %v585_v23 = vld [vmem:[%s9631_s1 + $0x1a0] sm:$0xff]  ;;  %v584_v25 = vld [vmem:[%s9631_s1 + $0x198] sm:$0xff] }
  0x5c   : > { %980 = vmatprep.subr.mxu1 %v536_v57  ;;  %748 = vmatpush1.msra.mxu0 %v4558_v58  ;;  %v4606_v26 = vld [vmem:[%s9631_s1 + $0x390] sm:$0xff]  ;;  %v4605_v28 = vld [vmem:[%s9631_s1 + $0x388] sm:$0xff]  ;;  %v4604_v30 = vld [vmem:[%s9631_s1 + $0x380] sm:$0xff] }
  0x5d   : > { %981 = vmatpush1.msra.mxu1 %v535_v59  ;;  %749 = vmatprep.subr.mxu0 %v4557_v60  ;;  %v583_v27 = vld [vmem:[%s9631_s1 + $0x190] sm:$0xff]  ;;  %v582_v29 = vld [vmem:[%s9631_s1 + $0x188] sm:$0xff]  ;;  %v581_v31 = vld [vmem:[%s9631_s1 + $0x180] sm:$0xff] }
  0x5e   : > { %982 = vmatprep.subr.mxu1 %v534_v61  ;;  %750 = vmatpush1.msra.mxu0 %v4556_v62  ;;  %v4603_v32 = vld [vmem:[%s9631_s1 + $0x378] sm:$0xff]  ;;  %v4602_v34 = vld [vmem:[%s9631_s1 + $0x370] sm:$0xff]  ;;  %v4601_v36 = vld [vmem:[%s9631_s1 + $0x368] sm:$0xff] }
  0x5f   : > { %983 = vmatpush1.msra.mxu1 %v533_v63  ;;  %751 = vmatprep.subr.mxu0 %v4619_v0  ;;  %v580_v33 = vld [vmem:[%s9631_s1 + $0x178] sm:$0xff]  ;;  %v579_v35 = vld [vmem:[%s9631_s1 + $0x170] sm:$0xff]  ;;  %v578_v37 = vld [vmem:[%s9631_s1 + $0x168] sm:$0xff] }
  0x60   : > { %984 = vmatprep.subr.mxu1 %v596_v1  ;;  %752 = vmatpush2.msra.mxu0 %v4618_v2  ;;  %v4600_v38 = vld [vmem:[%s9631_s1 + $0x360] sm:$0xff]  ;;  %v4599_v40 = vld [vmem:[%s9631_s1 + $0x358] sm:$0xff]  ;;  %v4598_v42 = vld [vmem:[%s9631_s1 + $0x350] sm:$0xff] }
  0x61   : > { %985 = vmatpush2.msra.mxu1 %v595_v3  ;;  %753 = vmatprep.subr.mxu0 %v4617_v4  ;;  %v577_v39 = vld [vmem:[%s9631_s1 + $0x160] sm:$0xff]  ;;  %v576_v41 = vld [vmem:[%s9631_s1 + $0x158] sm:$0xff]  ;;  %v575_v43 = vld [vmem:[%s9631_s1 + $0x150] sm:$0xff] }
  0x62   : > { %986 = vmatprep.subr.mxu1 %v594_v5  ;;  %754 = vmatpush2.msra.mxu0 %v4616_v6  ;;  %v4597_v44 = vld [vmem:[%s9631_s1 + $0x348] sm:$0xff]  ;;  %v4596_v46 = vld [vmem:[%s9631_s1 + $0x340] sm:$0xff]  ;;  %v4595_v48 = vld [vmem:[%s9631_s1 + $0x338] sm:$0xff] }
  0x63   : > { %987 = vmatpush2.msra.mxu1 %v593_v7  ;;  %755 = vmatprep.subr.mxu0 %v4615_v8  ;;  %v574_v45 = vld [vmem:[%s9631_s1 + $0x148] sm:$0xff]  ;;  %v573_v47 = vld [vmem:[%s9631_s1 + $0x140] sm:$0xff]  ;;  %v572_v49 = vld [vmem:[%s9631_s1 + $0x138] sm:$0xff] }
  0x64   : > { %988 = vmatprep.subr.mxu1 %v592_v9  ;;  %756 = vmatpush2.msra.mxu0 %v4614_v10  ;;  %v4594_v50 = vld [vmem:[%s9631_s1 + $0x330] sm:$0xff]  ;;  %v4593_v52 = vld [vmem:[%s9631_s1 + $0x328] sm:$0xff]  ;;  %v4592_v54 = vld [vmem:[%s9631_s1 + $0x320] sm:$0xff] }
  0x65   : > { %989 = vmatpush2.msra.mxu1 %v591_v11  ;;  %757 = vmatprep.subr.mxu0 %v4613_v12  ;;  %v571_v51 = vld [vmem:[%s9631_s1 + $0x130] sm:$0xff]  ;;  %v570_v53 = vld [vmem:[%s9631_s1 + $0x128] sm:$0xff]  ;;  %v569_v55 = vld [vmem:[%s9631_s1 + $0x120] sm:$0xff] }
  0x66   : > { %990 = vmatprep.subr.mxu1 %v590_v13  ;;  %758 = vmatpush2.msra.mxu0 %v4612_v14  ;;  %v4591_v56 = vld [vmem:[%s9631_s1 + $0x318] sm:$0xff]  ;;  %v4590_v58 = vld [vmem:[%s9631_s1 + $0x310] sm:$0xff]  ;;  %v4589_v60 = vld [vmem:[%s9631_s1 + $0x308] sm:$0xff] }
  0x67   : > { %991 = vmatpush2.msra.mxu1 %v589_v15  ;;  %759 = vmatprep.subr.mxu0 %v4611_v16  ;;  %v568_v57 = vld [vmem:[%s9631_s1 + $0x118] sm:$0xff]  ;;  %v567_v59 = vld [vmem:[%s9631_s1 + $0x110] sm:$0xff]  ;;  %v566_v61 = vld [vmem:[%s9631_s1 + $0x108] sm:$0xff] }
  0x68   : > { %992 = vmatprep.subr.mxu1 %v588_v17  ;;  %760 = vmatpush2.msra.mxu0 %v4610_v18  ;;  %v4588_v62 = vld [vmem:[%s9631_s1 + $0x300] sm:$0xff]  ;;  %v4501_v63 = vld [vmem:[%s6125_s25 + $0x18] sm:$0xff]  ;;  %v478_v1 = vld [vmem:[%s6125_s25 + $0x8] sm:$0xff] }
  0x69   : > { %993 = vmatpush2.msra.mxu1 %v587_v19  ;;  %761 = vmatprep.subr.mxu0 %v4609_v20  ;;  %v565_v0 = vld [vmem:[%s9631_s1 + $0x100] sm:$0xff]  ;;  %v4500_v2 = vld [vmem:[%s6125_s25 + $0x10] sm:$0xff]  ;;  %v4707_v4 = vld [vmem:[%s9631_s1 + $0x4f8] sm:$0xff] }
  0x6a   : > { %994 = vmatprep.subr.mxu1 %v586_v21  ;;  %762 = vmatpush2.msra.mxu0 %v4608_v22  ;;  %v477_v3 = vld [vmem:[%s6125_s25] sm:$0xff]  ;;  %v6138_v5 = vld [vmem:[%s6125_s25 + $0x28] sm:$0xff]  ;;  %v4706_v6 = vld [vmem:[%s9631_s1 + $0x4f0] sm:$0xff] }
  0x6b   : > { %995 = vmatpush2.msra.mxu1 %v585_v23  ;;  %763 = vmatprep.subr.mxu0 %v4607_v24  ;;  %v4705_v7 = vld [vmem:[%s9631_s1 + $0x4e8] sm:$0xff]  ;;  %v4827_v8 = vld [vmem:[%s9631_s1 + $0x6f8] sm:$0xff]  ;;  %v6151_v9 = vld [vmem:[%s6125_s25 + $0x20] sm:$0xff] }
  0x6c   : > { %996 = vmatprep.subr.mxu1 %v584_v25  ;;  %764 = vmatpush2.msra.mxu0 %v4606_v26  ;;  %v4704_v10 = vld [vmem:[%s9631_s1 + $0x4e0] sm:$0xff]  ;;  %v6157_v11 = vld [vmem:[%s6125_s25 + $0x38] sm:$0xff]  ;;  %v4702_v13 = vld [vmem:[%s9631_s1 + $0x4d0] sm:$0xff] }
  0x6d   : > { %997 = vmatpush2.msra.mxu1 %v583_v27  ;;  %765 = vmatprep.subr.mxu0 %v4605_v28  ;;  %v4703_v12 = vld [vmem:[%s9631_s1 + $0x4d8] sm:$0xff]  ;;  %v4826_v14 = vld [vmem:[%s9631_s1 + $0x6f0] sm:$0xff]  ;;  %v6175_v16 = vld [vmem:[%s6125_s25 + $0x48] sm:$0xff] }
  0x6e   : > { %998 = vmatprep.subr.mxu1 %v582_v29  ;;  %766 = vmatpush2.msra.mxu0 %v4604_v30  ;;  %v6171_v15 = vld [vmem:[%s6125_s25 + $0x30] sm:$0xff]  ;;  %v4701_v17 = vld [vmem:[%s9631_s1 + $0x4c8] sm:$0xff]  ;;  %v4700_v19 = vld [vmem:[%s9631_s1 + $0x4c0] sm:$0xff] }
  0x6f   : > { %999 = vmatpush2.msra.mxu1 %v581_v31  ;;  %767 = vmatprep.subr.mxu0 %v4603_v32  ;;  %v4825_v18 = vld [vmem:[%s9631_s1 + $0x6e8] sm:$0xff]  ;;  %v4824_v20 = vld [vmem:[%s9631_s1 + $0x6e0] sm:$0xff]  ;;  %v4699_v22 = vld [vmem:[%s9631_s1 + $0x4b8] sm:$0xff] }
  0x70   : > { %1000 = vmatprep.subr.mxu1 %v580_v33  ;;  %768 = vmatpush2.msra.mxu0 %v4602_v34  ;;  %v6194_v21 = vld [vmem:[%s6125_s25 + $0x40] sm:$0xff]  ;;  %v6200_v23 = vld [vmem:[%s6125_s25 + $0x58] sm:$0xff]  ;;  %v4698_v24 = vld [vmem:[%s9631_s1 + $0x4b0] sm:$0xff] }
  0x71   : > { %1001 = vmatpush2.msra.mxu1 %v579_v35  ;;  %769 = vmatprep.subr.mxu0 %v4601_v36  ;;  %v4697_v25 = vld [vmem:[%s9631_s1 + $0x4a8] sm:$0xff]  ;;  %v4823_v26 = vld [vmem:[%s9631_s1 + $0x6d8] sm:$0xff]  ;;  %v6215_v27 = vld [vmem:[%s6125_s25 + $0x50] sm:$0xff] }
  0x72   : > { %1002 = vmatprep.subr.mxu1 %v578_v37  ;;  %770 = vmatpush2.msra.mxu0 %v4600_v38  ;;  %v6219_v28 = vld [vmem:[%s6125_s25 + $0x68] sm:$0xff]  ;;  %v4696_v29 = vld [vmem:[%s9631_s1 + $0x4a0] sm:$0xff]  ;;  %v4822_v30 = vld [vmem:[%s9631_s1 + $0x6d0] sm:$0xff] }
  0x73   : > { %1003 = vmatpush2.msra.mxu1 %v577_v39  ;;  %771 = vmatprep.subr.mxu0 %v4599_v40  ;;  %v4695_v31 = vld [vmem:[%s9631_s1 + $0x498] sm:$0xff]  ;;  %v4821_v32 = vld [vmem:[%s9631_s1 + $0x6c8] sm:$0xff]  ;;  %v6238_v33 = vld [vmem:[%s6125_s25 + $0x60] sm:$0xff] }
  0x74   : > { %1004 = vmatprep.subr.mxu1 %v576_v41  ;;  %772 = vmatpush2.msra.mxu0 %v4598_v42  ;;  %v4694_v34 = vld [vmem:[%s9631_s1 + $0x490] sm:$0xff]  ;;  %v6244_v35 = vld [vmem:[%s6125_s25 + $0x78] sm:$0xff]  ;;  %v4693_v36 = vld [vmem:[%s9631_s1 + $0x488] sm:$0xff] }
  0x75   : > { %1005 = vmatpush2.msra.mxu1 %v575_v43  ;;  %773 = vmatprep.subr.mxu0 %v4597_v44  ;;  %v4692_v37 = vld [vmem:[%s9631_s1 + $0x480] sm:$0xff]  ;;  %v6259_v39 = vld [vmem:[%s6125_s25 + $0x70] sm:$0xff]  ;;  %v6263_v40 = vld [vmem:[%s6125_s25 + $0x88] sm:$0xff] }
  0x76   : > { %1006 = vmatprep.subr.mxu1 %v574_v45  ;;  %774 = vmatpush2.msra.mxu0 %v4596_v46  ;;  %v4820_v38 = vld [vmem:[%s9631_s1 + $0x6c0] sm:$0xff]  ;;  %v4691_v41 = vld [vmem:[%s9631_s1 + $0x478] sm:$0xff]  ;;  %v4690_v43 = vld [vmem:[%s9631_s1 + $0x470] sm:$0xff] }
  0x77   : > { %1007 = vmatpush2.msra.mxu1 %v573_v47  ;;  %775 = vmatprep.subr.mxu0 %v4595_v48  ;;  %v4819_v42 = vld [vmem:[%s9631_s1 + $0x6b8] sm:$0xff]  ;;  %v4818_v44 = vld [vmem:[%s9631_s1 + $0x6b0] sm:$0xff]  ;;  %v6282_v45 = vld [vmem:[%s6125_s25 + $0x80] sm:$0xff] }
  0x78   : > { %1008 = vmatprep.subr.mxu1 %v572_v49  ;;  %776 = vmatpush2.msra.mxu0 %v4594_v50  ;;  %v6285_v46 = vld [vmem:[%s6125_s25 + $0x98] sm:$0xff]  ;;  %v4689_v47 = vld [vmem:[%s9631_s1 + $0x468] sm:$0xff]  ;;  %v4688_v49 = vld [vmem:[%s9631_s1 + $0x460] sm:$0xff] }
  0x79   : > { %1009 = vmatpush2.msra.mxu1 %v571_v51  ;;  %777 = vmatprep.subr.mxu0 %v4593_v52  ;;  %v4817_v48 = vld [vmem:[%s9631_s1 + $0x6a8] sm:$0xff]  ;;  %v4816_v50 = vld [vmem:[%s9631_s1 + $0x6a0] sm:$0xff]  ;;  %v6304_v51 = vld [vmem:[%s6125_s25 + $0x90] sm:$0xff] }
  0x7a   : > { %1010 = vmatprep.subr.mxu1 %v570_v53  ;;  %778 = vmatpush2.msra.mxu0 %v4592_v54  ;;  %v6307_v52 = vld [vmem:[%s6125_s25 + $0xa8] sm:$0xff]  ;;  %v4687_v53 = vld [vmem:[%s9631_s1 + $0x458] sm:$0xff] }
  0x7b   : > { %1011 = vmatpush2.msra.mxu1 %v569_v55  ;;  %779 = vmatprep.subr.mxu0 %v4591_v56  ;;  %v4815_v54 = vld [vmem:[%s9631_s1 + $0x698] sm:$0xff]  ;;  %v4686_v55 = vld [vmem:[%s9631_s1 + $0x450] sm:$0xff] }
  0x7c   : > { %1012 = vmatprep.subr.mxu1 %v568_v57  ;;  %780 = vmatpush2.msra.mxu0 %v4590_v58  ;;  %v4814_v56 = vld [vmem:[%s9631_s1 + $0x690] sm:$0xff]  ;;  %v6326_v57 = vld [vmem:[%s6125_s25 + $0xa0] sm:$0xff]  ;;  %v6329_v58 = vld [vmem:[%s6125_s25 + $0xb8] sm:$0xff] }
  0x7d   : > { %1013 = vmatpush2.msra.mxu1 %v567_v59  ;;  %781 = vmatprep.subr.mxu0 %v4589_v60  ;;  %v4685_v59 = vld [vmem:[%s9631_s1 + $0x448] sm:$0xff] }
  0x7e   : > { %1014 = vmatprep.subr.mxu1 %v566_v61  ;;  %782 = vmatpush2.msra.mxu0 %v4588_v62  ;;  %v4813_v60 = vld [vmem:[%s9631_s1 + $0x688] sm:$0xff]  ;;  %v4684_v61 = vld [vmem:[%s9631_s1 + $0x440] sm:$0xff] }
  0x7f   : > { %783 = vmatprep.mubr.f32.mxu0 %v4501_v63  ;;  %1015 = vmatpush2.msra.mxu1 %v565_v0  ;;  %v4812_v62 = vld [vmem:[%s9631_s1 + $0x680] sm:$0xff]  ;;  %v4683_v0 = vld [vmem:[%s9631_s1 + $0x438] sm:$0xff] }
  0x80   : > { %1016 = vmatprep.mubr.f32.mxu1 %v478_v1  ;;  %784 = vmatmul.mubr.f32.vlgmr.msra.gmra.mxu0 %v4500_v2  ;;  %v6354_v1 = vld [vmem:[%s6125_s25 + $0xc8] sm:$0xff] }
  0x81   : > { %1017 = vmatmul.mubr.f32.vlgmr.msra.gmra.mxu1 %v477_v3  ;;  %1307 = vmatprep.subr.mxu0 %v4707_v4  ;;  %v4681_v3 = vld [vmem:[%s9631_s1 + $0x428] sm:$0xff]  ;;  %v4811_v4 = vld [vmem:[%s9631_s1 + $0x678] sm:$0xff] }
  0x82   : > { %789 = vmatprep.mubr.f32.mxu0 %v6138_v5  ;;  %1308 = vmatpush1.msra.mxu0 %v4706_v6  ;;  %v6369_v6 = vld [vmem:[%s6125_s25 + $0xc0] sm:$0xff] }
  0x83   : > { %1022 = vmatprep.mubr.f32.mxu1 %v4501_v63  ;;  %1309 = vmatprep.subr.mxu0 %v4705_v7  ;;  %v6348_v63 = vld [vmem:[%s6125_s25 + $0xb0] sm:$0xff]  ;;  %v6373_v7 = vld [vmem:[%s6125_s25 + $0xd8] sm:$0xff] }
  0x84   : > { %1718 = vmatprep.subr.mxu1 %v4827_v8  ;;  %790 = vmatmul.mubr.f32.gmra.mxu0 %v6151_v9  ;;  %v4680_v8 = vld [vmem:[%s9631_s1 + $0x420] sm:$0xff] }
  0x85   : > { %1023 = vmatmul.mubr.f32.gmra.mxu1 %v4500_v2  ;;  %1310 = vmatpush1.msra.mxu0 %v4704_v10  ;;  %v4682_v2 = vld [vmem:[%s9631_s1 + $0x430] sm:$0xff] }
  0x86   : > { %795 = vmatprep.mubr.f32.mxu0 %v6157_v11  ;;  %1028 = vmatprep.mubr.f32.mxu1 %v6138_v5  ;;  %v4810_v10 = vld [vmem:[%s9631_s1 + $0x670] sm:$0xff] }
  0x87   : > { %1311 = vmatprep.subr.mxu0 %v4703_v12  ;;  %1719 = vmatpush1.msra.mxu1 %v4826_v14  ;;  %v4679_v12 = vld [vmem:[%s9631_s1 + $0x418] sm:$0xff]  ;;  %v6392_v14 = vld [vmem:[%s6125_s25 + $0xd0] sm:$0xff] }
  0x88   : > { %1312 = vmatpush1.msra.mxu0 %v4702_v13  ;;  %1720 = vmatprep.subr.mxu1 %v4825_v18  ;;  %v4809_v13 = vld [vmem:[%s9631_s1 + $0x668] sm:$0xff] }
  0x89   : > { %796 = vmatmul.mubr.f32.gmra.mxu0 %v6171_v15  ;;  %1029 = vmatmul.mubr.f32.gmra.mxu1 %v6151_v9  ;;  %v6398_v18 = vld [vmem:[%s6125_s25 + $0xe8] sm:$0xff] }
  0x8a   : > { %801 = vmatprep.mubr.f32.mxu0 %v6175_v16  ;;  %1034 = vmatprep.mubr.f32.mxu1 %v6157_v11 }
  0x8b   : > { %1313 = vmatprep.subr.mxu0 %v4701_v17  ;;  %1721 = vmatpush1.msra.mxu1 %v4824_v20  ;;  %v4678_v17 = vld [vmem:[%s9631_s1 + $0x410] sm:$0xff]  ;;  %v4676_v20 = vld [vmem:[%s9631_s1 + $0x400] sm:$0xff] }
  0x8c   : > { %1314 = vmatpush1.msra.mxu0 %v4700_v19  ;;  %1722 = vmatprep.subr.mxu1 %v4823_v26  ;;  %v4677_v19 = vld [vmem:[%s9631_s1 + $0x408] sm:$0xff]  ;;  %v4739_v26 = vld [vmem:[%s9631_s1 + $0x5f8] sm:$0xff] }
  0x8d   : > { %802 = vmatmul.mubr.f32.gmra.mxu0 %v6194_v21  ;;  %1035 = vmatmul.mubr.f32.gmra.mxu1 %v6171_v15 }
  0x8e   : > { %1315 = vmatprep.subr.mxu0 %v4699_v22  ;;  %807 = vmatprep.mubr.f32.mxu0 %v6200_v23  ;;  %v4808_v22 = vld [vmem:[%s9631_s1 + $0x660] sm:$0xff] }
  0x8f   : > { %1040 = vmatprep.mubr.f32.mxu1 %v6175_v16  ;;  %1316 = vmatpush1.msra.mxu0 %v4698_v24  ;;  %v6413_v24 = vld [vmem:[%s6125_s25 + $0xe0] sm:$0xff] }
  0x90   : > { %1317 = vmatprep.subr.mxu0 %v4697_v25  ;;  %1723 = vmatpush1.msra.mxu1 %v4822_v30  ;;  %v6417_v25 = vld [vmem:[%s6125_s25 + $0xf8] sm:$0xff]  ;;  %v4738_v30 = vld [vmem:[%s9631_s1 + $0x5f0] sm:$0xff] }
  0x91   : > { %808 = vmatmul.mubr.f32.gmra.mxu0 %v6215_v27  ;;  %1041 = vmatmul.mubr.f32.gmra.mxu1 %v6194_v21 }
  0x92   : > { %813 = vmatprep.mubr.f32.mxu0 %v6219_v28  ;;  %1046 = vmatprep.mubr.f32.mxu1 %v6200_v23 }
  0x93   : > { %1318 = vmatpush1.msra.mxu0 %v4696_v29  ;;  %1724 = vmatprep.subr.mxu1 %v4821_v32  ;;  %v4807_v29 = vld [vmem:[%s9631_s1 + $0x658] sm:$0xff]  ;;  %v6436_v32 = vld [vmem:[%s6125_s25 + $0xf0] sm:$0xff] }
  0x94   : > { %1319 = vmatprep.subr.mxu0 %v4695_v31  ;;  %1725 = vmatpush1.msra.mxu1 %v4820_v38  ;;  %v4806_v31 = vld [vmem:[%s9631_s1 + $0x650] sm:$0xff]  ;;  %v4736_v38 = vld [vmem:[%s9631_s1 + $0x5e0] sm:$0xff] }
  0x95   : > { %814 = vmatmul.mubr.f32.gmra.mxu0 %v6238_v33  ;;  %1047 = vmatmul.mubr.f32.gmra.mxu1 %v6215_v27 }
  0x96   : > { %1320 = vmatpush1.msra.mxu0 %v4694_v34  ;;  %819 = vmatprep.mubr.f32.mxu0 %v6244_v35  ;;  %v6439_v34 = vld [vmem:[%s6125_s25 + $0x108] sm:$0xff] }
  0x97   : > { %1052 = vmatprep.mubr.f32.mxu1 %v6219_v28  ;;  %1321 = vmatprep.subr.mxu0 %v4693_v36  ;;  %v4737_v36 = vld [vmem:[%s9631_s1 + $0x5e8] sm:$0xff] }
  0x98   : > { %1322 = vmatpush1.msra.mxu0 %v4692_v37  ;;  %1726 = vmatprep.subr.mxu1 %v4819_v42  ;;  %v4805_v37 = vld [vmem:[%s9631_s1 + $0x648] sm:$0xff]  ;;  %v6458_v42 = vld [vmem:[%s6125_s25 + $0x100] sm:$0xff] }
  0x99   : > { %820 = vmatmul.mubr.f32.gmra.mxu0 %v6259_v39  ;;  %1053 = vmatmul.mubr.f32.gmra.mxu1 %v6238_v33 }
  0x9a   : > { %825 = vmatprep.mubr.f32.mxu0 %v6263_v40  ;;  %1058 = vmatprep.mubr.f32.mxu1 %v6244_v35 }
  0x9b   : > { %1323 = vmatprep.subr.mxu0 %v4691_v41  ;;  %1727 = vmatpush1.msra.mxu1 %v4818_v44  ;;  %v4804_v41 = vld [vmem:[%s9631_s1 + $0x640] sm:$0xff]  ;;  %v4735_v44 = vld [vmem:[%s9631_s1 + $0x5d8] sm:$0xff] }
  0x9c   : > { %1324 = vmatpush1.msra.mxu0 %v4690_v43  ;;  %1728 = vmatprep.subr.mxu1 %v4817_v48  ;;  %v6461_v43 = vld [vmem:[%s6125_s25 + $0x118] sm:$0xff]  ;;  %v4734_v48 = vld [vmem:[%s9631_s1 + $0x5d0] sm:$0xff] }
  0x9d   : > { %826 = vmatmul.mubr.f32.gmra.mxu0 %v6282_v45  ;;  %1059 = vmatmul.mubr.f32.gmra.mxu1 %v6259_v39 }
  0x9e   : > { %831 = vmatprep.mubr.f32.mxu0 %v6285_v46  ;;  %1064 = vmatprep.mubr.f32.mxu1 %v6263_v40 }
  0x9f   : > { %1325 = vmatprep.subr.mxu0 %v4689_v47  ;;  %1729 = vmatpush1.msra.mxu1 %v4816_v50  ;;  %v4803_v47 = vld [vmem:[%s9631_s1 + $0x638] sm:$0xff]  ;;  %v6480_v50 = vld [vmem:[%s6125_s25 + $0x110] sm:$0xff] }
  0xa0   : > { %1326 = vmatpush1.msra.mxu0 %v4688_v49  ;;  %1730 = vmatprep.subr.mxu1 %v4815_v54  ;;  %v4802_v49 = vld [vmem:[%s9631_s1 + $0x630] sm:$0xff]  ;;  %v4733_v54 = vld [vmem:[%s9631_s1 + $0x5c8] sm:$0xff] }
  0xa1   : > { %832 = vmatmul.mubr.f32.gmra.mxu0 %v6304_v51  ;;  %1065 = vmatmul.mubr.f32.gmra.mxu1 %v6282_v45 }
  0xa2   : > { %837 = vmatprep.mubr.f32.mxu0 %v6307_v52  ;;  %1070 = vmatprep.mubr.f32.mxu1 %v6285_v46 }
  0xa3   : > { %1327 = vmatprep.subr.mxu0 %v4687_v53  ;;  %1731 = vmatpush1.msra.mxu1 %v4814_v56  ;;  %v6483_v53 = vld [vmem:[%s6125_s25 + $0x128] sm:$0xff]  ;;  %v4732_v56 = vld [vmem:[%s9631_s1 + $0x5c0] sm:$0xff] }
  0xa4   : > { %1328 = vmatpush1.msra.mxu0 %v4686_v55  ;;  %1732 = vmatprep.subr.mxu1 %v4813_v60  ;;  %v4801_v55 = vld [vmem:[%s9631_s1 + $0x628] sm:$0xff]  ;;  %v6502_v60 = vld [vmem:[%s6125_s25 + $0x120] sm:$0xff] }
  0xa5   : > { %838 = vmatmul.mubr.f32.gmra.mxu0 %v6326_v57  ;;  %1071 = vmatmul.mubr.f32.gmra.mxu1 %v6304_v51 }
  0xa6   : > { %843 = vmatprep.mubr.f32.mxu0 %v6329_v58  ;;  %1076 = vmatprep.mubr.f32.mxu1 %v6307_v52 }
  0xa7   : > { %1329 = vmatprep.subr.mxu0 %v4685_v59  ;;  %1733 = vmatpush1.msra.mxu1 %v4812_v62  ;;  %v4800_v59 = vld [vmem:[%s9631_s1 + $0x620] sm:$0xff]  ;;  %v6508_v62 = vld [vmem:[%s6125_s25 + $0x138] sm:$0xff] }
  0xa8   : > { %1330 = vmatpush1.msra.mxu0 %v4684_v61  ;;  %1734 = vmatprep.subr.mxu1 %v4811_v4  ;;  %v4731_v61 = vld [vmem:[%s9631_s1 + $0x5b8] sm:$0xff]  ;;  %v6523_v4 = vld [vmem:[%s6125_s25 + $0x130] sm:$0xff] }
  0xa9   : > { %844 = vmatmul.mubr.f32.gmra.mxu0 %v6348_v63  ;;  %1077 = vmatmul.mubr.f32.gmra.mxu1 %v6326_v57 }
  0xaa   : > { %1331 = vmatprep.subr.mxu0 %v4683_v0  ;;  %849 = vmatprep.mubr.f32.mxu0 %v6354_v1  ;;  %v4730_v0 = vld [vmem:[%s9631_s1 + $0x5b0] sm:$0xff] }
  0xab   : > { %1082 = vmatprep.mubr.f32.mxu1 %v6329_v58  ;;  %1332 = vmatpush1.msra.mxu0 %v4682_v2  ;;  %v4729_v2 = vld [vmem:[%s9631_s1 + $0x5a8] sm:$0xff] }
  0xac   : > { %1333 = vmatprep.subr.mxu0 %v4681_v3  ;;  %1735 = vmatpush1.msra.mxu1 %v4810_v10  ;;  %v4799_v3 = vld [vmem:[%s9631_s1 + $0x618] sm:$0xff]  ;;  %v4728_v10 = vld [vmem:[%s9631_s1 + $0x5a0] sm:$0xff] }
  0xad   : > { %850 = vmatmul.mubr.f32.gmra.mxu0 %v6369_v6  ;;  %1083 = vmatmul.mubr.f32.gmra.mxu1 %v6348_v63 }
  0xae   : > { %855 = vmatprep.mubr.f32.mxu0 %v6373_v7  ;;  %1088 = vmatprep.mubr.f32.mxu1 %v6354_v1 }
  0xaf   : > { %1334 = vmatpush1.msra.mxu0 %v4680_v8  ;;  %1736 = vmatprep.subr.mxu1 %v4809_v13  ;;  %v6527_v8 = vld [vmem:[%s6125_s25 + $0x148] sm:$0xff]  ;;  %v4727_v13 = vld [vmem:[%s9631_s1 + $0x598] sm:$0xff] }
  0xb0   : > { %1335 = vmatprep.subr.mxu0 %v4679_v12  ;;  %1737 = vmatpush1.msra.mxu1 %v4808_v22  ;;  %v4798_v12 = vld [vmem:[%s9631_s1 + $0x610] sm:$0xff]  ;;  %v6552_v22 = vld [vmem:[%s6125_s25 + $0x158] sm:$0xff] }
  0xb1   : > { %856 = vmatmul.mubr.f32.gmra.mxu0 %v6392_v14  ;;  %1089 = vmatmul.mubr.f32.gmra.mxu1 %v6369_v6 }
  0xb2   : > { %1336 = vmatpush1.msra.mxu0 %v4678_v17  ;;  %861 = vmatprep.mubr.f32.mxu0 %v6398_v18  ;;  %v4797_v17 = vld [vmem:[%s9631_s1 + $0x608] sm:$0xff] }
  0xb3   : > { %1094 = vmatprep.mubr.f32.mxu1 %v6373_v7  ;;  %1337 = vmatprep.subr.mxu0 %v4677_v19  ;;  %v6546_v19 = vld [vmem:[%s6125_s25 + $0x140] sm:$0xff] }
  0xb4   : > { %1338 = vmatpush1.msra.mxu0 %v4676_v20  ;;  %1738 = vmatprep.subr.mxu1 %v4807_v29  ;;  %v4726_v20 = vld [vmem:[%s9631_s1 + $0x590] sm:$0xff]  ;;  %v4796_v29 = vld [vmem:[%s9631_s1 + $0x600] sm:$0xff] }
  0xb5   : > { %862 = vmatmul.mubr.f32.gmra.mxu0 %v6413_v24  ;;  %1095 = vmatmul.mubr.f32.gmra.mxu1 %v6392_v14 }
  0xb6   : > { %867 = vmatprep.mubr.f32.mxu0 %v6417_v25  ;;  %1100 = vmatprep.mubr.f32.mxu1 %v6398_v18 }
  0xb7   : > { %1339 = vmatprep.subr.mxu0 %v4739_v26  ;;  %1739 = vmatpush1.msra.mxu1 %v4806_v31  ;;  %v4725_v26 = vld [vmem:[%s9631_s1 + $0x588] sm:$0xff]  ;;  %v6567_v31 = vld [vmem:[%s6125_s25 + $0x150] sm:$0xff] }
  0xb8   : > { %1340 = vmatpush2.msra.mxu0 %v4738_v30  ;;  %1740 = vmatprep.subr.mxu1 %v4805_v37  ;;  %v4724_v30 = vld [vmem:[%s9631_s1 + $0x580] sm:$0xff]  ;;  %v6574_v37 = vld [vmem:[%s6125_s25 + $0x168] sm:$0xff] }
  0xb9   : > { %868 = vmatmul.mubr.f32.gmra.mxu0 %v6436_v32  ;;  %1101 = vmatmul.mubr.f32.gmra.mxu1 %v6413_v24 }
  0xba   : > { %873 = vmatprep.mubr.f32.mxu0 %v6439_v34  ;;  %1106 = vmatprep.mubr.f32.mxu1 %v6417_v25 }
  0xbb   : > { %1341 = vmatprep.subr.mxu0 %v4737_v36  ;;  %1741 = vmatpush1.msra.mxu1 %v4804_v41  ;;  %v4859_v36 = vld [vmem:[%s9631_s1 + $0x7f8] sm:$0xff] }
  0xbc   : > { %1342 = vmatpush2.msra.mxu0 %v4736_v38  ;;  %1742 = vmatprep.subr.mxu1 %v4803_v47  ;;  %v4858_v38 = vld [vmem:[%s9631_s1 + $0x7f0] sm:$0xff]  ;;  %v4723_v41 = vld [vmem:[%s9631_s1 + $0x578] sm:$0xff]  ;;  %v6589_v47 = vld [vmem:[%s6125_s25 + $0x160] sm:$0xff] }
  0xbd   : > { %874 = vmatmul.mubr.f32.gmra.mxu0 %v6458_v42  ;;  %1107 = vmatmul.mubr.f32.gmra.mxu1 %v6436_v32 }
  0xbe   : > { %879 = vmatprep.mubr.f32.mxu0 %v6461_v43  ;;  %1112 = vmatprep.mubr.f32.mxu1 %v6439_v34 }
  0xbf   : > { %1343 = vmatprep.subr.mxu0 %v4735_v44  ;;  %1743 = vmatpush1.msra.mxu1 %v4802_v49  ;;  %v4857_v44 = vld [vmem:[%s9631_s1 + $0x7e8] sm:$0xff]  ;;  %v4856_v49 = vld [vmem:[%s9631_s1 + $0x7e0] sm:$0xff] }
  0xc0   : > { %1344 = vmatpush2.msra.mxu0 %v4734_v48  ;;  %1744 = vmatprep.subr.mxu1 %v4801_v55  ;;  %v4722_v48 = vld [vmem:[%s9631_s1 + $0x570] sm:$0xff]  ;;  %v6602_v55 = vld [vmem:[%s6125_s25 + $0x178] sm:$0xff] }
  0xc1   : > { %880 = vmatmul.mubr.f32.gmra.mxu0 %v6480_v50  ;;  %1113 = vmatmul.mubr.f32.gmra.mxu1 %v6458_v42 }
  0xc2   : > { %885 = vmatprep.mubr.f32.mxu0 %v6483_v53  ;;  %1118 = vmatprep.mubr.f32.mxu1 %v6461_v43 }
  0xc3   : > { %1345 = vmatprep.subr.mxu0 %v4733_v54  ;;  %1745 = vmatpush1.msra.mxu1 %v4800_v59  ;;  %v4855_v54 = vld [vmem:[%s9631_s1 + $0x7d8] sm:$0xff]  ;;  %v6610_v59 = vld [vmem:[%s6125_s25 + $0x170] sm:$0xff] }
  0xc4   : > { %1346 = vmatpush2.msra.mxu0 %v4732_v56  ;;  %1746 = vmatprep.subr.mxu1 %v4799_v3  ;;  %v4854_v56 = vld [vmem:[%s9631_s1 + $0x7d0] sm:$0xff]  ;;  %v4852_v3 = vld [vmem:[%s9631_s1 + $0x7c0] sm:$0xff] }
  0xc5   : > { %886 = vmatmul.mubr.f32.gmra.mxu0 %v6502_v60  ;;  %1119 = vmatmul.mubr.f32.gmra.mxu1 %v6480_v50 }
  0xc6   : > { %1347 = vmatprep.subr.mxu0 %v4731_v61  ;;  %891 = vmatprep.mubr.f32.mxu0 %v6508_v62  ;;  %v4721_v61 = vld [vmem:[%s9631_s1 + $0x568] sm:$0xff] }
  0xc7   : > { %1124 = vmatprep.mubr.f32.mxu1 %v6483_v53  ;;  %1348 = vmatpush2.msra.mxu0 %v4730_v0  ;;  %v4853_v0 = vld [vmem:[%s9631_s1 + $0x7c8] sm:$0xff] }
  0xc8   : > { %1349 = vmatprep.subr.mxu0 %v4729_v2  ;;  %1747 = vmatpush1.msra.mxu1 %v4798_v12  ;;  %v4720_v2 = vld [vmem:[%s9631_s1 + $0x560] sm:$0xff]  ;;  %v6632_v12 = vld [vmem:[%s6125_s25 + $0x188] sm:$0xff] }
  0xc9   : > { %892 = vmatmul.mubr.f32.gmra.mxu0 %v6523_v4  ;;  %1125 = vmatmul.mubr.f32.gmra.mxu1 %v6502_v60 }
  0xca   : > { %897 = vmatprep.mubr.f32.mxu0 %v6527_v8  ;;  %1130 = vmatprep.mubr.f32.mxu1 %v6508_v62 }
  0xcb   : > { %1350 = vmatpush2.msra.mxu0 %v4728_v10  ;;  %1748 = vmatprep.subr.mxu1 %v4797_v17  ;;  %v4851_v10 = vld [vmem:[%s9631_s1 + $0x7b8] sm:$0xff]  ;;  %v4850_v17 = vld [vmem:[%s9631_s1 + $0x7b0] sm:$0xff] }
  0xcc   : > { %1351 = vmatprep.subr.mxu0 %v4727_v13  ;;  %1749 = vmatpush1.msra.mxu1 %v4796_v29  ;;  %v4719_v13 = vld [vmem:[%s9631_s1 + $0x558] sm:$0xff]  ;;  %v4849_v29 = vld [vmem:[%s9631_s1 + $0x7a8] sm:$0xff] }
  0xcd   : > { %898 = vmatmul.mubr.f32.gmra.mxu0 %v6546_v19  ;;  %1131 = vmatmul.mubr.f32.gmra.mxu1 %v6523_v4 }
  0xce   : > { %1352 = vmatpush2.msra.mxu0 %v4726_v20  ;;  %903 = vmatprep.mubr.f32.mxu0 %v6552_v22  ;;  %v6641_v20 = vld [vmem:[%s6125_s25 + $0x180] sm:$0xff] }
  0xcf   : > { %1136 = vmatprep.mubr.f32.mxu1 %v6527_v8  ;;  %1353 = vmatprep.subr.mxu0 %v4725_v26  ;;  %v4718_v26 = vld [vmem:[%s9631_s1 + $0x550] sm:$0xff] }
  0xd0   : > { %1354 = vmatpush2.msra.mxu0 %v4724_v30  ;;  %1750 = vmatprep.subr.mxu1 %v4859_v36  ;;  %v6652_v30 = vld [vmem:[%s6125_s25 + $0x198] sm:$0xff]  ;;  %v4848_v36 = vld [vmem:[%s9631_s1 + $0x7a0] sm:$0xff] }
  0xd1   : > { %904 = vmatmul.mubr.f32.gmra.mxu0 %v6567_v31  ;;  %1137 = vmatmul.mubr.f32.gmra.mxu1 %v6546_v19 }
  0xd2   : > { %909 = vmatprep.mubr.f32.mxu0 %v6574_v37  ;;  %1142 = vmatprep.mubr.f32.mxu1 %v6552_v22 }
  0xd3   : > { %1751 = vmatpush2.msra.mxu1 %v4858_v38  ;;  %1355 = vmatprep.subr.mxu0 %v4723_v41  ;;  %v4847_v38 = vld [vmem:[%s9631_s1 + $0x798] sm:$0xff]  ;;  %v4717_v41 = vld [vmem:[%s9631_s1 + $0x548] sm:$0xff] }
  0xd4   : > { %1752 = vmatprep.subr.mxu1 %v4857_v44  ;;  %1356 = vmatpush2.msra.mxu0 %v4722_v48  ;;  %v4846_v44 = vld [vmem:[%s9631_s1 + $0x790] sm:$0xff] }
  0xd5   : > { %910 = vmatmul.mubr.f32.gmra.mxu0 %v6589_v47  ;;  %1143 = vmatmul.mubr.f32.gmra.mxu1 %v6567_v31  ;;  %v6670_v48 = vld [vmem:[%s6125_s25 + $0x190] sm:$0xff] }
  0xd6   : > { %1753 = vmatpush2.msra.mxu1 %v4856_v49  ;;  %915 = vmatprep.mubr.f32.mxu0 %v6602_v55  ;;  %v4716_v49 = vld [vmem:[%s9631_s1 + $0x540] sm:$0xff] }
  0xd7   : > { %1754 = vmatprep.subr.mxu1 %v4855_v54  ;;  %1148 = vmatprep.mubr.f32.mxu1 %v6574_v37  ;;  %v4845_v54 = vld [vmem:[%s9631_s1 + $0x788] sm:$0xff] }
  0xd8   : > { %1755 = vmatpush2.msra.mxu1 %v4854_v56  ;;  %1357 = vmatprep.subr.mxu0 %v4721_v61  ;;  %v4715_v56 = vld [vmem:[%s9631_s1 + $0x538] sm:$0xff]  ;;  %v4844_v61 = vld [vmem:[%s9631_s1 + $0x780] sm:$0xff] }
  0xd9   : > { %916 = vmatmul.mubr.f32.gmra.mxu0 %v6610_v59  ;;  %1149 = vmatmul.mubr.f32.gmra.mxu1 %v6589_v47 }
  0xda   : > { %1756 = vmatprep.subr.mxu1 %v4853_v0  ;;  %1358 = vmatpush2.msra.mxu0 %v4720_v2  ;;  %v6687_v0 = vld [vmem:[%s6125_s25 + $0x1a8] sm:$0xff]  ;;  %v4843_v2 = vld [vmem:[%s9631_s1 + $0x778] sm:$0xff] }
  0xdb   : > { %1757 = vmatpush2.msra.mxu1 %v4852_v3  ;;  %921 = vmatprep.mubr.f32.mxu0 %v6632_v12  ;;  %v4714_v3 = vld [vmem:[%s9631_s1 + $0x530] sm:$0xff] }
  0xdc   : > { %1758 = vmatprep.subr.mxu1 %v4851_v10  ;;  %1154 = vmatprep.mubr.f32.mxu1 %v6602_v55  ;;  %v4842_v10 = vld [vmem:[%s9631_s1 + $0x770] sm:$0xff] }
  0xdd   : > { %1359 = vmatprep.subr.mxu0 %v4719_v13  ;;  %1759 = vmatpush2.msra.mxu1 %v4850_v17  ;;  %v6701_v13 = vld [vmem:[%s6125_s25 + $0x1a0] sm:$0xff]  ;;  %v4841_v17 = vld [vmem:[%s9631_s1 + $0x768] sm:$0xff] }
  0xde   : > { %922 = vmatmul.mubr.f32.gmra.mxu0 %v6641_v20  ;;  %1155 = vmatmul.mubr.f32.gmra.mxu1 %v6610_v59 }
  0xdf   : > { %1360 = vmatpush2.msra.mxu0 %v4718_v26  ;;  %1760 = vmatprep.subr.mxu1 %v4849_v29  ;;  %v4713_v26 = vld [vmem:[%s9631_s1 + $0x528] sm:$0xff]  ;;  %v4840_v29 = vld [vmem:[%s9631_s1 + $0x760] sm:$0xff] }
  0xe0   : > { %927 = vmatprep.mubr.f32.mxu0 %v6652_v30  ;;  %1761 = vmatpush2.msra.mxu1 %v4848_v36  ;;  %v6714_v36 = vld [vmem:[%s6125_s25 + $0x1b8] sm:$0xff] }
  0xe1   : > { %1160 = vmatprep.mubr.f32.mxu1 %v6632_v12  ;;  %1762 = vmatprep.subr.mxu1 %v4847_v38  ;;  %v4839_v38 = vld [vmem:[%s9631_s1 + $0x758] sm:$0xff] }
  0xe2   : > { %1361 = vmatprep.subr.mxu0 %v4717_v41  ;;  %1763 = vmatpush2.msra.mxu1 %v4846_v44  ;;  %v4712_v41 = vld [vmem:[%s9631_s1 + $0x520] sm:$0xff]  ;;  %v4838_v44 = vld [vmem:[%s9631_s1 + $0x750] sm:$0xff] }
  0xe3   : > { %928 = vmatmul.mubr.f32.gmra.mxu0 %v6670_v48  ;;  %1161 = vmatmul.mubr.f32.gmra.mxu1 %v6641_v20 }
  0xe4   : > { %1362 = vmatpush2.msra.mxu0 %v4716_v49  ;;  %1764 = vmatprep.subr.mxu1 %v4845_v54  ;;  %v6729_v49 = vld [vmem:[%s6125_s25 + $0x1b0] sm:$0xff]  ;;  %v4837_v54 = vld [vmem:[%s9631_s1 + $0x748] sm:$0xff] }
  0xe5   : > { %1363 = vmatprep.subr.mxu0 %v4715_v56  ;;  %1765 = vmatpush2.msra.mxu1 %v4844_v61  ;;  %v4711_v56 = vld [vmem:[%s9631_s1 + $0x518] sm:$0xff]  ;;  %v4836_v61 = vld [vmem:[%s9631_s1 + $0x740] sm:$0xff] }
  0xe6   : > { %933 = vmatprep.mubr.f32.mxu0 %v6687_v0  ;;  %1766 = vmatprep.subr.mxu1 %v4843_v2  ;;  %v4710_v2 = vld [vmem:[%s9631_s1 + $0x510] sm:$0xff] }
  0xe7   : > { %1166 = vmatprep.mubr.f32.mxu1 %v6652_v30  ;;  %1364 = vmatpush2.msra.mxu0 %v4714_v3  ;;  %v4835_v3 = vld [vmem:[%s9631_s1 + $0x738] sm:$0xff] }
  0xe8   : > { %1767 = vmatpush2.msra.mxu1 %v4842_v10  ;;  %934 = vmatmul.mubr.f32.gmra.mxu0 %v6701_v13  ;;  %v6750_v10 = vld [vmem:[%s6125_s25 + $0x1c8] sm:$0xff] }
  0xe9   : > { %1167 = vmatmul.mubr.f32.gmra.mxu1 %v6670_v48  ;;  %1768 = vmatprep.subr.mxu1 %v4841_v17  ;;  %v4834_v17 = vld [vmem:[%s9631_s1 + $0x730] sm:$0xff] }
  0xea   : > { %1365 = vmatprep.subr.mxu0 %v4713_v26  ;;  %1769 = vmatpush2.msra.mxu1 %v4840_v29  ;;  %v6756_v26 = vld [vmem:[%s6125_s25 + $0x1c0] sm:$0xff]  ;;  %v4833_v29 = vld [vmem:[%s9631_s1 + $0x728] sm:$0xff] }
  0xeb   : > { %939 = vmatprep.mubr.f32.mxu0 %v6714_v36  ;;  %1770 = vmatprep.subr.mxu1 %v4839_v38  ;;  %v4709_v38 = vld [vmem:[%s9631_s1 + $0x508] sm:$0xff] }
  0xec   : > { %1172 = vmatprep.mubr.f32.mxu1 %v6687_v0  ;;  %1366 = vmatpush2.msra.mxu0 %v4712_v41  ;;  %v4832_v41 = vld [vmem:[%s9631_s1 + $0x720] sm:$0xff] }
  0xed   : > { %1771 = vmatpush2.msra.mxu1 %v4838_v44  ;;  %940 = vmatmul.mubr.f32.gmra.mxu0 %v6729_v49  ;;  %v4708_v44 = vld [vmem:[%s9631_s1 + $0x500] sm:$0xff] }
  0xee   : > { %1173 = vmatmul.mubr.f32.gmra.mxu1 %v6701_v13  ;;  %1772 = vmatprep.subr.mxu1 %v4837_v54  ;;  %v4831_v54 = vld [vmem:[%s9631_s1 + $0x718] sm:$0xff] }
  0xef   : > { %1367 = vmatprep.subr.mxu0 %v4711_v56  ;;  %1773 = vmatpush2.msra.mxu1 %v4836_v61  ;;  %v4830_v56 = vld [vmem:[%s9631_s1 + $0x710] sm:$0xff]  ;;  %v4829_v61 = vld [vmem:[%s9631_s1 + $0x708] sm:$0xff] }
  0xf0   : > { %1368 = vmatpush2.msra.mxu0 %v4710_v2  ;;  %1774 = vmatprep.subr.mxu1 %v4835_v3  ;;  %v4947_v2 = vld [vmem:[%s9631_s1 + $0x8f8] sm:$0xff]  ;;  %v4828_v3 = vld [vmem:[%s9631_s1 + $0x700] sm:$0xff] }
  0xf1   : > { %945 = vmatprep.mubr.f32.mxu0 %v6750_v10  ;;  %1178 = vmatprep.mubr.f32.mxu1 %v6714_v36 }
  0xf2   : > { %1775 = vmatpush2.msra.mxu1 %v4834_v17  ;;  %946 = vmatmul.mubr.f32.gmra.mxu0 %v6756_v26  ;;  %v4946_v17 = vld [vmem:[%s9631_s1 + $0x8f0] sm:$0xff] }
  0xf3   : > { %1179 = vmatmul.mubr.f32.gmra.mxu1 %v6729_v49  ;;  %1776 = vmatprep.subr.mxu1 %v4833_v29  ;;  %v4945_v29 = vld [vmem:[%s9631_s1 + $0x8e8] sm:$0xff] }
  0xf4   : > { %1369 = vmatprep.subr.mxu0 %v4709_v38  ;;  %1777 = vmatpush2.msra.mxu1 %v4832_v41  ;;  %v4942_v38 = vld [vmem:[%s9631_s1 + $0x8d0] sm:$0xff]  ;;  %v4939_v41 = vld [vmem:[%s9631_s1 + $0x8b8] sm:$0xff] }
  0xf5   : > { %1370 = vmatpush2.msra.mxu0 %v4708_v44  ;;  %1778 = vmatprep.subr.mxu1 %v4831_v54  ;;  %v4937_v44 = vld [vmem:[%s9631_s1 + $0x8a8] sm:$0xff]  ;;  %v4936_v54 = vld [vmem:[%s9631_s1 + $0x8a0] sm:$0xff] }
  0xf6   : > { %1371 = vmatprep.mubr.f32.mxu0 %v6138_v5  ;;  %1779 = vmatpush2.msra.mxu1 %v4830_v56  ;;  %v4944_v5 = vld [vmem:[%s9631_s1 + $0x8e0] sm:$0xff]  ;;  %v4933_v56 = vld [vmem:[%s9631_s1 + $0x888] sm:$0xff] }
  0xf7   : > { %1372 = vmatmul.mubr.f32.vlgmr.msra.gmra.mxu0 %v6151_v9  ;;  %1780 = vmatprep.subr.mxu1 %v4829_v61  ;;  %v4943_v9 = vld [vmem:[%s9631_s1 + $0x8d8] sm:$0xff]  ;;  %v4932_v61 = vld [vmem:[%s9631_s1 + $0x880] sm:$0xff] }
  0xf8   : > { %2129 = vmatprep.subr.mxu0 %v4947_v2  ;;  %1781 = vmatpush2.msra.mxu1 %v4828_v3  ;;  %v4929_v2 = vld [vmem:[%s9631_s1 + $0x868] sm:$0xff]  ;;  %v4928_v3 = vld [vmem:[%s9631_s1 + $0x860] sm:$0xff] }
  0xf9   : > { %1782 = vmatprep.mubr.f32.mxu1 %v6157_v11  ;;  %2130 = vmatpush1.msra.mxu0 %v4946_v17  ;;  %v4925_v17 = vld [vmem:[%s9631_s1 + $0x848] sm:$0xff] }
  0xfa   : > { %1783 = vmatmul.mubr.f32.vlgmr.msra.gmra.mxu1 %v6171_v15  ;;  %1377 = vmatprep.mubr.f32.mxu0 %v6157_v11  ;;  %v4941_v11 = vld [vmem:[%s9631_s1 + $0x8c8] sm:$0xff] }
  0xfb   : > { %2131 = vmatprep.subr.mxu0 %v4945_v29  ;;  %1378 = vmatmul.mubr.f32.gmra.mxu0 %v6171_v15  ;;  %v4940_v15 = vld [vmem:[%s9631_s1 + $0x8c0] sm:$0xff] }
  0xfc   : > { %1788 = vmatprep.mubr.f32.mxu1 %v6175_v16  ;;  %2132 = vmatpush1.msra.mxu0 %v4944_v5  ;;  %v4924_v29 = vld [vmem:[%s9631_s1 + $0x840] sm:$0xff]  ;;  %v4921_v5 = vld [vmem:[%s9631_s1 + $0x828] sm:$0xff] }
  0xfd   : > { %1383 = vmatprep.mubr.f32.mxu0 %v6175_v16  ;;  %2133 = vmatprep.subr.mxu0 %v4943_v9  ;;  %v4938_v16 = vld [vmem:[%s9631_s1 + $0x8b0] sm:$0xff]  ;;  %v4920_v9 = vld [vmem:[%s9631_s1 + $0x820] sm:$0xff] }
  0xfe   : > { %1789 = vmatmul.mubr.f32.gmra.mxu1 %v6194_v21  ;;  %2134 = vmatpush1.msra.mxu0 %v4942_v38  ;;  %v4917_v38 = vld [vmem:[%s9631_s1 + $0x808] sm:$0xff] }
  0xff   : > { %1794 = vmatprep.mubr.f32.mxu1 %v6200_v23  ;;  %1384 = vmatmul.mubr.f32.gmra.mxu0 %v6194_v21  ;;  %v4935_v21 = vld [vmem:[%s9631_s1 + $0x898] sm:$0xff] }
 0x100   : > { %2135 = vmatprep.subr.mxu0 %v4941_v11  ;;  %1389 = vmatprep.mubr.f32.mxu0 %v6200_v23  ;;  %v4934_v23 = vld [vmem:[%s9631_s1 + $0x890] sm:$0xff]  ;;  %v4916_v11 = vld [vmem:[%s9631_s1 + $0x800] sm:$0xff] }
 0x101   : > { %2136 = vmatpush1.msra.mxu0 %v4940_v15  ;;  %v4977_v15 = vld [vmem:[%s9631_s1 + $0x9e8] sm:$0xff] }
 0x102   : > { %1795 = vmatmul.mubr.f32.gmra.mxu1 %v6215_v27  ;;  %2137 = vmatprep.subr.mxu0 %v4939_v41  ;;  %v4976_v41 = vld [vmem:[%s9631_s1 + $0x9e0] sm:$0xff] }
 0x103   : > { %1800 = vmatprep.mubr.f32.mxu1 %v6219_v28  ;;  %2138 = vmatpush1.msra.mxu0 %v4938_v16  ;;  %v4973_v16 = vld [vmem:[%s9631_s1 + $0x9c8] sm:$0xff] }
 0x104   : > { %1390 = vmatmul.mubr.f32.gmra.mxu0 %v6215_v27  ;;  %2139 = vmatprep.subr.mxu0 %v4937_v44  ;;  %v4931_v27 = vld [vmem:[%s9631_s1 + $0x878] sm:$0xff]  ;;  %v4972_v44 = vld [vmem:[%s9631_s1 + $0x9c0] sm:$0xff] }
 0x105   : > { %1395 = vmatprep.mubr.f32.mxu0 %v6219_v28  ;;  %2140 = vmatpush1.msra.mxu0 %v4936_v54  ;;  %v4930_v28 = vld [vmem:[%s9631_s1 + $0x870] sm:$0xff]  ;;  %v4969_v54 = vld [vmem:[%s9631_s1 + $0x9a8] sm:$0xff] }
 0x106   : > { %1801 = vmatmul.mubr.f32.gmra.mxu1 %v6238_v33  ;;  %2141 = vmatprep.subr.mxu0 %v4935_v21  ;;  %v4968_v21 = vld [vmem:[%s9631_s1 + $0x9a0] sm:$0xff] }
 0x107   : > { %1806 = vmatprep.mubr.f32.mxu1 %v6244_v35  ;;  %2142 = vmatpush1.msra.mxu0 %v4934_v23  ;;  %v4965_v23 = vld [vmem:[%s9631_s1 + $0x988] sm:$0xff] }
 0x108   : > { %1396 = vmatmul.mubr.f32.gmra.mxu0 %v6238_v33  ;;  %2143 = vmatprep.subr.mxu0 %v4933_v56  ;;  %v4927_v33 = vld [vmem:[%s9631_s1 + $0x858] sm:$0xff]  ;;  %v4964_v56 = vld [vmem:[%s9631_s1 + $0x980] sm:$0xff] }
 0x109   : > { %1401 = vmatprep.mubr.f32.mxu0 %v6244_v35  ;;  %2144 = vmatpush1.msra.mxu0 %v4932_v61  ;;  %v4926_v35 = vld [vmem:[%s9631_s1 + $0x850] sm:$0xff]  ;;  %v4961_v61 = vld [vmem:[%s9631_s1 + $0x968] sm:$0xff] }
 0x10a   : > { %1807 = vmatmul.mubr.f32.gmra.mxu1 %v6259_v39  ;;  %2145 = vmatprep.subr.mxu0 %v4931_v27  ;;  %v4960_v27 = vld [vmem:[%s9631_s1 + $0x960] sm:$0xff] }
 0x10b   : > { %1812 = vmatprep.mubr.f32.mxu1 %v6263_v40  ;;  %2146 = vmatpush1.msra.mxu0 %v4930_v28  ;;  %v4957_v28 = vld [vmem:[%s9631_s1 + $0x948] sm:$0xff] }
 0x10c   : > { %1402 = vmatmul.mubr.f32.gmra.mxu0 %v6259_v39  ;;  %2147 = vmatprep.subr.mxu0 %v4929_v2  ;;  %v4923_v39 = vld [vmem:[%s9631_s1 + $0x838] sm:$0xff]  ;;  %v4956_v2 = vld [vmem:[%s9631_s1 + $0x940] sm:$0xff] }
 0x10d   : > { %1407 = vmatprep.mubr.f32.mxu0 %v6263_v40  ;;  %2148 = vmatpush1.msra.mxu0 %v4928_v3  ;;  %v4922_v40 = vld [vmem:[%s9631_s1 + $0x830] sm:$0xff]  ;;  %v4953_v3 = vld [vmem:[%s9631_s1 + $0x928] sm:$0xff] }
 0x10e   : > { %1813 = vmatmul.mubr.f32.gmra.mxu1 %v6282_v45  ;;  %2149 = vmatprep.subr.mxu0 %v4927_v33  ;;  %v4952_v33 = vld [vmem:[%s9631_s1 + $0x920] sm:$0xff] }
 0x10f   : > { %1818 = vmatprep.mubr.f32.mxu1 %v6285_v46  ;;  %2150 = vmatpush1.msra.mxu0 %v4926_v35  ;;  %v4949_v35 = vld [vmem:[%s9631_s1 + $0x908] sm:$0xff] }
 0x110   : > { %1408 = vmatmul.mubr.f32.gmra.mxu0 %v6282_v45  ;;  %2151 = vmatprep.subr.mxu0 %v4925_v17  ;;  %v4919_v45 = vld [vmem:[%s9631_s1 + $0x818] sm:$0xff]  ;;  %v4948_v17 = vld [vmem:[%s9631_s1 + $0x900] sm:$0xff] }
 0x111   : > { %1413 = vmatprep.mubr.f32.mxu0 %v6285_v46  ;;  %2152 = vmatpush1.msra.mxu0 %v4924_v29  ;;  %v4918_v46 = vld [vmem:[%s9631_s1 + $0x810] sm:$0xff] }
 0x112   : > { %1819 = vmatmul.mubr.f32.gmra.mxu1 %v6304_v51  ;;  %2153 = vmatprep.subr.mxu0 %v4923_v39 }
 0x113   : > { %1824 = vmatprep.mubr.f32.mxu1 %v6307_v52  ;;  %2154 = vmatpush1.msra.mxu0 %v4922_v40 }
 0x114   : > { %1414 = vmatmul.mubr.f32.gmra.mxu0 %v6304_v51  ;;  %2155 = vmatprep.subr.mxu0 %v4921_v5  ;;  %v4979_v51 = vld [vmem:[%s9631_s1 + $0x9f8] sm:$0xff] }
 0x115   : > { %1419 = vmatprep.mubr.f32.mxu0 %v6307_v52  ;;  %2156 = vmatpush1.msra.mxu0 %v4920_v9  ;;  %v4978_v52 = vld [vmem:[%s9631_s1 + $0x9f0] sm:$0xff] }
 0x116   : > { %1825 = vmatmul.mubr.f32.gmra.mxu1 %v6326_v57  ;;  %2157 = vmatprep.subr.mxu0 %v4919_v45 }
 0x117   : > { %1830 = vmatprep.mubr.f32.mxu1 %v6329_v58  ;;  %2158 = vmatpush1.msra.mxu0 %v4918_v46 }
 0x118   : > { %1420 = vmatmul.mubr.f32.gmra.mxu0 %v6326_v57  ;;  %2159 = vmatprep.subr.mxu0 %v4917_v38  ;;  %v4975_v57 = vld [vmem:[%s9631_s1 + $0x9d8] sm:$0xff] }
 0x119   : > { %1425 = vmatprep.mubr.f32.mxu0 %v6329_v58  ;;  %2160 = vmatpush1.msra.mxu0 %v4916_v11  ;;  %v4974_v58 = vld [vmem:[%s9631_s1 + $0x9d0] sm:$0xff] }
 0x11a   : > { %1831 = vmatmul.mubr.f32.gmra.mxu1 %v6348_v63  ;;  %2161 = vmatprep.subr.mxu0 %v4979_v51 }
 0x11b   : > { %1836 = vmatprep.mubr.f32.mxu1 %v6354_v1  ;;  %2162 = vmatpush2.msra.mxu0 %v4978_v52 }
 0x11c   : > { %1426 = vmatmul.mubr.f32.gmra.mxu0 %v6348_v63  ;;  %2163 = vmatprep.subr.mxu0 %v4977_v15  ;;  %v4971_v63 = vld [vmem:[%s9631_s1 + $0x9b8] sm:$0xff] }
 0x11d   : > { %1431 = vmatprep.mubr.f32.mxu0 %v6354_v1  ;;  %2164 = vmatpush2.msra.mxu0 %v4976_v41  ;;  %v4970_v1 = vld [vmem:[%s9631_s1 + $0x9b0] sm:$0xff] }
 0x11e   : > { %1837 = vmatmul.mubr.f32.gmra.mxu1 %v6369_v6  ;;  %2165 = vmatprep.subr.mxu0 %v4975_v57 }
 0x11f   : > { %1842 = vmatprep.mubr.f32.mxu1 %v6373_v7  ;;  %2166 = vmatpush2.msra.mxu0 %v4974_v58 }
 0x120   : > { %1432 = vmatmul.mubr.f32.gmra.mxu0 %v6369_v6  ;;  %2167 = vmatprep.subr.mxu0 %v4973_v16  ;;  %v4967_v6 = vld [vmem:[%s9631_s1 + $0x998] sm:$0xff] }
 0x121   : > { %1437 = vmatprep.mubr.f32.mxu0 %v6373_v7  ;;  %2168 = vmatpush2.msra.mxu0 %v4972_v44  ;;  %v4966_v7 = vld [vmem:[%s9631_s1 + $0x990] sm:$0xff] }
 0x122   : > { %1843 = vmatmul.mubr.f32.gmra.mxu1 %v6392_v14  ;;  %2169 = vmatprep.subr.mxu0 %v4971_v63  ;;  %v7124_v63 = vld [vmem:[%s6125_s25 + $0x1d8] sm:$0xff] }
 0x123   : > { %1848 = vmatprep.mubr.f32.mxu1 %v6398_v18  ;;  %2170 = vmatpush2.msra.mxu0 %v4970_v1 }
 0x124   : > { %1438 = vmatmul.mubr.f32.gmra.mxu0 %v6392_v14  ;;  %2171 = vmatprep.subr.mxu0 %v4969_v54  ;;  %v4963_v14 = vld [vmem:[%s9631_s1 + $0x978] sm:$0xff]  ;;  %v7132_v54 = vld [vmem:[%s6125_s25 + $0x1d0] sm:$0xff] }
 0x125   : > { %1443 = vmatprep.mubr.f32.mxu0 %v6398_v18  ;;  %2172 = vmatpush2.msra.mxu0 %v4968_v21  ;;  %v4962_v18 = vld [vmem:[%s9631_s1 + $0x970] sm:$0xff] }
 0x126   : > { %1849 = vmatmul.mubr.f32.gmra.mxu1 %v6413_v24  ;;  %2173 = vmatprep.subr.mxu0 %v4967_v6  ;;  %v7140_v6 = vld [vmem:[%s6125_s25 + $0x1e8] sm:$0xff] }
 0x127   : > { %1854 = vmatprep.mubr.f32.mxu1 %v6417_v25  ;;  %2174 = vmatpush2.msra.mxu0 %v4966_v7 }
 0x128   : > { %1444 = vmatmul.mubr.f32.gmra.mxu0 %v6413_v24  ;;  %2175 = vmatprep.subr.mxu0 %v4965_v23  ;;  %v4959_v24 = vld [vmem:[%s9631_s1 + $0x958] sm:$0xff]  ;;  %v4861_v23 = vld [vmem:[%s6125_s25 + $0x48] sm:$0xff] }
 0x129   : > { %1449 = vmatprep.mubr.f32.mxu0 %v6417_v25  ;;  %2176 = vmatpush2.msra.mxu0 %v4964_v56  ;;  %v4958_v25 = vld [vmem:[%s9631_s1 + $0x950] sm:$0xff] }
 0x12a   : > { %1855 = vmatmul.mubr.f32.gmra.mxu1 %v6436_v32  ;;  %2177 = vmatprep.subr.mxu0 %v4963_v14  ;;  %v7149_v14 = vld [vmem:[%s6125_s25 + $0x1e0] sm:$0xff] }
 0x12b   : > { %1860 = vmatprep.mubr.f32.mxu1 %v6439_v34  ;;  %2178 = vmatpush2.msra.mxu0 %v4962_v18 }
 0x12c   : > { %1450 = vmatmul.mubr.f32.gmra.mxu0 %v6436_v32  ;;  %2179 = vmatprep.subr.mxu0 %v4961_v61  ;;  %v4955_v32 = vld [vmem:[%s9631_s1 + $0x938] sm:$0xff]  ;;  %v4860_v61 = vld [vmem:[%s6125_s25 + $0x40] sm:$0xff] }
 0x12d   : > { %1455 = vmatprep.mubr.f32.mxu0 %v6439_v34  ;;  %2180 = vmatpush2.msra.mxu0 %v4960_v27  ;;  %v4954_v34 = vld [vmem:[%s9631_s1 + $0x930] sm:$0xff] }
 0x12e   : > { %1861 = vmatmul.mubr.f32.gmra.mxu1 %v6458_v42  ;;  %2181 = vmatprep.subr.mxu0 %v4959_v24 }
 0x12f   : > { %1866 = vmatprep.mubr.f32.mxu1 %v6461_v43  ;;  %2182 = vmatpush2.msra.mxu0 %v4958_v25  ;;  %v4863_v25 = vld [vmem:[%s6125_s25 + $0x58] sm:$0xff] }
 0x130   : > { %1456 = vmatmul.mubr.f32.gmra.mxu0 %v6458_v42  ;;  %2183 = vmatprep.subr.mxu0 %v4957_v28  ;;  %v4951_v42 = vld [vmem:[%s9631_s1 + $0x918] sm:$0xff] }
 0x131   : > { %1461 = vmatprep.mubr.f32.mxu0 %v6461_v43  ;;  %2184 = vmatpush2.msra.mxu0 %v4956_v2  ;;  %v4950_v43 = vld [vmem:[%s9631_s1 + $0x910] sm:$0xff] }
 0x132   : > { %1867 = vmatmul.mubr.f32.gmra.mxu1 %v6480_v50  ;;  %2185 = vmatprep.subr.mxu0 %v4955_v32 }
 0x133   : > { %1872 = vmatprep.mubr.f32.mxu1 %v6483_v53  ;;  %2186 = vmatpush2.msra.mxu0 %v4954_v34  ;;  %v4862_v34 = vld [vmem:[%s6125_s25 + $0x50] sm:$0xff] }
 0x134   : > { %1462 = vmatmul.mubr.f32.gmra.mxu0 %v6480_v50  ;;  %2187 = vmatprep.subr.mxu0 %v4953_v3 }
 0x135   : > { %1467 = vmatprep.mubr.f32.mxu0 %v6483_v53  ;;  %2188 = vmatpush2.msra.mxu0 %v4952_v33 }
 0x136   : > { %1873 = vmatmul.mubr.f32.gmra.mxu1 %v6502_v60  ;;  %2189 = vmatprep.subr.mxu0 %v4951_v42  ;;  %v4865_v42 = vld [vmem:[%s6125_s25 + $0x68] sm:$0xff] }
 0x137   : > { %1878 = vmatprep.mubr.f32.mxu1 %v6508_v62  ;;  %2190 = vmatpush2.msra.mxu0 %v4950_v43 }
 0x138   : > { %1468 = vmatmul.mubr.f32.gmra.mxu0 %v6502_v60  ;;  %2191 = vmatprep.subr.mxu0 %v4949_v35 }
 0x139   : > { %1473 = vmatprep.mubr.f32.mxu0 %v6508_v62  ;;  %2192 = vmatpush2.msra.mxu0 %v4948_v17 }
 0x13a   : > { %1879 = vmatmul.mubr.f32.gmra.mxu1 %v6523_v4 }
 0x13b   : > { %1884 = vmatprep.mubr.f32.mxu1 %v6527_v8 }
 0x13c   : > { %1474 = vmatmul.mubr.f32.gmra.mxu0 %v6523_v4 }
 0x13d   : > { %1479 = vmatprep.mubr.f32.mxu0 %v6527_v8 }
 0x13e   : > { %1885 = vmatmul.mubr.f32.gmra.mxu1 %v6546_v19 }
 0x13f   : > { %1890 = vmatprep.mubr.f32.mxu1 %v6552_v22 }
 0x140   : > { %1480 = vmatmul.mubr.f32.gmra.mxu0 %v6546_v19  ;;  %v785_v50 = vpop.f32.mrf.mxu0 }
 0x141   : > { %1485 = vmatprep.mubr.f32.mxu0 %v6552_v22  ;;  %v1018_v53 = vpop.f32.mrf.mxu1 }
 0x142   : > { %1891 = vmatmul.mubr.f32.gmra.mxu1 %v6567_v31  ;;  %v7055_v60 = vadd.f32 %v1018_v53, %v785_v50  ;;  %v7058_v62 = vpop.f32.mrf.mxu0  ;;  %v4864_v50 = vld [vmem:[%s6125_s25 + $0x60] sm:$0xff] }
 0x143   : > { %1896 = vmatprep.mubr.f32.mxu1 %v6574_v37  ;;  %9645 = vst [vmem:[#allocation6_spill] sm:$0xff] %v7058_v62  ;;  %v7060_v4 = vpop.f32.mrf.mxu1 }
 0x144   : > { %9646 = vst [vmem:[#allocation7_spill] sm:$0xff] %v7060_v4  ;;  %1486 = vmatmul.mubr.f32.gmra.mxu0 %v6567_v31  ;;  %v791_v8 = vpop.f32.mrf.mxu0 }
 0x145   : > { %1491 = vmatprep.mubr.f32.mxu0 %v6574_v37  ;;  %v1024_v19 = vpop.f32.mrf.mxu1 }
 0x146   : > { %1897 = vmatmul.mubr.f32.gmra.mxu1 %v6589_v47  ;;  %v7065_v22 = vadd.f32 %v1024_v19, %v791_v8  ;;  %v7068_v29 = vpop.f32.mrf.mxu0  ;;  %v4867_v19 = vld [vmem:[%s6125_s25 + $0x78] sm:$0xff] }
 0x147   : > { %1902 = vmatprep.mubr.f32.mxu1 %v6602_v55  ;;  %9647 = vst [vmem:[#allocation8_spill] sm:$0xff] %v7068_v29  ;;  %v7070_v39 = vpop.f32.mrf.mxu1 }
 0x148   : > { %9648 = vst [vmem:[#allocation9_spill] sm:$0xff] %v7070_v39  ;;  %1492 = vmatmul.mubr.f32.gmra.mxu0 %v6589_v47 }
 0x149   : > { %1497 = vmatprep.mubr.f32.mxu0 %v6602_v55  ;;  %v797_v40 = vpop.f32.mrf.mxu0  ;;  %v1030_v31 = vpop.f32.mrf.mxu1 }
 0x14a   : > { %1903 = vmatmul.mubr.f32.gmra.mxu1 %v6610_v59  ;;  %v7075_v37 = vadd.f32 %v1030_v31, %v797_v40 }
 0x14b   : > { %1908 = vmatprep.mubr.f32.mxu1 %v6632_v12  ;;  %v7078_v5 = vpop.f32.mrf.mxu0  ;;  %v7080_v9 = vpop.f32.mrf.mxu1 }
 0x14c   : > { %9649 = vst [vmem:[#allocation10_spill] sm:$0xff] %v7078_v5  ;;  %9650 = vst [vmem:[#allocation11_spill] sm:$0xff] %v7080_v9  ;;  %1498 = vmatmul.mubr.f32.gmra.mxu0 %v6610_v59  ;;  %v4894_v5 = vld [vmem:[%s6125_s25 + $0x150] sm:$0xff] }
 0x14d   : > { %1503 = vmatprep.mubr.f32.mxu0 %v6632_v12  ;;  %v803_v45 = vpop.f32.mrf.mxu0  ;;  %v1036_v47 = vpop.f32.mrf.mxu1 }
 0x14e   : > { %1909 = vmatmul.mubr.f32.gmra.mxu1 %v6641_v20  ;;  %v7085_v55 = vadd.f32 %v1036_v47, %v803_v45  ;;  %v4866_v47 = vld [vmem:[%s6125_s25 + $0x70] sm:$0xff] }
 0x14f   : > { %1914 = vmatprep.mubr.f32.mxu1 %v6652_v30  ;;  %v7088_v46 = vpop.f32.mrf.mxu0  ;;  %v7090_v38 = vpop.f32.mrf.mxu1 }
 0x150   : > { %9651 = vst [vmem:[#allocation12_spill] sm:$0xff] %v7088_v46  ;;  %9652 = vst [vmem:[#allocation13_spill] sm:$0xff] %v7090_v38  ;;  %1504 = vmatmul.mubr.f32.gmra.mxu0 %v6641_v20  ;;  %v4892_v46 = vld [vmem:[%s6125_s25 + $0x140] sm:$0xff] }
 0x151   : > { %1509 = vmatprep.mubr.f32.mxu0 %v6652_v30  ;;  %v809_v11 = vpop.f32.mrf.mxu0  ;;  %v1042_v59 = vpop.f32.mrf.mxu1 }
 0x152   : > { %1915 = vmatmul.mubr.f32.gmra.mxu1 %v6670_v48  ;;  %v7095_v12 = vadd.f32 %v1042_v59, %v809_v11 }
 0x153   : > { %1920 = vmatprep.mubr.f32.mxu1 %v6687_v0  ;;  %v7098_v51 = vpop.f32.mrf.mxu0  ;;  %v7100_v52 = vpop.f32.mrf.mxu1 }
 0x154   : > { %9653 = vst [vmem:[#allocation14_spill] sm:$0xff] %v7098_v51  ;;  %9654 = vst [vmem:[#allocation15_spill] sm:$0xff] %v7100_v52  ;;  %1510 = vmatmul.mubr.f32.gmra.mxu0 %v6670_v48  ;;  %v4893_v51 = vld [vmem:[%s6125_s25 + $0x148] sm:$0xff] }
 0x155   : > { %1515 = vmatprep.mubr.f32.mxu0 %v6687_v0  ;;  %v815_v15 = vpop.f32.mrf.mxu0  ;;  %v1048_v20 = vpop.f32.mrf.mxu1 }
 0x156   : > { %1921 = vmatmul.mubr.f32.gmra.mxu1 %v6701_v13  ;;  %v7105_v30 = vadd.f32 %v1048_v20, %v815_v15  ;;  %v4869_v15 = vld [vmem:[%s6125_s25 + $0x88] sm:$0xff] }
 0x157   : > { %1926 = vmatprep.mubr.f32.mxu1 %v6714_v36  ;;  %v7108_v41 = vpop.f32.mrf.mxu0  ;;  %v7110_v57 = vpop.f32.mrf.mxu1 }
 0x158   : > { %9655 = vst [vmem:[#allocation16_spill] sm:$0xff] %v7108_v41  ;;  %9656 = vst [vmem:[#allocation17_spill] sm:$0xff] %v7110_v57  ;;  %1516 = vmatmul.mubr.f32.gmra.mxu0 %v6701_v13 }
 0x159   : > { %1521 = vmatprep.mubr.f32.mxu0 %v6714_v36  ;;  %v821_v48 = vpop.f32.mrf.mxu0  ;;  %v1054_v0 = vpop.f32.mrf.mxu1 }
 0x15a   : > { %1927 = vmatmul.mubr.f32.gmra.mxu1 %v6729_v49  ;;  %v7115_v58 = vadd.f32 %v1054_v0, %v821_v48 }
 0x15b   : > { %1932 = vmatprep.mubr.f32.mxu1 %v6750_v10  ;;  %v7118_v16 = vpop.f32.mrf.mxu0  ;;  %v7120_v44 = vpop.f32.mrf.mxu1 }
 0x15c   : > { %9657 = vst [vmem:[#allocation18_spill] sm:$0xff] %v7118_v16  ;;  %9658 = vst [vmem:[#allocation19_spill] sm:$0xff] %v7120_v44  ;;  %1522 = vmatmul.mubr.f32.gmra.mxu0 %v6729_v49 }
 0x15d   : > { %1527 = vmatprep.mubr.f32.mxu0 %v6750_v10  ;;  %v827_v13 = vpop.f32.mrf.mxu0  ;;  %v1060_v36 = vpop.f32.mrf.mxu1 }
 0x15e   : > { %1933 = vmatmul.mubr.f32.gmra.mxu1 %v6756_v26  ;;  %v7128_v1 = vadd.f32 %v1060_v36, %v827_v13  ;;  %v4868_v13 = vld [vmem:[%s6125_s25 + $0x80] sm:$0xff] }
 0x15f   : > { %1938 = vmatprep.mubr.f32.mxu1 %v7124_v63  ;;  %v7134_v21 = vpop.f32.mrf.mxu0  ;;  %v7136_v49 = vpop.f32.mrf.mxu1 }
 0x160   : > { %9659 = vst [vmem:[#allocation20_spill] sm:$0xff] %v7134_v21  ;;  %9660 = vst [vmem:[#allocation21_spill] sm:$0xff] %v7136_v49  ;;  %1528 = vmatmul.mubr.f32.gmra.mxu0 %v6756_v26 }
 0x161   : > { %1533 = vmatprep.mubr.f32.mxu0 %v7124_v63  ;;  %v833_v10 = vpop.f32.mrf.mxu0  ;;  %v1066_v7 = vpop.f32.mrf.mxu1 }
 0x162   : > { %1939 = vmatmul.mubr.f32.gmra.mxu1 %v7132_v54  ;;  %v7145_v56 = vadd.f32 %v1066_v7, %v833_v10  ;;  %v4871_v7 = vld [vmem:[%s6125_s25 + $0x98] sm:$0xff] }
 0x163   : > { %1944 = vmatprep.mubr.f32.mxu1 %v7140_v6  ;;  %v7151_v18 = vpop.f32.mrf.mxu0  ;;  %v7153_v26 = vpop.f32.mrf.mxu1 }
 0x164   : > { %9661 = vst [vmem:[#allocation22_spill] sm:$0xff] %v7151_v18  ;;  %9662 = vst [vmem:[#allocation23_spill] sm:$0xff] %v7153_v26  ;;  %1534 = vmatmul.mubr.f32.gmra.mxu0 %v7132_v54 }
 0x165   : > { %2193 = vmatprep.mubr.f32.mxu0 %v4861_v23  ;;  %v839_v27 = vpop.f32.mrf.mxu0  ;;  %v1072_v24 = vpop.f32.mrf.mxu1 }
 0x166   : > { %1945 = vmatmul.mubr.f32.gmra.mxu1 %v7149_v14  ;;  %v7159_v28 = vadd.f32 %v1072_v24, %v839_v27  ;;  %v4870_v24 = vld [vmem:[%s6125_s25 + $0x90] sm:$0xff] }
 0x167   : > { %v7161_v2 = vpop.f32.mrf.mxu0  ;;  %v7163_v32 = vpop.f32.mrf.mxu1 }
 0x168   : > { %9663 = vst [vmem:[#allocation24_spill] sm:$0xff] %v7161_v2  ;;  %9664 = vst [vmem:[#allocation25_spill] sm:$0xff] %v7163_v32  ;;  %2194 = vmatmul.mubr.f32.vlgmr.msra.gmra.mxu0 %v4860_v61 }
 0x169   : > { %2199 = vmatprep.mubr.f32.mxu0 %v4863_v25  ;;  %v845_v3 = vpop.f32.mrf.mxu0  ;;  %v1078_v33 = vpop.f32.mrf.mxu1 }
 0x16a   : > { %v7167_v43 = vadd.f32 %v1078_v33, %v845_v3  ;;  %v4873_v3 = vld [vmem:[%s6125_s25 + $0xa8] sm:$0xff] }
 0x16b   : > { %v7169_v35 = vpop.f32.mrf.mxu0  ;;  %v7171_v17 = vpop.f32.mrf.mxu1 }
 0x16c   : > { %9665 = vst [vmem:[#allocation26_spill] sm:$0xff] %v7169_v35  ;;  %9666 = vst [vmem:[#allocation27_spill] sm:$0xff] %v7171_v17  ;;  %2200 = vmatmul.mubr.f32.gmra.mxu0 %v4862_v34 }
 0x16d   : > { %2205 = vmatprep.mubr.f32.mxu0 %v4865_v42  ;;  %v851_v53 = vpop.f32.mrf.mxu0  ;;  %v1084_v8 = vpop.f32.mrf.mxu1 }
 0x16e   : > { %v7175_v40 = vadd.f32 %v1084_v8, %v851_v53  ;;  %v4872_v53 = vld [vmem:[%s6125_s25 + $0xa0] sm:$0xff] }
 0x16f   : > { %v7177_v31 = vpop.f32.mrf.mxu0  ;;  %v7179_v45 = vpop.f32.mrf.mxu1 }
 0x170   : > { %9667 = vst [vmem:[#allocation28_spill] sm:$0xff] %v7177_v31  ;;  %9668 = vst [vmem:[#allocation29_spill] sm:$0xff] %v7179_v45  ;;  %2206 = vmatmul.mubr.f32.gmra.mxu0 %v4864_v50 }
 0x171   : > { %2211 = vmatprep.mubr.f32.mxu0 %v4867_v19  ;;  %v857_v11 = vpop.f32.mrf.mxu0  ;;  %v1090_v59 = vpop.f32.mrf.mxu1 }
 0x172   : > { %v7183_v20 = vadd.f32 %v1090_v59, %v857_v11 }
 0x173   : > { %v7185_v48 = vpop.f32.mrf.mxu0  ;;  %v7187_v0 = vpop.f32.mrf.mxu1 }
 0x174   : > { %9669 = vst [vmem:[#allocation30_spill] sm:$0xff] %v7185_v48  ;;  %9670 = vst [vmem:[#allocation31_spill] sm:$0xff] %v7187_v0  ;;  %2212 = vmatmul.mubr.f32.gmra.mxu0 %v4866_v47  ;;  %v4875_v47 = vld [vmem:[%s6125_s25 + $0xb8] sm:$0xff] }
 0x175   : > { %2217 = vmatprep.mubr.f32.mxu0 %v4869_v15  ;;  %v863_v36 = vpop.f32.mrf.mxu0  ;;  %v1096_v10 = vpop.f32.mrf.mxu1 }
 0x176   : > { %v7191_v23 = vadd.f32 %v1096_v10, %v863_v36 }
 0x177   : > { %v7193_v61 = vpop.f32.mrf.mxu0  ;;  %v7195_v27 = vpop.f32.mrf.mxu1 }
 0x178   : > { %9671 = vst [vmem:[#allocation32_spill] sm:$0xff] %v7193_v61  ;;  %9672 = vst [vmem:[#allocation33_spill] sm:$0xff] %v7195_v27  ;;  %2218 = vmatmul.mubr.f32.gmra.mxu0 %v4868_v13  ;;  %v4874_v13 = vld [vmem:[%s6125_s25 + $0xb0] sm:$0xff] }
 0x179   : > { %2223 = vmatprep.mubr.f32.mxu0 %v4871_v7  ;;  %v869_v25 = vpop.f32.mrf.mxu0  ;;  %v1102_v34 = vpop.f32.mrf.mxu1  ;;  %v4877_v7 = vld [vmem:[%s6125_s25 + $0xc8] sm:$0xff] }
 0x17a   : > { %v7199_v33 = vadd.f32 %v1102_v34, %v869_v25 }
 0x17b   : > { %v7201_v42 = vpop.f32.mrf.mxu0  ;;  %v7203_v50 = vpop.f32.mrf.mxu1 }
 0x17c   : > { %2224 = vmatmul.mubr.f32.gmra.mxu0 %v4870_v24 }
 0x17d   : > { %2229 = vmatprep.mubr.f32.mxu0 %v4873_v3  ;;  %v875_v8 = vpop.f32.mrf.mxu0  ;;  %v1108_v19 = vpop.f32.mrf.mxu1  ;;  %v4876_v3 = vld [vmem:[%s6125_s25 + $0xc0] sm:$0xff] }
 0x17e   : > { %v7207_v11 = vadd.f32 %v1108_v19, %v875_v8 }
 0x17f   : > { %v7209_v59 = vpop.f32.mrf.mxu0  ;;  %v7211_v15 = vpop.f32.mrf.mxu1 }
 0x180   : > { %2230 = vmatmul.mubr.f32.gmra.mxu0 %v4872_v53  ;;  %v4879_v53 = vld [vmem:[%s6125_s25 + $0xd8] sm:$0xff] }
 0x181   : > { %2235 = vmatprep.mubr.f32.mxu0 %v4875_v47  ;;  %v881_v36 = vpop.f32.mrf.mxu0  ;;  %v1114_v10 = vpop.f32.mrf.mxu1 }
 0x182   : > { %v7215_v24 = vadd.f32 %v1114_v10, %v881_v36  ;;  %v4878_v36 = vld [vmem:[%s6125_s25 + $0xd0] sm:$0xff] }
 0x183   : > { %v7217_v25 = vpop.f32.mrf.mxu0  ;;  %v7219_v34 = vpop.f32.mrf.mxu1 }
 0x184   : > { %2236 = vmatmul.mubr.f32.gmra.mxu0 %v4874_v13  ;;  %v4881_v13 = vld [vmem:[%s6125_s25 + $0xe8] sm:$0xff] }
 0x185   : > { %2241 = vmatprep.mubr.f32.mxu0 %v4877_v7  ;;  %v887_v8 = vpop.f32.mrf.mxu0  ;;  %v1120_v19 = vpop.f32.mrf.mxu1 }
 0x186   : > { %v7223_v47 = vadd.f32 %v1120_v19, %v887_v8  ;;  %v4880_v8 = vld [vmem:[%s6125_s25 + $0xe0] sm:$0xff] }
 0x187   : > { %v7225_v27 = vpop.f32.mrf.mxu0  ;;  %v7227_v61 = vpop.f32.mrf.mxu1 }
 0x188   : > { %2242 = vmatmul.mubr.f32.gmra.mxu0 %v4876_v3  ;;  %v4883_v3 = vld [vmem:[%s6125_s25 + $0xf8] sm:$0xff] }
 0x189   : > { %2247 = vmatprep.mubr.f32.mxu0 %v4879_v53  ;;  %v893_v10 = vpop.f32.mrf.mxu0  ;;  %v1126_v0 = vpop.f32.mrf.mxu1 }
 0x18a   : > { %v7231_v7 = vadd.f32 %v1126_v0, %v893_v10  ;;  %v4882_v0 = vld [vmem:[%s6125_s25 + $0xf0] sm:$0xff] }
 0x18b   : > { %v7233_v48 = vpop.f32.mrf.mxu0  ;;  %v7235_v45 = vpop.f32.mrf.mxu1 }
 0x18c   : > { %2248 = vmatmul.mubr.f32.gmra.mxu0 %v4878_v36  ;;  %v4885_v36 = vld [vmem:[%s6125_s25 + $0x108] sm:$0xff] }
 0x18d   : > { %2253 = vmatprep.mubr.f32.mxu0 %v4881_v13  ;;  %v899_v19 = vpop.f32.mrf.mxu0  ;;  %v1132_v31 = vpop.f32.mrf.mxu1 }
 0x18e   : > { %v7239_v53 = vadd.f32 %v1132_v31, %v899_v19  ;;  %v4884_v31 = vld [vmem:[%s6125_s25 + $0x100] sm:$0xff] }
 0x18f   : > { %v7241_v17 = vpop.f32.mrf.mxu0  ;;  %v7243_v35 = vpop.f32.mrf.mxu1 }
 0x190   : > { %2254 = vmatmul.mubr.f32.gmra.mxu0 %v4880_v8  ;;  %v4887_v8 = vld [vmem:[%s6125_s25 + $0x118] sm:$0xff] }
 0x191   : > { %2259 = vmatprep.mubr.f32.mxu0 %v4883_v3  ;;  %v905_v10 = vpop.f32.mrf.mxu0  ;;  %v1138_v32 = vpop.f32.mrf.mxu1 }
 0x192   : > { %v7247_v13 = vadd.f32 %v1138_v32, %v905_v10  ;;  %v4886_v32 = vld [vmem:[%s6125_s25 + $0x110] sm:$0xff] }
 0x193   : > { %v7249_v2 = vpop.f32.mrf.mxu0  ;;  %v7251_v26 = vpop.f32.mrf.mxu1 }
 0x194   : > { %2260 = vmatmul.mubr.f32.gmra.mxu0 %v4882_v0  ;;  %v4889_v0 = vld [vmem:[%s6125_s25 + $0x128] sm:$0xff] }
 0x195   : > { %2265 = vmatprep.mubr.f32.mxu0 %v4885_v36  ;;  %v911_v19 = vpop.f32.mrf.mxu0  ;;  %v1144_v18 = vpop.f32.mrf.mxu1 }
 0x196   : > { %v7255_v3 = vadd.f32 %v1144_v18, %v911_v19  ;;  %v4888_v18 = vld [vmem:[%s6125_s25 + $0x120] sm:$0xff]  ;;  %v4891_v19 = vld [vmem:[%s6125_s25 + $0x138] sm:$0xff] }
 0x197   : > { %v7257_v49 = vpop.f32.mrf.mxu0  ;;  %v7259_v21 = vpop.f32.mrf.mxu1 }
 0x198   : > { %2266 = vmatmul.mubr.f32.gmra.mxu0 %v4884_v31 }
 0x199   : > { %2271 = vmatprep.mubr.f32.mxu0 %v4887_v8  ;;  %v917_v10 = vpop.f32.mrf.mxu0  ;;  %v1150_v44 = vpop.f32.mrf.mxu1 }
 0x19a   : > { %v7263_v36 = vadd.f32 %v1150_v44, %v917_v10  ;;  %v4890_v44 = vld [vmem:[%s6125_s25 + $0x130] sm:$0xff] }
 0x19b   : > { %v7265_v16 = vpop.f32.mrf.mxu0  ;;  %v7267_v57 = vpop.f32.mrf.mxu1 }
 0x19c   : > { %2272 = vmatmul.mubr.f32.gmra.mxu0 %v4886_v32 }
 0x19d   : > { %2277 = vmatprep.mubr.f32.mxu0 %v4889_v0 }
 0x19e   : > { %v923_v41 = vpop.f32.mrf.mxu0  ;;  %v1156_v31 = vpop.f32.mrf.mxu1 }
 0x19f   : > { %v7271_v8 = vadd.f32 %v1156_v31, %v923_v41 }
 0x1a0   : > { %2278 = vmatmul.mubr.f32.gmra.mxu0 %v4888_v18  ;;  %v7273_v52 = vpop.f32.mrf.mxu0  ;;  %v7276_v10 = vpop.f32.mrf.mxu1 }
 0x1a1   : > { %2283 = vmatprep.mubr.f32.mxu0 %v4891_v19  ;;  %v4895_v19 = vld [vmem:[%s6125_s25 + $0x158] sm:$0xff] }
 0x1a3   : > { %v929_v32 = vpop.f32.mrf.mxu0  ;;  %v1162_v0 = vpop.f32.mrf.mxu1 }
 0x1a4   : > { %2284 = vmatmul.mubr.f32.gmra.mxu0 %v4890_v44  ;;  %v7279_v38 = vadd.f32 %v1162_v0, %v929_v32  ;;  %v4896_v0 = vld [vmem:[%s6125_s25 + $0x160] sm:$0xff] }
 0x1a5   : > { %2289 = vmatprep.mubr.f32.mxu0 %v4893_v51  ;;  %v7282_v18 = vpop.f32.mrf.mxu0  ;;  %v7284_v41 = vpop.f32.mrf.mxu1  ;;  %v4897_v51 = vld [vmem:[%s6125_s25 + $0x168] sm:$0xff] }
 0x1a8   : > { %2290 = vmatmul.mubr.f32.gmra.mxu0 %v4892_v46  ;;  %v935_v31 = vpop.f32.mrf.mxu0  ;;  %v4899_v46 = vld [vmem:[%s6125_s25 + $0x178] sm:$0xff] }
 0x1a9   : > { %2295 = vmatprep.mubr.f32.mxu0 %v4895_v19  ;;  %v1168_v9 = vpop.f32.mrf.mxu1 }
 0x1aa   : > { %v7288_v39 = vadd.f32 %v1168_v9, %v935_v31  ;;  %v7291_v44 = vpop.f32.mrf.mxu0  ;;  %v4898_v31 = vld [vmem:[%s6125_s25 + $0x170] sm:$0xff] }
 0x1ab   : > { %9674 = vst [vmem:[#allocation35_spill] sm:$0xff] %v7291_v44  ;;  %v7293_v32 = vpop.f32.mrf.mxu1 }
 0x1ac   : > { %9673 = vst [vmem:[#allocation34_spill] sm:$0xff] %v7288_v39  ;;  %9675 = vst [vmem:[#allocation36_spill] sm:$0xff] %v7293_v32  ;;  %2296 = vmatmul.mubr.f32.gmra.mxu0 %v4894_v5  ;;  %v4901_v39 = vld [vmem:[%s6125_s25 + $0x188] sm:$0xff] }
 0x1ad   : > { %2301 = vmatprep.mubr.f32.mxu0 %v4897_v51  ;;  %v941_v29 = vpop.f32.mrf.mxu0 }
 0x1ae   : > { %v1174_v4 = vpop.f32.mrf.mxu1 }
 0x1af   : > { %v7297_v19 = vadd.f32 %v1174_v4, %v941_v29  ;;  %v7299_v62 = vpop.f32.mrf.mxu0  ;;  %v4900_v4 = vld [vmem:[%s6125_s25 + $0x180] sm:$0xff]  ;;  %v4903_v29 = vld [vmem:[%s6125_s25 + $0x198] sm:$0xff] }
 0x1b0   : > { %2302 = vmatmul.mubr.f32.gmra.mxu0 %v4896_v0  ;;  %9677 = vst [vmem:[#allocation38_spill] sm:$0xff] %v7299_v62  ;;  %v7301_v9 = vpop.f32.mrf.mxu1  ;;  %v4902_v62 = vld [vmem:[%s6125_s25 + $0x190] sm:$0xff] }
 0x1b1   : > { %9676 = vst [vmem:[#allocation37_spill] sm:$0xff] %v7297_v19  ;;  %9678 = vst [vmem:[#allocation39_spill] sm:$0xff] %v7301_v9  ;;  %2307 = vmatprep.mubr.f32.mxu0 %v4899_v46 }
 0x1b2   : > { %v947_v32 = vpop.f32.mrf.mxu0 }
 0x1b3   : > { %v1180_v5 = vpop.f32.mrf.mxu1 }
 0x1b4   : > { %v7305_v51 = vadd.f32 %v1180_v5, %v947_v32  ;;  %2308 = vmatmul.mubr.f32.gmra.mxu0 %v4898_v31  ;;  %v7307_v44 = vpop.f32.mrf.mxu0  ;;  %v4905_v5 = vld [vmem:[%s6125_s25 + $0x1a8] sm:$0xff] }
 0x1b5   : > { %9680 = vst [vmem:[#allocation41_spill] sm:$0xff] %v7307_v44  ;;  %2313 = vmatprep.mubr.f32.mxu0 %v4901_v39  ;;  %v7311_v19 = vpop.f32.mrf.mxu1 }
 0x1b6   : > { %9679 = vst [vmem:[#allocation40_spill] sm:$0xff] %v7305_v51  ;;  %9681 = vst [vmem:[#allocation42_spill] sm:$0xff] %v7311_v19 }
 0x1b7   : > { %v1373_v0 = vpop.f32.mrf.mxu0 }
 0x1b8   : > { %v1540_v46 = vadd.f32 %v1373_v0, %v7055_v60  ;;  %2314 = vmatmul.mubr.f32.gmra.mxu0 %v4900_v4  ;;  %v4904_v60 = vld [vmem:[%s6125_s25 + $0x1a0] sm:$0xff] }
 0x1b9   : > { %v7314_v9 = vpop.f32.mrf.mxu0  ;;  %2319 = vmatprep.mubr.f32.mxu0 %v4903_v29  ;;  %v4907_v29 = vld [vmem:[%s6125_s25 + $0x1b8] sm:$0xff] }
 0x1ba   : > { %9682 = vst [vmem:[#allocation43_spill] sm:$0xff] %v7314_v9  ;;  %v1784_v32 = vpop.f32.mrf.mxu1 }
 0x1bb   : > { %v7318_v31 = vadd.f32 %v1784_v32, %v1540_v46  ;;  %v1379_v39 = vpop.f32.mrf.mxu0  ;;  %v4906_v32 = vld [vmem:[%s6125_s25 + $0x1b0] sm:$0xff] }
 0x1bc   : > { %v7320_v51 = vpop.f32.mrf.mxu1  ;;  %2320 = vmatmul.mubr.f32.gmra.mxu0 %v4902_v62  ;;  %v1542_v19 = vadd.f32 %v1379_v39, %v7065_v22  ;;  %v4909_v22 = vld [vmem:[%s6125_s25 + $0x1c8] sm:$0xff] }
 0x1bd   : > { %9683 = vst [vmem:[#allocation44_spill] sm:$0xff] %v7318_v31  ;;  %2325 = vmatprep.mubr.f32.mxu0 %v4905_v5  ;;  %v7324_v0 = vpop.f32.mrf.mxu0 }
 0x1be   : > { %v1790_v4 = vpop.f32.mrf.mxu1 }
 0x1bf   : > { %v7327_v9 = vadd.f32 %v1790_v4, %v1542_v19  ;;  %v1385_v44 = vpop.f32.mrf.mxu0  ;;  %v4908_v19 = vld [vmem:[%s6125_s25 + $0x1c0] sm:$0xff] }
 0x1c0   : > { %2326 = vmatmul.mubr.f32.gmra.mxu0 %v4904_v60  ;;  %v7330_v46 = vadd.f32 %v1385_v44, %v7075_v37  ;;  %v7333_v31 = vpop.f32.mrf.mxu1 }
 0x1c1   : > { %2331 = vmatprep.mubr.f32.mxu0 %v4907_v29  ;;  %v7335_v62 = vpop.f32.mrf.mxu0 }
 0x1c2   : > { %v7342_v4 = vpop.f32.mrf.mxu1 }
 0x1c4   : > { %v1391_v5 = vpop.f32.mrf.mxu0  ;;  %2332 = vmatmul.mubr.f32.gmra.mxu0 %v4906_v32  ;;  %v7350_v29 = vpop.f32.mrf.mxu1 }
 0x1c5   : > { %v7339_v39 = vadd.f32 %v1391_v5, %v7085_v55  ;;  %2337 = vmatprep.mubr.f32.mxu0 %v4909_v22 }
 0x1c6   : > { %v7344_v60 = vpop.f32.mrf.mxu0  ;;  %v7359_v5 = vpop.f32.mrf.mxu1 }
 0x1c8   : > { %v1397_v37 = vpop.f32.mrf.mxu0  ;;  %2338 = vmatmul.mubr.f32.gmra.mxu0 %v4908_v19 }
 0x1c9   : > { %v7347_v44 = vadd.f32 %v1397_v37, %v7095_v12  ;;  %2343 = vmatprep.mubr.f32.mxu0 %v7124_v63  ;;  %v4915_v12 = vld [vmem:[%s6125_s25 + $0x1f8] sm:$0xff] }
 0x1ca   : > { %v7352_v32 = vpop.f32.mrf.mxu0 }
 0x1cb   : > { %9684 = vst [vmem:[#allocation45_spill] sm:$0xff] %v7347_v44  ;;  %9685 = vst [vmem:[#allocation46_spill] sm:$0xff] %v7352_v32  ;;  %v4914_v44 = vld [vmem:[%s6125_s25 + $0x1f0] sm:$0xff]  ;;  %v7369_v32 = vpop.f32.mrf.mxu1  ;;  %s4413_s25 = scalar_lea.sflag [#allocation4], %s6071_s17 }
 0x1cc   : > { %v1403_v55 = vpop.f32.mrf.mxu0  ;;  %2344 = vmatmul.mubr.f32.gmra.mxu0 %v7132_v54 }
 0x1cd   : > { %v7356_v22 = vadd.f32 %v1403_v55, %v7105_v30  ;;  %2349 = vmatprep.mubr.f32.mxu0 %v7140_v6  ;;  %v7376_v55 = vpop.f32.mrf.mxu1 }
 0x1ce   : > { %v7361_v19 = vpop.f32.mrf.mxu0 }
 0x1cf   : > { %9686 = vst [vmem:[#allocation47_spill] sm:$0xff] %v7356_v22  ;;  %9687 = vst [vmem:[#allocation48_spill] sm:$0xff] %v7361_v19 }
 0x1d0   : > { %v1409_v37 = vpop.f32.mrf.mxu0  ;;  %2350 = vmatmul.mubr.f32.gmra.mxu0 %v7149_v14 }
 0x1d1   : > { %v7366_v63 = vadd.f32 %v1409_v37, %v7115_v58  ;;  %2355 = vmatprep.mubr.f32.mxu0 %v4915_v12  ;;  %v7383_v58 = vpop.f32.mrf.mxu1 }
 0x1d2   : > { %v7371_v54 = vpop.f32.mrf.mxu0 }
 0x1d3   : > { %9688 = vst [vmem:[#allocation49_spill] sm:$0xff] %v7366_v63 }
 0x1d4   : > { %v1415_v30 = vpop.f32.mrf.mxu0  ;;  %2356 = vmatmul.mubr.f32.gmra.mxu0 %v4914_v44  ;;  %v7390_v44 = vpop.f32.mrf.mxu1 }
 0x1d5   : > { %v7374_v6 = vadd.f32 %v1415_v30, %v7128_v1  ;;  %v5011_v30 = vld [vmem:[%s9633_s3 + $0x2a8] sm:$0xff] }
 0x1d6   : > { %v7378_v22 = vpop.f32.mrf.mxu0  ;;  %2865 = vmatprep.subr.mxu1 %v5011_v30  ;;  %v5009_v30 = vld [vmem:[%s9633_s3 + $0x298] sm:$0xff] }
 0x1d7   : > { %9689 = vst [vmem:[#allocation50_spill] sm:$0xff] %v7374_v6 }
 0x1d8   : > { %v1421_v19 = vpop.f32.mrf.mxu0 }
 0x1d9   : > { %v7381_v14 = vadd.f32 %v1421_v19, %v7145_v56  ;;  %v5010_v19 = vld [vmem:[%s9633_s3 + $0x2a0] sm:$0xff] }
 0x1da   : > { %v7385_v12 = vpop.f32.mrf.mxu0  ;;  %2866 = vmatpush1.msra.mxu1 %v5010_v19 }
 0x1db   : > { %9690 = vst [vmem:[#allocation51_spill] sm:$0xff] %v7381_v14  ;;  %v7403_v14 = vpop.f32.mrf.mxu1  ;;  %2867 = vmatprep.subr.mxu1 %v5009_v30 }
 0x1dc   : > { %v1427_v37 = vpop.f32.mrf.mxu0 }
 0x1dd   : > { %v7388_v63 = vadd.f32 %v1427_v37, %v7159_v28 }
 0x1de   : > { %v7392_v1 = vpop.f32.mrf.mxu0 }
 0x1df   : > { %9691 = vst [vmem:[#allocation52_spill] sm:$0xff] %v7388_v63  ;;  %9692 = vst [vmem:[#allocation53_spill] sm:$0xff] %v7392_v1 }
 0x1e0   : > { %v1433_v6 = vpop.f32.mrf.mxu0 }
 0x1e1   : > { %v7398_v56 = vadd.f32 %v1433_v6, %v7167_v43  ;;  %v5008_v43 = vld [vmem:[%s9633_s3 + $0x290] sm:$0xff]  ;;  %v7416_v6 = vpop.f32.mrf.mxu1 }
 0x1e2   : > { %v7405_v28 = vpop.f32.mrf.mxu0  ;;  %2868 = vmatpush1.msra.mxu1 %v5008_v43 }
 0x1e3   : > { %9693 = vst [vmem:[#allocation54_spill] sm:$0xff] %v7398_v56  ;;  %9694 = vst [vmem:[#allocation55_spill] sm:$0xff] %v7405_v28 }
 0x1e4   : > { %v1439_v37 = vpop.f32.mrf.mxu0 }
 0x1e5   : > { %v7408_v63 = vadd.f32 %v1439_v37, %v7175_v40  ;;  %v5007_v40 = vld [vmem:[%s9633_s3 + $0x288] sm:$0xff]  ;;  %v5006_v37 = vld [vmem:[%s9633_s3 + $0x280] sm:$0xff] }
 0x1e6   : > { %v7418_v56 = vpop.f32.mrf.mxu0  ;;  %2869 = vmatprep.subr.mxu1 %v5007_v40 }
 0x1e7   : > { %9695 = vst [vmem:[#allocation56_spill] sm:$0xff] %v7408_v63  ;;  %9696 = vst [vmem:[#allocation57_spill] sm:$0xff] %v7418_v56  ;;  %v7429_v63 = vpop.f32.mrf.mxu1  ;;  %2870 = vmatpush1.msra.mxu1 %v5006_v37  ;;  %v1105_v37 = vadd.f32 %v7203_v50, %v7201_v42  ;;  %v5001_v50 = vld [vmem:[%s9633_s3 + $0x258] sm:$0xff] }
 0x1e8   : > { %v1445_v28 = vpop.f32.mrf.mxu0 }
 0x1e9   : > { %v7421_v19 = vadd.f32 %v1445_v28, %v7183_v20  ;;  %v5005_v20 = vld [vmem:[%s9633_s3 + $0x278] sm:$0xff]  ;;  %v5004_v28 = vld [vmem:[%s9633_s3 + $0x270] sm:$0xff] }
 0x1ea   : > { %v7431_v1 = vpop.f32.mrf.mxu0  ;;  %2871 = vmatprep.subr.mxu1 %v5005_v20 }
 0x1eb   : > { %9697 = vst [vmem:[#allocation58_spill] sm:$0xff] %v7421_v19  ;;  %9698 = vst [vmem:[#allocation59_spill] sm:$0xff] %v7431_v1  ;;  %v7442_v19 = vpop.f32.mrf.mxu1  ;;  %2872 = vmatpush1.msra.mxu1 %v5004_v28 }
 0x1ec   : > { %v1451_v30 = vpop.f32.mrf.mxu0 }
 0x1ed   : > { %v7434_v43 = vadd.f32 %v1451_v30, %v7191_v23  ;;  %v5003_v30 = vld [vmem:[%s9633_s3 + $0x268] sm:$0xff]  ;;  %v7457_v1 = vpop.f32.mrf.mxu1 }
 0x1ee   : > { %v7444_v56 = vpop.f32.mrf.mxu0  ;;  %2873 = vmatprep.subr.mxu1 %v5003_v30  ;;  %v4998_v30 = vld [vmem:[%s9633_s3 + $0x240] sm:$0xff] }
 0x1ef   : > { %9699 = vst [vmem:[#allocation60_spill] sm:$0xff] %v7434_v43  ;;  %9700 = vst [vmem:[#allocation61_spill] sm:$0xff] %v7444_v56  ;;  %v5002_v43 = vld [vmem:[%s9633_s3 + $0x260] sm:$0xff] }
 0x1f0   : > { %v1457_v40 = vpop.f32.mrf.mxu0  ;;  %2874 = vmatpush1.msra.mxu1 %v5002_v43 }
 0x1f1   : > { %v7449_v23 = vadd.f32 %v1457_v40, %v7199_v33  ;;  %v1111_v33 = vadd.f32 %v7211_v15, %v7209_v59  ;;  %v5000_v40 = vld [vmem:[%s9633_s3 + $0x250] sm:$0xff]  ;;  %2875 = vmatprep.subr.mxu1 %v5001_v50  ;;  %v4999_v15 = vld [vmem:[%s9633_s3 + $0x248] sm:$0xff] }
 0x1f2   : > { %v1459_v56 = vpop.f32.mrf.mxu0  ;;  %2876 = vmatpush1.msra.mxu1 %v5000_v40 }
 0x1f3   : > { %9701 = vst [vmem:[#allocation62_spill] sm:$0xff] %v7449_v23  ;;  %v7459_v20 = vadd.f32 %v1459_v56, %v1105_v37  ;;  %v7472_v23 = vpop.f32.mrf.mxu1  ;;  %2877 = vmatprep.subr.mxu1 %v4999_v15 }
 0x1f4   : > { %v1463_v28 = vpop.f32.mrf.mxu0  ;;  %2878 = vmatpush1.msra.mxu1 %v4998_v30 }
 0x1f5   : > { %v7464_v42 = vadd.f32 %v1463_v28, %v7207_v11  ;;  %v1117_v11 = vadd.f32 %v7219_v34, %v7217_v25  ;;  %v7487_v28 = vpop.f32.mrf.mxu1  ;;  %v4997_v34 = vld [vmem:[%s9633_s3 + $0x238] sm:$0xff] }
 0x1f6   : > { %v1465_v56 = vpop.f32.mrf.mxu0  ;;  %2879 = vmatprep.subr.mxu1 %v4997_v34 }
 0x1f7   : > { %v7474_v43 = vadd.f32 %v1465_v56, %v1111_v33  ;;  %v7499_v56 = vpop.f32.mrf.mxu1 }
 0x1f8   : > { %v1469_v37 = vpop.f32.mrf.mxu0 }
 0x1f9   : > { %v7479_v59 = vadd.f32 %v1469_v37, %v7215_v24  ;;  %v1123_v24 = vadd.f32 %v7227_v61, %v7225_v27  ;;  %v1129_v61 = vadd.f32 %v7235_v45, %v7233_v48  ;;  %v7514_v30 = vpop.f32.mrf.mxu1  ;;  %v1135_v45 = vadd.f32 %v7243_v35, %v7241_v17 }
 0x1fa   : > { %v1471_v33 = vpop.f32.mrf.mxu0  ;;  %v1141_v35 = vadd.f32 %v7251_v26, %v7249_v2  ;;  %v1147_v26 = vadd.f32 %v7259_v21, %v7257_v49  ;;  %v4988_v21 = vld [vmem:[%s9633_s3 + $0x1f0] sm:$0xff]  ;;  %v5148_v49 = vld [vmem:[%s9633_s3 + $0x600] sm:$0xff] }
 0x1fb   : > { %9702 = vst [vmem:[#allocation63_spill] sm:$0xff] %v7479_v59  ;;  %v7489_v50 = vadd.f32 %v1471_v33, %v1117_v11  ;;  %v4996_v11 = vld [vmem:[%s9633_s3 + $0x230] sm:$0xff] }
 0x1fc   : > { %v1475_v40 = vpop.f32.mrf.mxu0  ;;  %2880 = vmatpush1.msra.mxu1 %v4996_v11 }
 0x1fd   : > { %v7494_v25 = vadd.f32 %v1475_v40, %v7223_v47  ;;  %v4995_v47 = vld [vmem:[%s9633_s3 + $0x228] sm:$0xff] }
 0x1fe   : > { %v1477_v37 = vpop.f32.mrf.mxu0  ;;  %2881 = vmatprep.subr.mxu1 %v4995_v47 }
 0x1ff   : > { %v7501_v59 = vadd.f32 %v1477_v37, %v1123_v24  ;;  %v4994_v24 = vld [vmem:[%s9633_s3 + $0x220] sm:$0xff]  ;;  %v7529_v37 = vpop.f32.mrf.mxu1 }
 0x200   : > { %v1481_v15 = vpop.f32.mrf.mxu0  ;;  %2882 = vmatpush1.msra.mxu1 %v4994_v24 }
 0x201   : > { %v7509_v27 = vadd.f32 %v1481_v15, %v7231_v7  ;;  %v4993_v7 = vld [vmem:[%s9633_s3 + $0x218] sm:$0xff] }
 0x202   : > { %v1483_v33 = vpop.f32.mrf.mxu0  ;;  %2883 = vmatprep.subr.mxu1 %v4993_v7 }
 0x203   : > { %9703 = vst [vmem:[#allocation64_spill] sm:$0xff] %v7509_v27  ;;  %v7516_v40 = vadd.f32 %v1483_v33, %v1129_v61  ;;  %v4992_v61 = vld [vmem:[%s9633_s3 + $0x210] sm:$0xff]  ;;  %v7544_v33 = vpop.f32.mrf.mxu1 }
 0x204   : > { %v1487_v34 = vpop.f32.mrf.mxu0  ;;  %2884 = vmatpush1.msra.mxu1 %v4992_v61 }
 0x205   : > { %9704 = vst [vmem:[#allocation65_spill] sm:$0xff] %v7516_v40  ;;  %v7524_v48 = vadd.f32 %v1487_v34, %v7239_v53  ;;  %v4991_v53 = vld [vmem:[%s9633_s3 + $0x208] sm:$0xff] }
 0x206   : > { %v1489_v11 = vpop.f32.mrf.mxu0  ;;  %2885 = vmatprep.subr.mxu1 %v4991_v53  ;;  %v5147_v53 = vld [vmem:[%s9633_s3 + $0x5f8] sm:$0xff] }
 0x207   : > { %9705 = vst [vmem:[#allocation66_spill] sm:$0xff] %v7524_v48  ;;  %v7531_v15 = vadd.f32 %v1489_v11, %v1135_v45  ;;  %v4990_v45 = vld [vmem:[%s9633_s3 + $0x200] sm:$0xff]  ;;  %v7559_v11 = vpop.f32.mrf.mxu1 }
 0x208   : > { %v1493_v47 = vpop.f32.mrf.mxu0  ;;  %2886 = vmatpush1.msra.mxu1 %v4990_v45 }
 0x209   : > { %9706 = vst [vmem:[#allocation67_spill] sm:$0xff] %v7531_v15  ;;  %v7539_v17 = vadd.f32 %v1493_v47, %v7247_v13  ;;  %v4989_v13 = vld [vmem:[%s9633_s3 + $0x1f8] sm:$0xff]  ;;  %v5149_v47 = vld [vmem:[%s9633_s3 + $0x608] sm:$0xff] }
 0x20a   : > { %v1495_v24 = vpop.f32.mrf.mxu0  ;;  %2887 = vmatprep.subr.mxu1 %v4989_v13  ;;  %3379 = vmatprep.subr.mxu0 %v5149_v47  ;;  %v7586_v13 = vpop.f32.mrf.mxu1  ;;  %v5144_v47 = vld [vmem:[%s9633_s3 + $0x5e0] sm:$0xff] }
 0x20b   : > { %9707 = vst [vmem:[#allocation68_spill] sm:$0xff] %v7539_v17  ;;  %v7546_v34 = vadd.f32 %v1495_v24, %v1141_v35  ;;  %2888 = vmatpush1.msra.mxu1 %v4988_v21  ;;  %3380 = vmatpush1.msra.mxu0 %v5148_v49  ;;  %v1153_v24 = vadd.f32 %v7267_v57, %v7265_v16  ;;  %v5145_v57 = vld [vmem:[%s9633_s3 + $0x5e8] sm:$0xff]  ;;  %v5143_v49 = vld [vmem:[%s9633_s3 + $0x5d8] sm:$0xff] }
 0x20c   : > { %v1499_v7 = vpop.f32.mrf.mxu0  ;;  %3381 = vmatprep.subr.mxu0 %v5147_v53 }
 0x20d   : > { %9708 = vst [vmem:[#allocation69_spill] sm:$0xff] %v7546_v34  ;;  %v7554_v2 = vadd.f32 %v1499_v7, %v7255_v3  ;;  %v4987_v7 = vld [vmem:[%s9633_s3 + $0x1e8] sm:$0xff]  ;;  %v9732_v34 = vld [vmem:[#allocation40_spill] sm:$0xff] }
 0x20e   : > { %v1501_v61 = vpop.f32.mrf.mxu0  ;;  %2889 = vmatprep.subr.mxu1 %v4987_v7  ;;  %v5142_v7 = vld [vmem:[%s9633_s3 + $0x5d0] sm:$0xff] }
 0x20f   : > { %9709 = vst [vmem:[#allocation70_spill] sm:$0xff] %v7554_v2  ;;  %v7564_v35 = vadd.f32 %v1501_v61, %v1147_v26  ;;  %v5146_v26 = vld [vmem:[%s9633_s3 + $0x5f0] sm:$0xff]  ;;  %v5025_v2 = vld [vmem:[%s9633_s3 + $0x318] sm:$0xff] }
 0x210   : > { %v1505_v3 = vpop.f32.mrf.mxu0  ;;  %3382 = vmatpush1.msra.mxu0 %v5146_v26  ;;  %v7613_v26 = vpop.f32.mrf.mxu1 }
 0x211   : > { %9710 = vst [vmem:[#allocation71_spill] sm:$0xff] %v7564_v35  ;;  %v7578_v45 = vadd.f32 %v1505_v3, %v7263_v36  ;;  %v4986_v36 = vld [vmem:[%s9633_s3 + $0x1e0] sm:$0xff]  ;;  %3383 = vmatprep.subr.mxu0 %v5145_v57  ;;  %v1159_v3 = vadd.f32 %v7276_v10, %v7273_v52  ;;  %v5141_v52 = vld [vmem:[%s9633_s3 + $0x5c8] sm:$0xff]  ;;  %v4984_v10 = vld [vmem:[%s9633_s3 + $0x1d0] sm:$0xff] }
 0x212   : > { %v1507_v61 = vpop.f32.mrf.mxu0  ;;  %2890 = vmatpush1.msra.mxu1 %v4986_v36  ;;  %3384 = vmatpush1.msra.mxu0 %v5144_v47  ;;  %v5140_v57 = vld [vmem:[%s9633_s3 + $0x5c0] sm:$0xff]  ;;  %v5139_v47 = vld [vmem:[%s9633_s3 + $0x5b8] sm:$0xff] }
 0x213   : > { %9711 = vst [vmem:[#allocation72_spill] sm:$0xff] %v7578_v45  ;;  %v7591_v16 = vadd.f32 %v1507_v61, %v1153_v24  ;;  %v4985_v24 = vld [vmem:[%s9633_s3 + $0x1d8] sm:$0xff]  ;;  %3385 = vmatprep.subr.mxu0 %v5143_v49 }
 0x214   : > { %v1511_v21 = vpop.f32.mrf.mxu0  ;;  %2891 = vmatprep.subr.mxu1 %v4985_v24  ;;  %3386 = vmatpush1.msra.mxu0 %v5142_v7  ;;  %v7637_v24 = vpop.f32.mrf.mxu1 }
 0x215   : > { %9712 = vst [vmem:[#allocation73_spill] sm:$0xff] %v7591_v16  ;;  %v7605_v53 = vadd.f32 %v1511_v21, %v7271_v8  ;;  %3387 = vmatprep.subr.mxu0 %v5141_v52  ;;  %2892 = vmatpush1.msra.mxu1 %v4984_v10  ;;  %v1165_v21 = vadd.f32 %v7284_v41, %v7282_v18  ;;  %v4982_v18 = vld [vmem:[%s9633_s3 + $0x1c0] sm:$0xff]  ;;  %v4981_v41 = vld [vmem:[%s9633_s3 + $0x1b8] sm:$0xff] }
 0x216   : > { %v1513_v61 = vpop.f32.mrf.mxu0  ;;  %3388 = vmatpush1.msra.mxu0 %v5140_v57  ;;  %v2420_v57 = vlaneseq }
 0x217   : > { %9713 = vst [vmem:[#allocation74_spill] sm:$0xff] %v7605_v53  ;;  %v7618_v8 = vadd.f32 %v1513_v61, %v1159_v3  ;;  %3389 = vmatprep.subr.mxu0 %v5139_v47  ;;  %v5138_v3 = vld [vmem:[%s9633_s3 + $0x5b0] sm:$0xff]  ;;  %v5137_v61 = vld [vmem:[%s9633_s3 + $0x5a8] sm:$0xff]  ;;  %v5136_v47 = vld [vmem:[%s9633_s3 + $0x5a0] sm:$0xff]  ;;  %v7673_v53 = vpop.f32.mrf.mxu1 }
 0x218   : > { %v1517_v36 = vpop.f32.mrf.mxu0  ;;  %3390 = vmatpush1.msra.mxu0 %v5138_v3  ;;  %v9717_v3 = vld [vmem:[#allocation35_spill] sm:$0xff] }
 0x219   : > { %9714 = vst [vmem:[#allocation75_spill] sm:$0xff] %v7618_v8  ;;  %v7632_v49 = vadd.f32 %v1517_v36, %v7279_v38  ;;  %v4983_v38 = vld [vmem:[%s9633_s3 + $0x1c8] sm:$0xff]  ;;  %3391 = vmatprep.subr.mxu0 %v5137_v61  ;;  %v4980_v36 = vld [vmem:[%s9633_s3 + $0x1b0] sm:$0xff] }
 0x21a   : > { %v1519_v7 = vpop.f32.mrf.mxu0  ;;  %2893 = vmatprep.subr.mxu1 %v4983_v38  ;;  %3392 = vmatpush1.msra.mxu0 %v5136_v47  ;;  %v5033_v38 = vld [vmem:[%s9633_s3 + $0x358] sm:$0xff]  ;;  %v5134_v8 = vld [vmem:[%s9633_s3 + $0x590] sm:$0xff]  ;;  %v5132_v47 = vld [vmem:[%s9633_s3 + $0x580] sm:$0xff] }
 0x21b   : > { %9715 = vst [vmem:[#allocation76_spill] sm:$0xff] %v7632_v49  ;;  %v7642_v52 = vadd.f32 %v1519_v7, %v1165_v21  ;;  %v5135_v21 = vld [vmem:[%s9633_s3 + $0x598] sm:$0xff]  ;;  %v9718_v7 = vld [vmem:[#allocation36_spill] sm:$0xff]  ;;  %v9719_v49 = vld [vmem:[#allocation34_spill] sm:$0xff]  ;;  %2894 = vmatpush1.msra.mxu1 %v4982_v18 }
 0x21c   : > { %v1523_v10 = vpop.f32.mrf.mxu0  ;;  %2895 = vmatprep.subr.mxu1 %v4981_v41  ;;  %3393 = vmatprep.subr.mxu0 %v5135_v21  ;;  %v5133_v18 = vld [vmem:[%s9633_s3 + $0x588] sm:$0xff]  ;;  %v5131_v41 = vld [vmem:[%s9633_s3 + $0x578] sm:$0xff] }
 0x21d   : > { %9716 = vst [vmem:[#allocation77_spill] sm:$0xff] %v7642_v52  ;;  %v1171_v52 = vadd.f32 %v9718_v7, %v9717_v3  ;;  %v7665_v61 = vadd.f32 %v1523_v10, %v9719_v49  ;;  %v5032_v49 = vld [vmem:[%s9633_s3 + $0x350] sm:$0xff]  ;;  %2896 = vmatpush1.msra.mxu1 %v4980_v36  ;;  %3394 = vmatpush1.msra.mxu0 %v5134_v8  ;;  %v5031_v21 = vld [vmem:[%s9633_s3 + $0x348] sm:$0xff]  ;;  %v7692_v7 = vshrl.u32 %v2420_v57, 7  ;;  %v5030_v8 = vld [vmem:[%s9633_s3 + $0x340] sm:$0xff] }
 0x21e   : > { %v1525_v16 = vpop.f32.mrf.mxu0  ;;  %2907 = vmatprep.subr.mxu1 %v5033_v38  ;;  %3395 = vmatprep.subr.mxu0 %v5133_v18  ;;  %v9723_v36 = vld [vmem:[#allocation39_spill] sm:$0xff]  ;;  %v5129_v57 = vld [vmem:[%s9633_s3 + $0x568] sm:$0xff]  ;;  %v7711_v18 = vpop.f32.mrf.mxu1 }
 0x21f   : > { %9720 = vst [vmem:[#allocation35_spill] sm:$0xff] %v7665_v61  ;;  %v7681_v10 = vadd.f32 %v1525_v16, %v1171_v52  ;;  %v5130_v16 = vld [vmem:[%s9633_s3 + $0x570] sm:$0xff]  ;;  %v9724_v61 = vld [vmem:[#allocation37_spill] sm:$0xff]  ;;  %2908 = vmatpush2.msra.mxu1 %v5032_v49  ;;  %3396 = vmatpush1.msra.mxu0 %v5132_v47  ;;  %v5029_v38 = vld [vmem:[%s9633_s3 + $0x338] sm:$0xff]  ;;  %v9737_v48 = vsub.s32 0, %v7692_v7 }
 0x220   : > { %v1529_v3 = vpop.f32.mrf.mxu0  ;;  %v9722_v52 = vld [vmem:[#allocation38_spill] sm:$0xff]  ;;  %3397 = vmatprep.subr.mxu0 %v5131_v41  ;;  %2909 = vmatprep.subr.mxu1 %v5031_v21  ;;  %v5127_v41 = vld [vmem:[%s9633_s3 + $0x558] sm:$0xff]  ;;  %v5027_v21 = vld [vmem:[%s9633_s3 + $0x328] sm:$0xff] }
 0x221   : > { %9721 = vst [vmem:[#allocation36_spill] sm:$0xff] %v7681_v10  ;;  %v1177_v10 = vadd.f32 %v9723_v36, %v9722_v52  ;;  %v7703_v45 = vadd.f32 %v1529_v3, %v9724_v61  ;;  %v5128_v61 = vld [vmem:[%s9633_s3 + $0x560] sm:$0xff]  ;;  %v5028_v49 = vld [vmem:[%s9633_s3 + $0x330] sm:$0xff]  ;;  %v9727_v3 = vld [vmem:[#allocation7_spill] sm:$0xff]  ;;  %3398 = vmatpush1.msra.mxu0 %v5130_v16  ;;  %2910 = vmatpush2.msra.mxu1 %v5030_v8 }
 0x222   : > { %v1531_v35 = vpop.f32.mrf.mxu0  ;;  %v9726_v47 = vld [vmem:[#allocation6_spill] sm:$0xff]  ;;  %3399 = vmatprep.subr.mxu0 %v5129_v57  ;;  %2911 = vmatprep.subr.mxu1 %v5029_v38  ;;  %v9729_v16 = vld [vmem:[#allocation41_spill] sm:$0xff]  ;;  %v2418_v57 = vld [vmem:[%s9632_s2] sm:$0x3] }
 0x223   : > { %9725 = vst [vmem:[#allocation34_spill] sm:$0xff] %v7703_v45  ;;  %v1021_v52 = vadd.f32 %v9727_v3, %v9726_v47  ;;  %v7721_v36 = vadd.f32 %v1531_v35, %v1177_v10  ;;  %v5126_v35 = vld [vmem:[%s9633_s3 + $0x550] sm:$0xff]  ;;  %v5026_v10 = vld [vmem:[%s9633_s3 + $0x320] sm:$0xff]  ;;  %v9731_v3 = vld [vmem:[#allocation43_spill] sm:$0xff]  ;;  %3400 = vmatpush1.msra.mxu0 %v5128_v61  ;;  %2912 = vmatpush2.msra.mxu1 %v5028_v49 }
 0x224   : > { %v1535_v45 = vpop.f32.mrf.mxu0  ;;  %v9730_v8 = vld [vmem:[#allocation42_spill] sm:$0xff]  ;;  %v5125_v38 = vld [vmem:[%s9633_s3 + $0x548] sm:$0xff]  ;;  %3401 = vmatprep.subr.mxu0 %v5127_v41  ;;  %2913 = vmatprep.subr.mxu1 %v5027_v21  ;;  %v9734_v61 = vld [vmem:[#allocation8_spill] sm:$0xff]  ;;  %v7772_v40 = vrot.slane %v2418_v57, %v9737_v48 }
 0x225   : > { %9728 = vst [vmem:[#allocation38_spill] sm:$0xff] %v7721_v36  ;;  %v1183_v47 = vadd.f32 %v9730_v8, %v9729_v16  ;;  %v1541_v36 = vadd.f32 %v9731_v3, %v1021_v52  ;;  %v7740_v17 = vadd.f32 %v1535_v45, %v9732_v34  ;;  %v7751_v16 = vpop.f32.mrf.mxu1  ;;  %v5124_v34 = vld [vmem:[%s9633_s3 + $0x540] sm:$0xff]  ;;  %v5024_v45 = vld [vmem:[%s9633_s3 + $0x310] sm:$0xff]  ;;  %v9735_v49 = vld [vmem:[#allocation9_spill] sm:$0xff]  ;;  %3402 = vmatpush1.msra.mxu0 %v5126_v35 }
 0x226   : > { %v1537_v52 = vpop.f32.mrf.mxu0  ;;  %v1027_v8 = vadd.f32 %v9735_v49, %v9734_v61  ;;  %2914 = vmatpush2.msra.mxu1 %v5026_v10  ;;  %v5123_v41 = vld [vmem:[%s9633_s3 + $0x538] sm:$0xff]  ;;  %v5023_v21 = vld [vmem:[%s9633_s3 + $0x308] sm:$0xff]  ;;  %3403 = vmatprep.subr.mxu0 %v5125_v38  ;;  %v5122_v35 = vld [vmem:[%s9633_s3 + $0x530] sm:$0xff] }
 0x227   : > { %9733 = vst [vmem:[#allocation39_spill] sm:$0xff] %v7740_v17  ;;  %v7761_v3 = vadd.f32 %v1537_v52, %v1183_v47  ;;  %2915 = vmatprep.subr.mxu1 %v5025_v2  ;;  %v5022_v10 = vld [vmem:[%s9633_s3 + $0x300] sm:$0xff]  ;;  %v1952_v47 = vadd.f32 %v7320_v51, %v1541_v36  ;;  %3404 = vmatpush1.msra.mxu0 %v5124_v34  ;;  %v5121_v48 = vld [vmem:[%s9633_s3 + $0x528] sm:$0xff]  ;;  %v5021_v2 = vld [vmem:[%s9633_s3 + $0x2f8] sm:$0xff]  ;;  %v7791_v27 = vpop.f32.mrf.mxu1  ;;  %v9741_v34 = vsub.s32 1, %v7692_v7 }
 0x228   : > { %v2195_v15 = vpop.f32.mrf.mxu0  ;;  %v1543_v52 = vadd.f32 %v7324_v0, %v1027_v8  ;;  %v9738_v61 = vld [vmem:[#allocation44_spill] sm:$0xff]  ;;  %2916 = vmatpush2.msra.mxu1 %v5024_v45  ;;  %v9739_v38 = vld [vmem:[#allocation10_spill] sm:$0xff]  ;;  %v9740_v17 = vld [vmem:[#allocation11_spill] sm:$0xff]  ;;  %3405 = vmatprep.subr.mxu0 %v5123_v41 }
 0x229   : > { %9736 = vst [vmem:[#allocation37_spill] sm:$0xff] %v7761_v3  ;;  %v2362_v49 = vadd.f32 %v2195_v15, %v9738_v61  ;;  %v1033_v3 = vadd.f32 %v9740_v17, %v9739_v38  ;;  %2917 = vmatprep.subr.mxu1 %v5023_v21  ;;  %v5120_v0 = vld [vmem:[%s9633_s3 + $0x520] sm:$0xff]  ;;  %v5020_v15 = vld [vmem:[%s9633_s3 + $0x2f0] sm:$0xff]  ;;  %v7801_v45 = vrot.slane %v2418_v57, %v9741_v34  ;;  %v5119_v17 = vld [vmem:[%s9633_s3 + $0x518] sm:$0xff] }
 0x22a   : > { %v2197_v51 = vpop.f32.mrf.mxu0  ;;  %3406 = vmatpush1.msra.mxu0 %v5122_v35  ;;  %2918 = vmatpush2.msra.mxu1 %v5022_v10  ;;  %v5019_v8 = vld [vmem:[%s9633_s3 + $0x2e8] sm:$0xff]  ;;  %v5118_v57 = vld [vmem:[%s9633_s3 + $0x510] sm:$0xff]  ;;  %v1954_v35 = vadd.f32 %v7333_v31, %v1543_v52  ;;  %v5171_v61 = vld [vmem:[%s9633_s3 + $0x6b8] sm:$0xff]  ;;  %v1955_v31 = vadd.f32 %v7342_v4, %v7330_v46 }
 0x22b   : > { %v2363_v36 = vadd.f32 %v2197_v51, %v1952_v47  ;;  %v1545_v41 = vadd.f32 %v7335_v62, %v1033_v3  ;;  %3407 = vmatprep.subr.mxu0 %v5121_v48  ;;  %2919 = vmatprep.subr.mxu1 %v5021_v2  ;;  %v2430_v10 = vadd.f32 %v7772_v40, %v2362_v49  ;;  %v9742_v62 = vld [vmem:[#allocation12_spill] sm:$0xff]  ;;  %v9743_v3 = vld [vmem:[#allocation13_spill] sm:$0xff]  ;;  %v7821_v2 = vpop.f32.mrf.mxu1 }
 0x22c   : > { %v2201_v21 = vpop.f32.mrf.mxu0  ;;  %3408 = vmatpush1.msra.mxu0 %v5120_v0  ;;  %2920 = vmatpush2.msra.mxu1 %v5020_v15  ;;  %v1039_v48 = vadd.f32 %v9743_v3, %v9742_v62  ;;  %v5018_v51 = vld [vmem:[%s9633_s3 + $0x2e0] sm:$0xff]  ;;  %v5170_v0 = vld [vmem:[%s9633_s3 + $0x6b0] sm:$0xff]  ;;  %v5017_v15 = vld [vmem:[%s9633_s3 + $0x2d8] sm:$0xff] }
 0x22d   : > { %v2364_v47 = vadd.f32 %v2201_v21, %v7327_v9  ;;  %3409 = vmatprep.subr.mxu0 %v5119_v17  ;;  %2921 = vmatprep.subr.mxu1 %v5019_v8  ;;  %v2431_v52 = vadd.f32 %v7801_v45, %v2363_v36  ;;  %v1956_v46 = vadd.f32 %v7350_v29, %v1545_v41  ;;  %v5169_v34 = vld [vmem:[%s9633_s3 + $0x6a8] sm:$0xff]  ;;  %v5016_v17 = vld [vmem:[%s9633_s3 + $0x2d0] sm:$0xff]  ;;  %v5168_v8 = vld [vmem:[%s9633_s3 + $0x6a0] sm:$0xff]  ;;  %v2486_v21 = vmax.f32 %v2430_v10, 0.0  ;;  %v7858_v3 = vpop.f32.mrf.mxu1 }
 0x22e   : > { %v2203_v38 = vpop.f32.mrf.mxu0  ;;  %3410 = vmatpush1.msra.mxu0 %v5118_v57  ;;  %v1547_v4 = vadd.f32 %v7344_v60, %v1039_v48  ;;  %2922 = vmatpush2.msra.mxu1 %v5018_v51  ;;  %v5015_v41 = vld [vmem:[%s9633_s3 + $0x2c8] sm:$0xff]  ;;  %v1957_v10 = vadd.f32 %v7359_v5, %v7339_v39  ;;  %v5014_v51 = vld [vmem:[%s9633_s3 + $0x2c0] sm:$0xff]  ;;  %v5166_v39 = vld [vmem:[%s9633_s3 + $0x690] sm:$0xff] }
 0x22f   : > { %v2432_v9 = vadd.f32 %v7772_v40, %v2364_v47  ;;  %v2365_v49 = vadd.f32 %v2203_v38, %v1954_v35  ;;  %3421 = vmatprep.subr.mxu0 %v5171_v61  ;;  %2923 = vmatprep.subr.mxu1 %v5017_v15  ;;  %v5167_v35 = vld [vmem:[%s9633_s3 + $0x698] sm:$0xff]  ;;  %v9744_v47 = vld [vmem:[#allocation14_spill] sm:$0xff]  ;;  %v2487_v38 = vmax.f32 %v2431_v52, 0.0 }
 0x230   : > { %v2207_v36 = vpop.f32.mrf.mxu0  ;;  %3422 = vmatpush2.msra.mxu0 %v5170_v0  ;;  %v9745_v61 = vld [vmem:[#allocation15_spill] sm:$0xff]  ;;  %2924 = vmatpush2.msra.mxu1 %v5016_v17  ;;  %v1958_v5 = vadd.f32 %v7369_v32, %v1547_v4  ;;  %v9746_v0 = vld [vmem:[#allocation46_spill] sm:$0xff]  ;;  %v5164_v4 = vld [vmem:[%s9633_s3 + $0x680] sm:$0xff] }
 0x231   : > { %v2488_v57 = vmax.f32 %v2432_v9, 0.0  ;;  %v2433_v29 = vadd.f32 %v7801_v45, %v2365_v49  ;;  %v2366_v60 = vadd.f32 %v2207_v36, %v1955_v31  ;;  %v1045_v62 = vadd.f32 %v9745_v61, %v9744_v47  ;;  %3423 = vmatprep.subr.mxu0 %v5169_v34  ;;  %2925 = vmatprep.subr.mxu1 %v5015_v41  ;;  %v5013_v52 = vld [vmem:[%s9633_s3 + $0x2b8] sm:$0xff]  ;;  %v5012_v32 = vld [vmem:[%s9633_s3 + $0x2b0] sm:$0xff]  ;;  %v7887_v41 = vpop.f32.mrf.mxu1  ;;  %v9749_v47 = vld [vmem:[#allocation45_spill] sm:$0xff] }
 0x232   : > { %v2209_v48 = vpop.f32.mrf.mxu0  ;;  %3424 = vmatpush2.msra.mxu0 %v5168_v8  ;;  %2926 = vmatpush2.msra.mxu1 %v5014_v51  ;;  %v1959_v61 = vadd.f32 %v7376_v55, %v9749_v47  ;;  %v5160_v55 = vld [vmem:[%s9633_s3 + $0x660] sm:$0xff] }
 0x233   : > { %v2489_v31 = vmax.f32 %v2433_v29, 0.0  ;;  %v2367_v9 = vadd.f32 %v2209_v48, %v1956_v46  ;;  %v7860_v49 = vmax.f32 %v2486_v21, %v2488_v57  ;;  %v1549_v15 = vadd.f32 %v9746_v0, %v1045_v62  ;;  %3425 = vmatprep.subr.mxu0 %v5167_v35  ;;  %v5165_v46 = vld [vmem:[%s9633_s3 + $0x688] sm:$0xff]  ;;  %2927 = vmatprep.subr.mxu1 %v5013_v52  ;;  %v9747_v21 = vld [vmem:[#allocation16_spill] sm:$0xff] }
 0x234   : > { %v2213_v36 = vpop.f32.mrf.mxu0  ;;  %v2434_v34 = vadd.f32 %v7772_v40, %v2366_v60  ;;  %3426 = vmatpush2.msra.mxu0 %v5166_v39  ;;  %v9748_v57 = vld [vmem:[#allocation17_spill] sm:$0xff]  ;;  %2928 = vmatpush2.msra.mxu1 %v5012_v32  ;;  %v5163_v60 = vld [vmem:[%s9633_s3 + $0x678] sm:$0xff]  ;;  %v9750_v39 = vld [vmem:[#allocation48_spill] sm:$0xff] }
 0x235   : > { %v2368_v17 = vadd.f32 %v2213_v36, %v1957_v10  ;;  %v7877_v8 = vmax.f32 %v2487_v38, %v2489_v31  ;;  %v1051_v29 = vadd.f32 %v9748_v57, %v9747_v21  ;;  %3427 = vmatprep.subr.mxu0 %v5165_v46  ;;  %v2435_v62 = vadd.f32 %v7801_v45, %v2367_v9  ;;  %v5162_v38 = vld [vmem:[%s9633_s3 + $0x670] sm:$0xff]  ;;  %v5161_v31 = vld [vmem:[%s9633_s3 + $0x668] sm:$0xff]  ;;  %v7915_v57 = vpop.f32.mrf.mxu1 }
 0x236   : > { %v2215_v35 = vpop.f32.mrf.mxu0  ;;  %3428 = vmatpush2.msra.mxu0 %v5164_v4  ;;  %v1960_v51 = vadd.f32 %v7383_v58, %v1549_v15  ;;  %v2490_v9 = vmax.f32 %v2434_v34, 0.0  ;;  %v9751_v32 = vld [vmem:[#allocation18_spill] sm:$0xff]  ;;  %v9752_v58 = vld [vmem:[#allocation19_spill] sm:$0xff] }
 0x237   : > { %v2436_v10 = vadd.f32 %v7772_v40, %v2368_v17  ;;  %v2369_v48 = vadd.f32 %v2215_v35, %v1958_v5  ;;  %v1551_v0 = vadd.f32 %v9750_v39, %v1051_v29  ;;  %3429 = vmatprep.subr.mxu0 %v5163_v60  ;;  %v5159_v17 = vld [vmem:[%s9633_s3 + $0x658] sm:$0xff]  ;;  %v1057_v15 = vadd.f32 %v9752_v58, %v9751_v32  ;;  %v9755_v39 = vld [vmem:[#allocation21_spill] sm:$0xff]  ;;  %v5154_v58 = vld [vmem:[%s9633_s3 + $0x630] sm:$0xff] }
 0x238   : > { %v2219_v36 = vpop.f32.mrf.mxu0  ;;  %3430 = vmatpush2.msra.mxu0 %v5162_v38  ;;  %v9753_v4 = vld [vmem:[#allocation47_spill] sm:$0xff]  ;;  %v2491_v34 = vmax.f32 %v2435_v62, 0.0 }
 0x239   : > { %v2492_v5 = vmax.f32 %v2436_v10, 0.0  ;;  %v2437_v52 = vadd.f32 %v7801_v45, %v2369_v48  ;;  %v2370_v46 = vadd.f32 %v2219_v36, %v1959_v61  ;;  %v1961_v21 = vadd.f32 %v7390_v44, %v9753_v4  ;;  %3431 = vmatprep.subr.mxu0 %v5161_v31  ;;  %v5158_v61 = vld [vmem:[%s9633_s3 + $0x650] sm:$0xff]  ;;  %v5157_v44 = vld [vmem:[%s9633_s3 + $0x648] sm:$0xff]  ;;  %v7937_v36 = vpop.f32.mrf.mxu1 }
 0x23a   : > { %v2221_v29 = vpop.f32.mrf.mxu0  ;;  %3432 = vmatpush2.msra.mxu0 %v5160_v55  ;;  %v1962_v10 = vadd.f32 %v7403_v14, %v1551_v0  ;;  %v1553_v48 = vadd.f32 %v7371_v54, %v1057_v15  ;;  %v5156_v54 = vld [vmem:[%s9633_s3 + $0x640] sm:$0xff]  ;;  %v5153_v15 = vld [vmem:[%s9633_s3 + $0x628] sm:$0xff] }
 0x23b   : > { %v2493_v35 = vmax.f32 %v2437_v52, 0.0  ;;  %v2371_v60 = vadd.f32 %v2221_v29, %v1960_v51  ;;  %v7917_v47 = vmax.f32 %v2490_v9, %v2492_v5  ;;  %3433 = vmatprep.subr.mxu0 %v5159_v17  ;;  %v2438_v62 = vadd.f32 %v7772_v40, %v2370_v46  ;;  %v9754_v14 = vld [vmem:[#allocation20_spill] sm:$0xff]  ;;  %v5155_v9 = vld [vmem:[%s9633_s3 + $0x638] sm:$0xff]  ;;  %v9756_v5 = vld [vmem:[#allocation49_spill] sm:$0xff] }
 0x23c   : > { %v2225_v38 = vpop.f32.mrf.mxu0  ;;  %3434 = vmatpush2.msra.mxu0 %v5158_v61  ;;  %v1063_v0 = vadd.f32 %v9755_v39, %v9754_v14  ;;  %v1963_v52 = vadd.f32 %v7416_v6, %v9756_v5  ;;  %v1964_v4 = vadd.f32 %v7429_v63, %v1553_v48  ;;  %v5152_v61 = vld [vmem:[%s9633_s3 + $0x620] sm:$0xff]  ;;  %v9759_v48 = vld [vmem:[#allocation50_spill] sm:$0xff] }
 0x23d   : > { %v2372_v31 = vadd.f32 %v2225_v38, %v1961_v21  ;;  %2602 = vrot.lane.b32.xlu0 %v7917_v47, %s5497_s27  ;;  %v7930_v51 = vmax.f32 %v2491_v34, %v2493_v35  ;;  %3435 = vmatprep.subr.mxu0 %v5157_v44  ;;  %v2439_v46 = vadd.f32 %v7801_v45, %v2371_v60  ;;  %v2494_v6 = vmax.f32 %v2438_v62, 0.0  ;;  %v9758_v38 = vld [vmem:[#allocation23_spill] sm:$0xff]  ;;  %v7964_v44 = vpop.f32.mrf.mxu1 }
 0x23e   : > { %v2227_v55 = vpop.f32.mrf.mxu0  ;;  %3436 = vmatpush2.msra.mxu0 %v5156_v54  ;;  %v1555_v21 = vadd.f32 %v7378_v22, %v1063_v0  ;;  %v1965_v22 = vadd.f32 %v7442_v19, %v9759_v48 }
 0x23f   : > { %v2440_v17 = vadd.f32 %v7772_v40, %v2372_v31  ;;  %v2373_v32 = vadd.f32 %v2227_v55, %v1962_v10  ;;  %3437 = vmatprep.subr.mxu0 %v5155_v9  ;;  %v9757_v10 = vld [vmem:[#allocation22_spill] sm:$0xff]  ;;  %v5151_v31 = vld [vmem:[%s9633_s3 + $0x618] sm:$0xff]  ;;  %v2495_v54 = vmax.f32 %v2439_v46, 0.0 }
 0x240   : > { %v2231_v29 = vpop.f32.mrf.mxu0  ;;  %3438 = vmatpush2.msra.mxu0 %v5154_v58  ;;  %v1069_v63 = vadd.f32 %v9758_v38, %v9757_v10  ;;  %v5150_v55 = vld [vmem:[%s9633_s3 + $0x610] sm:$0xff]  ;;  %v1966_v19 = vadd.f32 %v7457_v1, %v1555_v21  ;;  %v9761_v58 = vld [vmem:[#allocation25_spill] sm:$0xff]  ;;  %v9762_v1 = vld [vmem:[#allocation51_spill] sm:$0xff] }
 0x241   : > { %v2496_v34 = vmax.f32 %v2440_v17, 0.0  ;;  %v2441_v35 = vadd.f32 %v7801_v45, %v2373_v32  ;;  %v2374_v60 = vadd.f32 %v2231_v29, %v1963_v52  ;;  %2604 = vrot.lane.b32.xlu0 %v7930_v51, %s5497_s27  ;;  %3439 = vmatprep.subr.mxu0 %v5153_v15  ;;  %v9760_v32 = vld [vmem:[#allocation24_spill] sm:$0xff] }
 0x242   : > { %v2233_v62 = vpop.f32.mrf.mxu0  ;;  %3440 = vmatpush2.msra.mxu0 %v5152_v61  ;;  %v1557_v9 = vadd.f32 %v7385_v12, %v1069_v63  ;;  %v1075_v15 = vadd.f32 %v9761_v58, %v9760_v32  ;;  %v1967_v12 = vadd.f32 %v7472_v23, %v9762_v1  ;;  %v2756_v23 = vld [vmem:[%s9633_s3 + $0xf8] sm:$0xff] }
 0x243   : > { %v2497_v14 = vmax.f32 %v2441_v35, 0.0  ;;  %v2375_v39 = vadd.f32 %v2233_v62, %v1964_v4  ;;  %v7969_v0 = vmax.f32 %v2494_v6, %v2496_v34  ;;  %3441 = vmatprep.subr.mxu0 %v5151_v31  ;;  %v2442_v52 = vadd.f32 %v7772_v40, %v2374_v60  ;;  %v7983_v4 = vpop.f32.mrf.mxu1  ;;  %v9763_v60 = vld [vmem:[#allocation53_spill] sm:$0xff]  ;;  %v9764_v62 = vld [vmem:[#allocation26_spill] sm:$0xff]  ;;  %v9765_v31 = vld [vmem:[#allocation27_spill] sm:$0xff]  ;;  %2993 = vmatprep.subr.mxu1 %v2756_v23 }
 0x244   : > { %v2237_v5 = vpop.f32.mrf.mxu0  ;;  %3442 = vmatpush2.msra.mxu0 %v5150_v55  ;;  %v1968_v35 = vadd.f32 %v7487_v28, %v1557_v9  ;;  %v1559_v61 = vadd.f32 %v9763_v60, %v1075_v15  ;;  %v9770_v60 = vld [vmem:[#allocation54_spill] sm:$0xff] }
 0x245   : > { %v2376_v17 = vadd.f32 %v2237_v5, %v1965_v22  ;;  %2606 = vrot.lane.b32.xlu1 %v7969_v0, %s5497_s27  ;;  %v7979_v46 = vmax.f32 %v2495_v54, %v2497_v14  ;;  %v2443_v21 = vadd.f32 %v7801_v45, %v2375_v39  ;;  %v2498_v38 = vmax.f32 %v2442_v52, 0.0  ;;  %v9766_v14 = vld [vmem:[#allocation52_spill] sm:$0xff]  ;;  %v8001_v39 = vpop.f32.mrf.mxu1 }
 0x246   : > { %v2239_v29 = vpop.f32.mrf.mxu0  ;;  %v1081_v54 = vadd.f32 %v9765_v31, %v9764_v62  ;;  %v1969_v28 = vadd.f32 %v7499_v56, %v9766_v14  ;;  %v1970_v15 = vadd.f32 %v7514_v30, %v1559_v61 }
 0x247   : > { %v2444_v6 = vadd.f32 %v7772_v40, %v2376_v17  ;;  %v2377_v34 = vadd.f32 %v2239_v29, %v1966_v19  ;;  %v2499_v19 = vmax.f32 %v2443_v21, 0.0  ;;  %v9767_v17 = vld [vmem:[#allocation55_spill] sm:$0xff] }
 0x248   : > { %v2243_v10 = vpop.f32.mrf.mxu0  ;;  %v1561_v32 = vadd.f32 %v9767_v17, %v1081_v54 }
 0x249   : > { %v2500_v63 = vmax.f32 %v2444_v6, 0.0  ;;  %v2445_v48 = vadd.f32 %v7801_v45, %v2377_v34  ;;  %v2378_v22 = vadd.f32 %v2243_v10, %v1967_v12  ;;  %2608 = vrot.lane.b32.xlu1 %v7979_v46, %s5497_s27  ;;  %v9768_v12 = vld [vmem:[#allocation28_spill] sm:$0xff]  ;;  %v9769_v6 = vld [vmem:[#allocation29_spill] sm:$0xff]  ;;  %v8014_v34 = vpop.f32.mrf.mxu1  ;;  %v1971_v10 = vadd.f32 %v7529_v37, %v9770_v60  ;;  %v9773_v37 = vld [vmem:[#allocation31_spill] sm:$0xff] }
 0x24a   : > { %v2245_v55 = vpop.f32.mrf.mxu0  ;;  %v1087_v21 = vadd.f32 %v9769_v6, %v9768_v12  ;;  %v9776_v60 = vld [vmem:[#allocation32_spill] sm:$0xff] }
 0x24b   : > { %v2501_v9 = vmax.f32 %v2445_v48, 0.0  ;;  %v2379_v5 = vadd.f32 %v2245_v55, %v1968_v35  ;;  %v8003_v52 = vmax.f32 %v2498_v38, %v2500_v63  ;;  %v2446_v29 = vadd.f32 %v7772_v40, %v2378_v22  ;;  %v9771_v48 = vld [vmem:[#allocation57_spill] sm:$0xff] }
 0x24c   : > { %v2249_v58 = vpop.f32.mrf.mxu0  ;;  %v1972_v63 = vadd.f32 %v7544_v33, %v1561_v32  ;;  %v1563_v22 = vadd.f32 %v9771_v48, %v1087_v21 }
 0x24d   : > { %v2380_v1 = vadd.f32 %v2249_v58, %v1969_v28  ;;  %2610 = vrot.lane.b32.xlu0 %v8003_v52, %s5497_s27  ;;  %v8010_v56 = vmax.f32 %v2499_v19, %v2501_v9  ;;  %v2447_v38 = vadd.f32 %v7801_v45, %v2379_v5  ;;  %v2502_v62 = vmax.f32 %v2446_v29, 0.0  ;;  %v9772_v28 = vld [vmem:[#allocation30_spill] sm:$0xff]  ;;  %v9774_v19 = vld [vmem:[#allocation56_spill] sm:$0xff]  ;;  %v8029_v5 = vpop.f32.mrf.mxu1 }
 0x24e   : > { %v2251_v35 = vpop.f32.mrf.mxu0  ;;  %v1093_v55 = vadd.f32 %v9773_v37, %v9772_v28  ;;  %v1973_v9 = vadd.f32 %v7559_v11, %v9774_v19  ;;  %v1974_v6 = vadd.f32 %v7586_v13, %v1563_v22 }
 0x24f   : > { %v2448_v30 = vadd.f32 %v7772_v40, %v2380_v1  ;;  %v2381_v61 = vadd.f32 %v2251_v35, %v1970_v15  ;;  %2612 = vrot.lane.b32.xlu1 %v8010_v56, %s5497_s27  ;;  %v2503_v58 = vmax.f32 %v2447_v38, 0.0  ;;  %v9775_v1 = vld [vmem:[#allocation59_spill] sm:$0xff] }
 0x250   : > { %v2255_v23 = vpop.f32.mrf.mxu0  ;;  %v1565_v29 = vadd.f32 %v9775_v1, %v1093_v55 }
 0x251   : > { %v2504_v31 = vmax.f32 %v2448_v30, 0.0  ;;  %v2449_v54 = vadd.f32 %v7801_v45, %v2381_v61  ;;  %v2382_v14 = vadd.f32 %v2255_v23, %v1971_v10  ;;  %v9777_v10 = vld [vmem:[#allocation33_spill] sm:$0xff]  ;;  %v8042_v30 = vpop.f32.mrf.mxu1 }
 0x252   : > { %v2257_v17 = vpop.f32.mrf.mxu0  ;;  %v1099_v38 = vadd.f32 %v9777_v10, %v9776_v60  ;;  %v9781_v10 = vld [vmem:[#allocation62_spill] sm:$0xff] }
 0x253   : > { %v2505_v15 = vmax.f32 %v2449_v54, 0.0  ;;  %v2383_v33 = vadd.f32 %v2257_v17, %v1972_v63  ;;  %v8031_v32 = vmax.f32 %v2502_v62, %v2504_v31  ;;  %v2450_v21 = vadd.f32 %v7772_v40, %v2382_v14  ;;  %v9778_v63 = vld [vmem:[#allocation58_spill] sm:$0xff]  ;;  %v9779_v31 = vld [vmem:[#allocation61_spill] sm:$0xff]  ;;  %v8055_v17 = vpop.f32.mrf.mxu1 }
 0x254   : > { %v2261_v12 = vpop.f32.mrf.mxu0  ;;  %v1975_v48 = vadd.f32 %v7613_v26, %v9778_v63  ;;  %v1976_v62 = vadd.f32 %v7637_v24, %v1565_v29  ;;  %v1567_v54 = vadd.f32 %v9779_v31, %v1099_v38  ;;  %v1979_v38 = vadd.f32 %v7751_v16, %v9781_v10 }
 0x255   : > { %v2384_v35 = vadd.f32 %v2261_v12, %v1973_v9  ;;  %2614 = vrot.lane.b32.xlu0 %v8031_v32, %s5497_s27  ;;  %v8038_v11 = vmax.f32 %v2503_v58, %v2505_v15  ;;  %v2451_v23 = vadd.f32 %v7801_v45, %v2383_v33  ;;  %v2506_v28 = vmax.f32 %v2450_v21, 0.0  ;;  %v9780_v9 = vld [vmem:[#allocation60_spill] sm:$0xff] }
 0x256   : > { %v2263_v61 = vpop.f32.mrf.mxu0  ;;  %v1977_v26 = vadd.f32 %v7673_v53, %v9780_v9  ;;  %v1978_v29 = vadd.f32 %v7711_v18, %v1567_v54  ;;  %v8065_v53 = vpop.f32.mrf.mxu1  ;;  %v1980_v18 = vadd.f32 %v7791_v27, %v7459_v20  ;;  %v1981_v16 = vadd.f32 %v7821_v2, %v7464_v42 }
 0x257   : > { %v2452_v13 = vadd.f32 %v7772_v40, %v2384_v35  ;;  %v2385_v22 = vadd.f32 %v2263_v61, %v1974_v6  ;;  %2616 = vrot.lane.b32.xlu1 %v8038_v11, %s5497_s27  ;;  %v2507_v15 = vmax.f32 %v2451_v23, 0.0  ;;  %v1982_v20 = vadd.f32 %v7858_v3, %v7474_v43 }
 0x258   : > { %v2267_v14 = vpop.f32.mrf.mxu0  ;;  %v8078_v54 = vpop.f32.mrf.mxu1  ;;  %v1984_v43 = vadd.f32 %v7915_v57, %v7489_v50  ;;  %v1986_v50 = vadd.f32 %v7964_v44, %v7501_v59  ;;  %v9784_v59 = vld [vmem:[#allocation65_spill] sm:$0xff] }
 0x259   : > { %v2508_v37 = vmax.f32 %v2452_v13, 0.0  ;;  %v2453_v55 = vadd.f32 %v7801_v45, %v2385_v22  ;;  %v2386_v19 = vadd.f32 %v2267_v14, %v1975_v48  ;;  %v1988_v44 = vadd.f32 %v8001_v39, %v9784_v59 }
 0x25a   : > { %v2269_v58 = vpop.f32.mrf.mxu0  ;;  %v8089_v42 = vpop.f32.mrf.mxu1 }
 0x25b   : > { %v2509_v33 = vmax.f32 %v2453_v55, 0.0  ;;  %v2387_v1 = vadd.f32 %v2269_v58, %v1976_v62  ;;  %v8057_v12 = vmax.f32 %v2506_v28, %v2508_v37  ;;  %v2454_v6 = vadd.f32 %v7772_v40, %v2386_v19 }
 0x25c   : > { %v2273_v24 = vpop.f32.mrf.mxu0 }
 0x25d   : > { %v2388_v21 = vadd.f32 %v2273_v24, %v1977_v26  ;;  %2618 = vrot.lane.b32.xlu0 %v8057_v12, %s5497_s27  ;;  %v8063_v35 = vmax.f32 %v2507_v15, %v2509_v33  ;;  %v2455_v61 = vadd.f32 %v7801_v45, %v2387_v1  ;;  %v2510_v13 = vmax.f32 %v2454_v6, 0.0  ;;  %v9782_v15 = vld [vmem:[#allocation63_spill] sm:$0xff] }
 0x25e   : > { %v2275_v60 = vpop.f32.mrf.mxu0  ;;  %v1983_v33 = vadd.f32 %v7887_v41, %v9782_v15  ;;  %v1985_v41 = vadd.f32 %v7937_v36, %v7494_v25 }
 0x25f   : > { %v2456_v63 = vadd.f32 %v7772_v40, %v2388_v21  ;;  %v2389_v48 = vadd.f32 %v2275_v60, %v1978_v29  ;;  %2620 = vrot.lane.b32.xlu1 %v8063_v35, %s5497_s27  ;;  %v2511_v28 = vmax.f32 %v2455_v61, 0.0 }
 0x260   : > { %v2279_v23 = vpop.f32.mrf.mxu0 }
 0x261   : > { %v2512_v22 = vmax.f32 %v2456_v63, 0.0  ;;  %v2457_v62 = vadd.f32 %v7801_v45, %v2389_v48  ;;  %v2390_v31 = vadd.f32 %v2279_v23, %v1979_v38  ;;  %v8102_v38 = vpop.f32.mrf.mxu1 }
 0x262   : > { %v2281_v14 = vpop.f32.mrf.mxu0 }
 0x263   : > { %v2513_v37 = vmax.f32 %v2457_v62, 0.0  ;;  %v2391_v55 = vadd.f32 %v2281_v14, %v1980_v18  ;;  %v8080_v19 = vmax.f32 %v2510_v13, %v2512_v22  ;;  %v2458_v27 = vadd.f32 %v7772_v40, %v2390_v31  ;;  %v8113_v25 = vpop.f32.mrf.mxu1  ;;  %v9783_v31 = vld [vmem:[#allocation64_spill] sm:$0xff] }
 0x264   : > { %v2285_v9 = vpop.f32.mrf.mxu0 }
 0x265   : > { %v2392_v26 = vadd.f32 %v2285_v9, %v1981_v16  ;;  %2622 = vrot.lane.b32.xlu0 %v8080_v19, %s5497_s27  ;;  %v8087_v58 = vmax.f32 %v2511_v28, %v2513_v37  ;;  %v2459_v1 = vadd.f32 %v7801_v45, %v2391_v55  ;;  %v2514_v6 = vmax.f32 %v2458_v27, 0.0  ;;  %v1924_v15 = vpop.f32.mrf.mxu1 }
 0x266   : > { %v2287_v2 = vpop.f32.mrf.mxu0  ;;  %v1987_v16 = vadd.f32 %v7983_v4, %v9783_v31 }
 0x267   : > { %v2460_v24 = vadd.f32 %v7772_v40, %v2392_v26  ;;  %v2393_v29 = vadd.f32 %v2287_v2, %v1982_v20  ;;  %2624 = vrot.lane.b32.xlu1 %v8087_v58, %s5497_s27  ;;  %v2515_v63 = vmax.f32 %v2459_v1, 0.0  ;;  %v9785_v2 = vld [vmem:[#allocation66_spill] sm:$0xff] }
 0x268   : > { %v2291_v3 = vpop.f32.mrf.mxu0  ;;  %v1989_v4 = vadd.f32 %v8014_v34, %v9785_v2  ;;  %v1928_v34 = vpop.f32.mrf.mxu1 }
 0x269   : > { %v2516_v21 = vmax.f32 %v2460_v24, 0.0  ;;  %v2461_v60 = vadd.f32 %v7801_v45, %v2393_v29  ;;  %v2394_v10 = vadd.f32 %v2291_v3, %v1983_v33 }
 0x26a   : > { %v2293_v61 = vpop.f32.mrf.mxu0 }
 0x26b   : > { %v2517_v48 = vmax.f32 %v2461_v60, 0.0  ;;  %v2395_v18 = vadd.f32 %v2293_v61, %v1984_v43  ;;  %v8104_v23 = vmax.f32 %v2514_v6, %v2516_v21  ;;  %v2462_v57 = vadd.f32 %v7772_v40, %v2394_v10  ;;  %v9786_v6 = vld [vmem:[#allocation67_spill] sm:$0xff]  ;;  %v9787_v61 = vld [vmem:[#allocation68_spill] sm:$0xff] }
 0x26c   : > { %v2297_v13 = vpop.f32.mrf.mxu0  ;;  %v1990_v39 = vadd.f32 %v8029_v5, %v9786_v6  ;;  %v9788_v5 = vld [vmem:[#allocation69_spill] sm:$0xff] }
 0x26d   : > { %v2396_v22 = vadd.f32 %v2297_v13, %v1985_v41  ;;  %2626 = vrot.lane.b32.xlu0 %v8104_v23, %s5497_s27  ;;  %v8111_v62 = vmax.f32 %v2515_v63, %v2517_v48  ;;  %v2463_v14 = vadd.f32 %v7801_v45, %v2395_v18  ;;  %v2518_v9 = vmax.f32 %v2462_v57, 0.0 }
 0x26e   : > { %v2299_v36 = vpop.f32.mrf.mxu0  ;;  %v1991_v63 = vadd.f32 %v8042_v30, %v9787_v61 }
 0x26f   : > { %v2464_v28 = vadd.f32 %v7772_v40, %v2396_v22  ;;  %v2397_v37 = vadd.f32 %v2299_v36, %v1986_v50  ;;  %2628 = vrot.lane.b32.xlu1 %v8111_v62, %s5497_s27  ;;  %v2519_v1 = vmax.f32 %v2463_v14, 0.0  ;;  %v1992_v50 = vadd.f32 %v8055_v17, %v9788_v5  ;;  %v9789_v14 = vld [vmem:[#allocation70_spill] sm:$0xff] }
 0x270   : > { %v2303_v55 = vpop.f32.mrf.mxu0  ;;  %v1993_v30 = vadd.f32 %v8065_v53, %v9789_v14 }
 0x271   : > { %v2520_v20 = vmax.f32 %v2464_v28, 0.0  ;;  %v2465_v27 = vadd.f32 %v7801_v45, %v2397_v37  ;;  %v2398_v26 = vadd.f32 %v2303_v55, %v1987_v16  ;;  %v1930_v28 = vpop.f32.mrf.mxu1 }
 0x272   : > { %v2305_v33 = vpop.f32.mrf.mxu0 }
 0x273   : > { %v2521_v24 = vmax.f32 %v2465_v27, 0.0  ;;  %v2399_v29 = vadd.f32 %v2305_v33, %v1988_v44  ;;  %v8126_v43 = vmax.f32 %v2518_v9, %v2520_v20  ;;  %v2466_v21 = vadd.f32 %v7772_v40, %v2398_v26  ;;  %v9790_v27 = vld [vmem:[#allocation71_spill] sm:$0xff]  ;;  %v1934_v53 = vpop.f32.mrf.mxu1 }
 0x274   : > { %v2309_v3 = vpop.f32.mrf.mxu0  ;;  %v1994_v17 = vadd.f32 %v8078_v54, %v9790_v27  ;;  %v9792_v54 = vld [vmem:[#allocation73_spill] sm:$0xff] }
 0x275   : > { %v2400_v60 = vadd.f32 %v2309_v3, %v1989_v4  ;;  %2630 = vrot.lane.b32.xlu0 %v8126_v43, %s5497_s27  ;;  %v8133_v10 = vmax.f32 %v2519_v1, %v2521_v24  ;;  %v2467_v48 = vadd.f32 %v7801_v45, %v2399_v29  ;;  %v2522_v22 = vmax.f32 %v2466_v21, 0.0  ;;  %v9791_v1 = vld [vmem:[#allocation72_spill] sm:$0xff] }
 0x276   : > { %v2311_v41 = vpop.f32.mrf.mxu0  ;;  %v1995_v24 = vadd.f32 %v8089_v42, %v9791_v1 }
 0x277   : > { %v2468_v18 = vadd.f32 %v7772_v40, %v2400_v60  ;;  %v2401_v13 = vadd.f32 %v2311_v41, %v1990_v39  ;;  %2632 = vrot.lane.b32.xlu1 %v8133_v10, %s5497_s27  ;;  %v2523_v59 = vmax.f32 %v2467_v48, 0.0  ;;  %v1996_v39 = vadd.f32 %v8102_v38, %v9792_v54  ;;  %v9793_v48 = vld [vmem:[#allocation74_spill] sm:$0xff] }
 0x278   : > { %v2315_v57 = vpop.f32.mrf.mxu0  ;;  %v1997_v42 = vadd.f32 %v8113_v25, %v9793_v48 }
 0x279   : > { %v2524_v36 = vmax.f32 %v2468_v18, 0.0  ;;  %v2469_v31 = vadd.f32 %v7801_v45, %v2401_v13  ;;  %v2402_v16 = vadd.f32 %v2315_v57, %v1991_v63  ;;  %v1936_v18 = vpop.f32.mrf.mxu1 }
 0x27a   : > { %v2317_v37 = vpop.f32.mrf.mxu0 }
 0x27b   : > { %v2525_v44 = vmax.f32 %v2469_v31, 0.0  ;;  %v2403_v55 = vadd.f32 %v2317_v37, %v1992_v50  ;;  %v8146_v9 = vmax.f32 %v2522_v22, %v2524_v36  ;;  %v2470_v26 = vadd.f32 %v7772_v40, %v2402_v16  ;;  %v9794_v31 = vld [vmem:[#allocation75_spill] sm:$0xff]  ;;  %v1940_v37 = vpop.f32.mrf.mxu1 }
 0x27c   : > { %v2321_v20 = vpop.f32.mrf.mxu0  ;;  %v1998_v16 = vadd.f32 %v1924_v15, %v9794_v31  ;;  %v9796_v15 = vld [vmem:[#allocation77_spill] sm:$0xff] }
 0x27d   : > { %v2404_v2 = vadd.f32 %v2321_v20, %v1993_v30  ;;  %2634 = vrot.lane.b32.xlu0 %v8146_v9, %s5497_s27  ;;  %v8153_v4 = vmax.f32 %v2523_v59, %v2525_v44  ;;  %v2471_v29 = vadd.f32 %v7801_v45, %v2403_v55  ;;  %v2526_v60 = vmax.f32 %v2470_v26, 0.0  ;;  %v9795_v59 = vld [vmem:[#allocation76_spill] sm:$0xff] }
 0x27e   : > { %v2323_v33 = vpop.f32.mrf.mxu0  ;;  %v1999_v44 = vadd.f32 %v1928_v34, %v9795_v59  ;;  %v9797_v34 = vld [vmem:[#allocation35_spill] sm:$0xff] }
 0x27f   : > { %v2472_v3 = vadd.f32 %v7772_v40, %v2404_v2  ;;  %v2405_v6 = vadd.f32 %v2323_v33, %v1994_v17  ;;  %2636 = vrot.lane.b32.xlu1 %v8153_v4, %s5497_s27  ;;  %v2527_v5 = vmax.f32 %v2471_v29, 0.0  ;;  %v2000_v17 = vadd.f32 %v1930_v28, %v9796_v15 }
 0x280   : > { %v2327_v21 = vpop.f32.mrf.mxu0  ;;  %v2001_v29 = vadd.f32 %v1934_v53, %v9797_v34 }
 0x281   : > { %v2528_v41 = vmax.f32 %v2472_v3, 0.0  ;;  %v2473_v61 = vadd.f32 %v7801_v45, %v2405_v6  ;;  %v2406_v63 = vadd.f32 %v2327_v21, %v1995_v24  ;;  %v1942_v3 = vpop.f32.mrf.mxu1 }
 0x282   : > { %v2329_v13 = vpop.f32.mrf.mxu0 }
 0x283   : > { %v2529_v50 = vmax.f32 %v2473_v61, 0.0  ;;  %v2407_v57 = vadd.f32 %v2329_v13, %v1996_v39  ;;  %v8166_v22 = vmax.f32 %v2526_v60, %v2528_v41  ;;  %v2474_v38 = vadd.f32 %v7772_v40, %v2406_v63  ;;  %v9798_v41 = vld [vmem:[#allocation36_spill] sm:$0xff] }
 0x284   : > { %v2333_v36 = vpop.f32.mrf.mxu0  ;;  %v2002_v61 = vadd.f32 %v1936_v18, %v9798_v41  ;;  %v9800_v18 = vld [vmem:[#allocation38_spill] sm:$0xff] }
 0x285   : > { %v2408_v14 = vadd.f32 %v2333_v36, %v1997_v42  ;;  %2638 = vrot.lane.b32.xlu0 %v8166_v22, %s5497_s27  ;;  %v8172_v30 = vmax.f32 %v2527_v5, %v2529_v50  ;;  %v2475_v55 = vadd.f32 %v7801_v45, %v2407_v57  ;;  %v2530_v2 = vmax.f32 %v2474_v38, 0.0  ;;  %v1946_v42 = vpop.f32.mrf.mxu1  ;;  %v9799_v5 = vld [vmem:[#allocation34_spill] sm:$0xff] }
 0x286   : > { %v2335_v25 = vpop.f32.mrf.mxu0  ;;  %v2003_v50 = vadd.f32 %v1940_v37, %v9799_v5 }
 0x287   : > { %v2476_v20 = vadd.f32 %v7772_v40, %v2408_v14  ;;  %v2409_v27 = vadd.f32 %v2335_v25, %v1998_v16  ;;  %2640 = vrot.lane.b32.xlu1 %v8172_v30, %s5497_s27  ;;  %v2531_v54 = vmax.f32 %v2475_v55, 0.0  ;;  %v2004_v16 = vadd.f32 %v1942_v3, %v9800_v18  ;;  %v9801_v55 = vld [vmem:[#allocation39_spill] sm:$0xff] }
 0x288   : > { %v2339_v26 = vpop.f32.mrf.mxu0 }
 0x289   : > { %v2532_v33 = vmax.f32 %v2476_v20, 0.0  ;;  %v2477_v1 = vadd.f32 %v7801_v45, %v2409_v27  ;;  %v2410_v24 = vadd.f32 %v2339_v26, %v1999_v44  ;;  %2598 = vrot.lane.b32.xlu0 %v7860_v49, %s5497_s27  ;;  %v2005_v20 = vadd.f32 %v1946_v42, %v9801_v55  ;;  %v1948_v27 = vpop.f32.mrf.mxu1  ;;  %v2748_v55 = vld [vmem:[%s9633_s3 + $0xb8] sm:$0xff] }
 0x28a   : > { %v2341_v6 = vpop.f32.mrf.mxu0 }
 0x28b   : > { %v2533_v39 = vmax.f32 %v2477_v1, 0.0  ;;  %v2411_v21 = vadd.f32 %v2341_v6, %v2000_v17  ;;  %2600 = vrot.lane.b32.xlu1 %v7877_v8, %s5497_s27  ;;  %v8186_v28 = vmax.f32 %v2530_v2, %v2532_v33  ;;  %v2478_v63 = vadd.f32 %v7772_v40, %v2410_v24  ;;  %v9802_v1 = vld [vmem:[#allocation37_spill] sm:$0xff] }
 0x28c   : > { %v2345_v60 = vpop.f32.mrf.mxu0  ;;  %v2006_v24 = vadd.f32 %v1948_v27, %v9802_v1  ;;  %v2747_v27 = vld [vmem:[%s9633_s3 + $0xb0] sm:$0xff] }
 0x28d   : > { %v2412_v48 = vadd.f32 %v2345_v60, %v2001_v29  ;;  %2642 = vrot.lane.b32.xlu0 %v8186_v28, %s5497_s27  ;;  %v8192_v53 = vmax.f32 %v2531_v54, %v2533_v39  ;;  %v2479_v57 = vadd.f32 %v7801_v45, %v2411_v21  ;;  %v2534_v14 = vmax.f32 %v2478_v63, 0.0 }
 0x28e   : > { %v2347_v13 = vpop.f32.mrf.mxu0 }
 0x28f   : > { %v2480_v36 = vadd.f32 %v7772_v40, %v2412_v48  ;;  %v2413_v31 = vadd.f32 %v2347_v13, %v2002_v61  ;;  %2644 = vrot.lane.b32.xlu1 %v8192_v53, %s5497_s27  ;;  %v2535_v15 = vmax.f32 %v2479_v57, 0.0 }
 0x290   : > { %v2351_v38 = vpop.f32.mrf.mxu0 }
 0x291   : > { %v2536_v25 = vmax.f32 %v2480_v36, 0.0  ;;  %v2481_v59 = vadd.f32 %v7801_v45, %v2413_v31  ;;  %v2414_v44 = vadd.f32 %v2351_v38, %v2003_v50  ;;  %v2755_v36 = vld [vmem:[%s9633_s3 + $0xf0] sm:$0xff]  ;;  %v2754_v31 = vld [vmem:[%s9633_s3 + $0xe8] sm:$0xff] }
 0x292   : > { %v2353_v37 = vpop.f32.mrf.mxu0  ;;  %v2750_v38 = vld [vmem:[%s9633_s3 + $0xc8] sm:$0xff] }
 0x293   : > { %v2537_v17 = vmax.f32 %v2481_v59, 0.0  ;;  %v2415_v26 = vadd.f32 %v2353_v37, %v2004_v16  ;;  %v8202_v2 = vmax.f32 %v2534_v14, %v2536_v25  ;;  %v2482_v34 = vadd.f32 %v7772_v40, %v2414_v44  ;;  %v2751_v16 = vld [vmem:[%s9633_s3 + $0xd0] sm:$0xff]  ;;  %v2749_v25 = vld [vmem:[%s9633_s3 + $0xc0] sm:$0xff]  ;;  %v2744_v37 = vld [vmem:[%s9633_s3 + $0x98] sm:$0xff] }
 0x294   : > { %v2357_v33 = vpop.f32.mrf.mxu0 }
 0x295   : > { %v2416_v29 = vadd.f32 %v2357_v33, %v2005_v20  ;;  %2646 = vrot.lane.b32.xlu0 %v8202_v2, %s5497_s27  ;;  %v8208_v3 = vmax.f32 %v2535_v15, %v2537_v17  ;;  %v2483_v54 = vadd.f32 %v7801_v45, %v2415_v26  ;;  %v2538_v60 = vmax.f32 %v2482_v34, 0.0  ;;  %v2740_v34 = vld [vmem:[%s9633_s3 + $0x78] sm:$0xff] }
 0x296   : > { %v2359_v6 = vpop.f32.mrf.mxu0 }
 0x297   : > { %v2484_v39 = vadd.f32 %v7772_v40, %v2416_v29  ;;  %v2417_v21 = vadd.f32 %v2359_v6, %v2006_v24  ;;  %2648 = vrot.lane.b32.xlu1 %v8208_v3, %s5497_s27  ;;  %v2539_v63 = vmax.f32 %v2483_v54, 0.0  ;;  %v2743_v24 = vld [vmem:[%s9633_s3 + $0x90] sm:$0xff]  ;;  %v2738_v6 = vld [vmem:[%s9633_s3 + $0x68] sm:$0xff] }
 0x298   : > { %v2739_v29 = vld [vmem:[%s9633_s3 + $0x70] sm:$0xff] }
 0x299   : > { %v2540_v41 = vmax.f32 %v2484_v39, 0.0  ;;  %v2485_v61 = vadd.f32 %v7801_v45, %v2417_v21 }
 0x29b   : > { %v2541_v48 = vmax.f32 %v2485_v61, 0.0  ;;  %v8215_v42 = vmax.f32 %v2538_v60, %v2540_v41  ;;  %v2737_v61 = vld [vmem:[%s9633_s3 + $0x60] sm:$0xff] }
 0x29d   : > { %2650 = vrot.lane.b32.xlu0 %v8215_v42, %s5497_s27  ;;  %v8219_v13 = vmax.f32 %v2539_v63, %v2541_v48  ;;  %v2734_v63 = vld [vmem:[%s9633_s3 + $0x48] sm:$0xff]  ;;  %v2733_v48 = vld [vmem:[%s9633_s3 + $0x40] sm:$0xff] }
 0x29f   : > { %2652 = vrot.lane.b32.xlu1 %v8219_v13, %s5497_s27  ;;  %s5439_s27 = sshll.u32 %s5501_s23, 4  ;;  %s5440_s27 = int_to_ptr.vmem [resolvable:$false] %s5439_s27 }
 0x2a0   : > { %s5441_s13 = scalar_lea.vmem %s5440_s27, 256  ;;  %p5442_p2 = scmp.lt.s32.totalorder %s4427_s22, %s5440_s27 }
 0x2a1   : > { %p5443_p3 = scmp.lt.s32.totalorder %s5441_s13, %s5435_s16 }
 0x2a3   : > { %p5444_p4 = por %p5443_p3, %p5442_p2 }
 0x2a5   : > { %p5445_p5 = pnand %p5444_p4, %p5438_p1 }
 0x2af   : > { %v2603_v40 = vpop.permute.xlu0 %2602 }
 0x2b3   : > { %v2605_v5 = vpop.permute.xlu0 %2604 }
 0x2b4   : > { %v2656_v50 = vsel %vm2654_vm0, %v2603_v40, %v2605_v5  ;;  %v8225_v45 = vmax.f32 %v7930_v51, %v2605_v5  ;;  %v2753_v51 = vld [vmem:[%s9633_s3 + $0xe0] sm:$0xff]  ;;  %v2732_v40 = vld [vmem:[%s9633_s3 + $0x38] sm:$0xff] }
 0x2b5   : > { %v8228_v57 = vmax.f32 %v7917_v47, %v2656_v50  ;;  %v2752_v47 = vld [vmem:[%s9633_s3 + $0xd8] sm:$0xff] }
 0x2b6   : > { %5034 = vmatprep.mubr.msk.f32.mxu1 %vm2834_vm1, %v8225_v45 }
 0x2b7   : > { %v2607_v18 = vpop.permute.xlu1 %2606  ;;  %2930 = vmatmul.mubr.f32.vlgmr.msra.gmra.mxu1 %v8228_v57 }
 0x2b8   : > { %2994 = vmatpush1.msra.mxu1 %v2755_v36 }
 0x2b9   : > { %2995 = vmatprep.subr.mxu1 %v2754_v31 }
 0x2ba   : > { %2996 = vmatpush1.msra.mxu1 %v2753_v51  ;;  %v2731_v51 = vld [vmem:[%s9633_s3 + $0x30] sm:$0xff] }
 0x2bb   : > { %v2609_v14 = vpop.permute.xlu1 %2608  ;;  %2997 = vmatprep.subr.mxu1 %v2752_v47  ;;  %v2728_v47 = vld [vmem:[%s9633_s3 + $0x18] sm:$0xff] }
 0x2bc   : > { %v2657_v59 = vsel %vm2654_vm0, %v2607_v18, %v2609_v14  ;;  %v8256_v44 = vmax.f32 %v7979_v46, %v2609_v14  ;;  %2998 = vmatpush1.msra.mxu1 %v2751_v16  ;;  %v2746_v46 = vld [vmem:[%s9633_s3 + $0xa8] sm:$0xff]  ;;  %v2727_v16 = vld [vmem:[%s9633_s3 + $0x10] sm:$0xff] }
 0x2bd   : > { %v8262_v20 = vmax.f32 %v7969_v0, %v2657_v59  ;;  %2999 = vmatprep.subr.mxu1 %v2750_v38  ;;  %v2745_v0 = vld [vmem:[%s9633_s3 + $0xa0] sm:$0xff]  ;;  %v2726_v38 = vld [vmem:[%s9633_s3 + $0x8] sm:$0xff] }
 0x2be   : > { %5035 = vmatprep.mubr.msk.f32.mxu1 %vm2834_vm1, %v8256_v44  ;;  %3000 = vmatpush1.msra.mxu1 %v2749_v25 }
 0x2bf   : > { %2936 = vmatmul.mubr.f32.gmra.mxu1 %v8262_v20  ;;  %3001 = vmatprep.subr.mxu1 %v2748_v55  ;;  %v2611_v15 = vpop.permute.xlu0 %2610 }
 0x2c0   : > { %3002 = vmatpush1.msra.mxu1 %v2747_v27 }
 0x2c1   : > { %v2613_v17 = vpop.permute.xlu1 %2612  ;;  %3003 = vmatprep.subr.mxu1 %v2746_v46  ;;  %v2725_v46 = vld [vmem:[%s9633_s3] sm:$0xff] }
 0x2c2   : > { %v2658_v26 = vsel %vm2654_vm0, %v2611_v15, %v2613_v17  ;;  %v8281_v33 = vmax.f32 %v8010_v56, %v2613_v17  ;;  %3004 = vmatpush1.msra.mxu1 %v2745_v0  ;;  %v2742_v56 = vld [vmem:[%s9633_s3 + $0x88] sm:$0xff]  ;;  %v2776_v0 = vld [vmem:[%s9633_s3 + $0x198] sm:$0xff] }
 0x2c3   : > { %v8284_v1 = vmax.f32 %v8003_v52, %v2658_v26  ;;  %3005 = vmatprep.subr.mxu1 %v2744_v37  ;;  %v2741_v52 = vld [vmem:[%s9633_s3 + $0x80] sm:$0xff]  ;;  %v2775_v37 = vld [vmem:[%s9633_s3 + $0x190] sm:$0xff]  ;;  %v2774_v15 = vld [vmem:[%s9633_s3 + $0x188] sm:$0xff] }
 0x2c4   : > { %5036 = vmatprep.mubr.msk.f32.mxu1 %vm2834_vm1, %v8281_v33  ;;  %5172 = vmatprep.mubr.msk.f32.mxu0 %vm2834_vm1, %v8281_v33 }
 0x2c5   : > { %2942 = vmatmul.mubr.f32.gmra.mxu1 %v8284_v1  ;;  %3444 = vmatmul.mubr.f32.vlgmr.msra.gmra.mxu0 %v8284_v1 }
 0x2c6   : > { %3006 = vmatpush1.msra.mxu1 %v2743_v24 }
 0x2c7   : > { %3007 = vmatprep.subr.mxu1 %v2742_v56  ;;  %v2615_v54 = vpop.permute.xlu0 %2614 }
 0x2c8   : > { %3008 = vmatpush1.msra.mxu1 %v2741_v52 }
 0x2c9   : > { %v2617_v39 = vpop.permute.xlu1 %2616  ;;  %3009 = vmatprep.subr.mxu1 %v2740_v34  ;;  %v2773_v34 = vld [vmem:[%s9633_s3 + $0x180] sm:$0xff] }
 0x2ca   : > { %v2659_v21 = vsel %vm2654_vm0, %v2615_v54, %v2617_v39  ;;  %v8312_v60 = vmax.f32 %v8038_v11, %v2617_v39  ;;  %3010 = vmatpush1.msra.mxu1 %v2739_v29  ;;  %v2736_v11 = vld [vmem:[%s9633_s3 + $0x58] sm:$0xff]  ;;  %v2770_v29 = vld [vmem:[%s9633_s3 + $0x168] sm:$0xff] }
 0x2cb   : > { %v8315_v41 = vmax.f32 %v8031_v32, %v2659_v21  ;;  %3011 = vmatprep.subr.mxu1 %v2738_v6  ;;  %v2735_v32 = vld [vmem:[%s9633_s3 + $0x50] sm:$0xff]  ;;  %v2769_v6 = vld [vmem:[%s9633_s3 + $0x160] sm:$0xff]  ;;  %v2768_v54 = vld [vmem:[%s9633_s3 + $0x158] sm:$0xff] }
 0x2cc   : > { %5037 = vmatprep.mubr.msk.f32.mxu1 %vm2834_vm1, %v8312_v60  ;;  %5173 = vmatprep.mubr.msk.f32.mxu0 %vm2834_vm1, %v8312_v60 }
 0x2cd   : > { %2948 = vmatmul.mubr.f32.gmra.mxu1 %v8315_v41  ;;  %3450 = vmatmul.mubr.f32.gmra.mxu0 %v8315_v41 }
 0x2ce   : > { %3012 = vmatpush1.msra.mxu1 %v2737_v61 }
 0x2cf   : > { %3013 = vmatprep.subr.mxu1 %v2736_v11  ;;  %v2619_v5 = vpop.permute.xlu0 %2618 }
 0x2d0   : > { %3014 = vmatpush1.msra.mxu1 %v2735_v32 }
 0x2d1   : > { %v2621_v50 = vpop.permute.xlu1 %2620  ;;  %3015 = vmatprep.subr.mxu1 %v2734_v63  ;;  %v2767_v63 = vld [vmem:[%s9633_s3 + $0x150] sm:$0xff] }
 0x2d2   : > { %v2660_v36 = vsel %vm2654_vm0, %v2619_v5, %v2621_v50  ;;  %v8343_v31 = vmax.f32 %v8063_v35, %v2621_v50  ;;  %3016 = vmatpush1.msra.mxu1 %v2733_v48  ;;  %v2730_v35 = vld [vmem:[%s9633_s3 + $0x28] sm:$0xff]  ;;  %v2764_v48 = vld [vmem:[%s9633_s3 + $0x138] sm:$0xff] }
 0x2d3   : > { %v8346_v18 = vmax.f32 %v8057_v12, %v2660_v36  ;;  %3017 = vmatprep.subr.mxu1 %v2732_v40  ;;  %v2729_v12 = vld [vmem:[%s9633_s3 + $0x20] sm:$0xff]  ;;  %v2763_v40 = vld [vmem:[%s9633_s3 + $0x130] sm:$0xff]  ;;  %v2762_v5 = vld [vmem:[%s9633_s3 + $0x128] sm:$0xff] }
 0x2d4   : > { %5038 = vmatprep.mubr.msk.f32.mxu1 %vm2834_vm1, %v8343_v31  ;;  %5174 = vmatprep.mubr.msk.f32.mxu0 %vm2834_vm1, %v8343_v31 }
 0x2d5   : > { %2954 = vmatmul.mubr.f32.gmra.mxu1 %v8346_v18  ;;  %3456 = vmatmul.mubr.f32.gmra.mxu0 %v8346_v18 }
 0x2d6   : > { %3018 = vmatpush1.msra.mxu1 %v2731_v51 }
 0x2d7   : > { %3019 = vmatprep.subr.mxu1 %v2730_v35  ;;  %v2623_v14 = vpop.permute.xlu0 %2622 }
 0x2d8   : > { %3020 = vmatpush1.msra.mxu1 %v2729_v12 }
 0x2d9   : > { %v2625_v25 = vpop.permute.xlu1 %2624  ;;  %3021 = vmatprep.subr.mxu1 %v2728_v47  ;;  %v2761_v47 = vld [vmem:[%s9633_s3 + $0x120] sm:$0xff] }
 0x2da   : > { %v2661_v59 = vsel %vm2654_vm0, %v2623_v14, %v2625_v25  ;;  %v8374_v55 = vmax.f32 %v8087_v58, %v2625_v25  ;;  %3022 = vmatpush1.msra.mxu1 %v2727_v16  ;;  %v2778_v58 = vld [vmem:[%s9633_s3 + $0x1a8] sm:$0xff]  ;;  %v2757_v14 = vld [vmem:[%s9633_s3 + $0x100] sm:$0xff]  ;;  %v5085_v25 = vld [vmem:[%s9633_s3 + $0x458] sm:$0xff] }
 0x2db   : > { %v8377_v27 = vmax.f32 %v8080_v19, %v2661_v59  ;;  %3023 = vmatprep.subr.mxu1 %v2726_v38  ;;  %v2777_v19 = vld [vmem:[%s9633_s3 + $0x1a0] sm:$0xff]  ;;  %v2758_v16 = vld [vmem:[%s9633_s3 + $0x108] sm:$0xff] }
 0x2dc   : > { %5039 = vmatprep.mubr.msk.f32.mxu1 %vm2834_vm1, %v8374_v55  ;;  %5175 = vmatprep.mubr.msk.f32.mxu0 %vm2834_vm1, %v8374_v55 }
 0x2dd   : > { %2960 = vmatmul.mubr.f32.gmra.mxu1 %v8377_v27  ;;  %3462 = vmatmul.mubr.f32.gmra.mxu0 %v8377_v27 }
 0x2de   : > { %3024 = vmatpush1.msra.mxu1 %v2725_v46 }
 0x2df   : > { %3035 = vmatprep.subr.mxu1 %v2778_v58  ;;  %v2627_v17 = vpop.permute.xlu0 %2626 }
 0x2e0   : > { %3036 = vmatpush2.msra.mxu1 %v2777_v19 }
 0x2e1   : > { %v2629_v26 = vpop.permute.xlu1 %2628  ;;  %3037 = vmatprep.subr.mxu1 %v2776_v0 }
 0x2e2   : > { %v2662_v24 = vsel %vm2654_vm0, %v2627_v17, %v2629_v26  ;;  %v8405_v56 = vmax.f32 %v8111_v62, %v2629_v26  ;;  %3038 = vmatpush2.msra.mxu1 %v2775_v37  ;;  %v2772_v62 = vld [vmem:[%s9633_s3 + $0x178] sm:$0xff]  ;;  %v5084_v17 = vld [vmem:[%s9633_s3 + $0x450] sm:$0xff]  ;;  %v5083_v26 = vld [vmem:[%s9633_s3 + $0x448] sm:$0xff] }
 0x2e3   : > { %v8408_v52 = vmax.f32 %v8104_v23, %v2662_v24  ;;  %3039 = vmatprep.subr.mxu1 %v2774_v15  ;;  %v2771_v23 = vld [vmem:[%s9633_s3 + $0x170] sm:$0xff] }
 0x2e4   : > { %5040 = vmatprep.mubr.msk.f32.mxu1 %vm2834_vm1, %v8405_v56  ;;  %5176 = vmatprep.mubr.msk.f32.mxu0 %vm2834_vm1, %v8405_v56 }
 0x2e5   : > { %2966 = vmatmul.mubr.f32.gmra.mxu1 %v8408_v52  ;;  %3468 = vmatmul.mubr.f32.gmra.mxu0 %v8408_v52 }
 0x2e6   : > { %3040 = vmatpush2.msra.mxu1 %v2773_v34 }
 0x2e7   : > { %3041 = vmatprep.subr.mxu1 %v2772_v62  ;;  %v2631_v39 = vpop.permute.xlu0 %2630  ;;  %v5082_v62 = vld [vmem:[%s9633_s3 + $0x440] sm:$0xff] }
 0x2e8   : > { %3042 = vmatpush2.msra.mxu1 %v2771_v23  ;;  %v5081_v23 = vld [vmem:[%s9633_s3 + $0x438] sm:$0xff] }
 0x2e9   : > { %v2633_v21 = vpop.permute.xlu1 %2632  ;;  %3043 = vmatprep.subr.mxu1 %v2770_v29 }
 0x2ea   : > { %v2663_v61 = vsel %vm2654_vm0, %v2631_v39, %v2633_v21  ;;  %v8436_v11 = vmax.f32 %v8133_v10, %v2633_v21  ;;  %3044 = vmatpush2.msra.mxu1 %v2769_v6  ;;  %v2766_v10 = vld [vmem:[%s9633_s3 + $0x148] sm:$0xff]  ;;  %v5080_v6 = vld [vmem:[%s9633_s3 + $0x430] sm:$0xff] }
 0x2eb   : > { %v8439_v32 = vmax.f32 %v8126_v43, %v2663_v61  ;;  %3045 = vmatprep.subr.mxu1 %v2768_v54  ;;  %v2765_v43 = vld [vmem:[%s9633_s3 + $0x140] sm:$0xff]  ;;  %v5076_v54 = vld [vmem:[%s9633_s3 + $0x410] sm:$0xff] }
 0x2ec   : > { %5041 = vmatprep.mubr.msk.f32.mxu1 %vm2834_vm1, %v8436_v11  ;;  %5177 = vmatprep.mubr.msk.f32.mxu0 %vm2834_vm1, %v8436_v11  ;;  %v5074_v61 = vld [vmem:[%s9633_s3 + $0x400] sm:$0xff] }
 0x2ed   : > { %2972 = vmatmul.mubr.f32.gmra.mxu1 %v8439_v32  ;;  %3474 = vmatmul.mubr.f32.gmra.mxu0 %v8439_v32 }
 0x2ee   : > { %3046 = vmatpush2.msra.mxu1 %v2767_v63 }
 0x2ef   : > { %3047 = vmatprep.subr.mxu1 %v2766_v10  ;;  %v2635_v50 = vpop.permute.xlu0 %2634 }
 0x2f0   : > { %3048 = vmatpush2.msra.mxu1 %v2765_v43  ;;  %v5073_v43 = vld [vmem:[%s9633_s3 + $0x3f8] sm:$0xff] }
 0x2f1   : > { %v2637_v36 = vpop.permute.xlu1 %2636  ;;  %3049 = vmatprep.subr.mxu1 %v2764_v48 }
 0x2f2   : > { %v2664_v51 = vsel %vm2654_vm0, %v2635_v50, %v2637_v36  ;;  %v8467_v35 = vmax.f32 %v8153_v4, %v2637_v36  ;;  %3050 = vmatpush2.msra.mxu1 %v2763_v40  ;;  %v2760_v4 = vld [vmem:[%s9633_s3 + $0x118] sm:$0xff]  ;;  %v5072_v40 = vld [vmem:[%s9633_s3 + $0x3f0] sm:$0xff]  ;;  %v5067_v36 = vld [vmem:[%s9633_s3 + $0x3c8] sm:$0xff] }
 0x2f3   : > { %v8470_v12 = vmax.f32 %v8146_v9, %v2664_v51  ;;  %3051 = vmatprep.subr.mxu1 %v2762_v5  ;;  %v2759_v9 = vld [vmem:[%s9633_s3 + $0x110] sm:$0xff]  ;;  %v5069_v5 = vld [vmem:[%s9633_s3 + $0x3d8] sm:$0xff]  ;;  %v5066_v51 = vld [vmem:[%s9633_s3 + $0x3c0] sm:$0xff] }
 0x2f4   : > { %5042 = vmatprep.mubr.msk.f32.mxu1 %vm2834_vm1, %v8467_v35  ;;  %5178 = vmatprep.mubr.msk.f32.mxu0 %vm2834_vm1, %v8467_v35  ;;  %v5068_v50 = vld [vmem:[%s9633_s3 + $0x3d0] sm:$0xff] }
 0x2f5   : > { %2978 = vmatmul.mubr.f32.gmra.mxu1 %v8470_v12  ;;  %3480 = vmatmul.mubr.f32.gmra.mxu0 %v8470_v12 }
 0x2f6   : > { %3052 = vmatpush2.msra.mxu1 %v2761_v47  ;;  %v5065_v47 = vld [vmem:[%s9633_s3 + $0x3b8] sm:$0xff] }
 0x2f7   : > { %v2639_v38 = vpop.permute.xlu0 %2638  ;;  %3053 = vmatprep.subr.mxu1 %v2760_v4  ;;  %v5064_v4 = vld [vmem:[%s9633_s3 + $0x3b0] sm:$0xff] }
 0x2f8   : > { %3054 = vmatpush2.msra.mxu1 %v2759_v9  ;;  %v5063_v9 = vld [vmem:[%s9633_s3 + $0x3a8] sm:$0xff] }
 0x2f9   : > { %v2641_v59 = vpop.permute.xlu1 %2640  ;;  %3055 = vmatprep.subr.mxu1 %v2758_v16  ;;  %v5062_v16 = vld [vmem:[%s9633_s3 + $0x3a0] sm:$0xff] }
 0x2fa   : > { %v2665_v46 = vsel %vm2654_vm0, %v2639_v38, %v2641_v59  ;;  %v8498_v58 = vmax.f32 %v8172_v30, %v2641_v59  ;;  %3056 = vmatpush2.msra.mxu1 %v2757_v14  ;;  %v5061_v38 = vld [vmem:[%s9633_s3 + $0x398] sm:$0xff]  ;;  %v5060_v14 = vld [vmem:[%s9633_s3 + $0x390] sm:$0xff]  ;;  %v5058_v59 = vld [vmem:[%s9633_s3 + $0x380] sm:$0xff] }
 0x2fb   : > { %v8501_v19 = vmax.f32 %v8166_v22, %v2665_v46  ;;  %v2599_v0 = vpop.permute.xlu0 %2598  ;;  %3176 = vmatprep.subr.mxu1 %v5085_v25  ;;  %v5059_v25 = vld [vmem:[%s9633_s3 + $0x388] sm:$0xff]  ;;  %v5057_v46 = vld [vmem:[%s9633_s3 + $0x378] sm:$0xff] }
 0x2fc   : > { %5043 = vmatprep.mubr.msk.f32.mxu1 %vm2834_vm1, %v8498_v58  ;;  %5179 = vmatprep.mubr.msk.f32.mxu0 %vm2834_vm1, %v8498_v58 }
 0x2fd   : > { %2984 = vmatmul.mubr.f32.gmra.mxu1 %v8501_v19  ;;  %3486 = vmatmul.mubr.f32.gmra.mxu0 %v8501_v19  ;;  %v2601_v37 = vpop.permute.xlu1 %2600 }
 0x2fe   : > { %v2655_v30 = vsel %vm2654_vm0, %v2599_v0, %v2601_v37  ;;  %v2698_v15 = vmax.f32 %v7877_v8, %v2601_v37  ;;  %v5056_v0 = vld [vmem:[%s9633_s3 + $0x370] sm:$0xff]  ;;  %v5055_v37 = vld [vmem:[%s9633_s3 + $0x368] sm:$0xff] }
 0x2ff   : > { %v2697_v22 = vmax.f32 %v7860_v49, %v2655_v30  ;;  %v2643_v24 = vpop.permute.xlu0 %2642  ;;  %v5054_v30 = vld [vmem:[%s9633_s3 + $0x360] sm:$0xff] }
 0x300   : > { %5044 = vmatprep.mubr.msk.f32.mxu1 %vm2834_vm1, %v2698_v15  ;;  %v5107_v15 = vld [vmem:[%s9633_s3 + $0x508] sm:$0xff] }
 0x301   : > { %v2645_v34 = vpop.permute.xlu1 %2644  ;;  %3058 = vmatmul.mubr.f32.vlgmr.msra.gmra.mxu1 %v2697_v22  ;;  %v5106_v22 = vld [vmem:[%s9633_s3 + $0x500] sm:$0xff] }
 0x302   : > { %v2666_v8 = vsel %vm2654_vm0, %v2643_v24, %v2645_v34  ;;  %v8524_v49 = vmax.f32 %v8192_v53, %v2645_v34  ;;  %3177 = vmatpush1.msra.mxu1 %v5084_v17  ;;  %5045 = vmatprep.mubr.msk.f32.mxu1 %vm2834_vm1, %v8225_v45  ;;  %v5079_v53 = vld [vmem:[%s9633_s3 + $0x428] sm:$0xff]  ;;  %v5077_v45 = vld [vmem:[%s9633_s3 + $0x418] sm:$0xff]  ;;  %v5102_v34 = vld [vmem:[%s9633_s3 + $0x4e0] sm:$0xff] }
 0x303   : > { %v8532_v29 = vmax.f32 %v8186_v28, %v2666_v8  ;;  %3178 = vmatprep.subr.mxu1 %v5083_v26  ;;  %v5078_v28 = vld [vmem:[%s9633_s3 + $0x420] sm:$0xff]  ;;  %v5105_v17 = vld [vmem:[%s9633_s3 + $0x4f8] sm:$0xff]  ;;  %v5104_v26 = vld [vmem:[%s9633_s3 + $0x4f0] sm:$0xff] }
 0x304   : > { %3179 = vmatpush1.msra.mxu1 %v5082_v62  ;;  %5180 = vmatprep.mubr.msk.f32.mxu0 %vm2834_vm1, %v8524_v49  ;;  %v5103_v24 = vld [vmem:[%s9633_s3 + $0x4e8] sm:$0xff]  ;;  %v5101_v62 = vld [vmem:[%s9633_s3 + $0x4d8] sm:$0xff]  ;;  %v5100_v8 = vld [vmem:[%s9633_s3 + $0x4d0] sm:$0xff] }
 0x305   : > { %3180 = vmatprep.subr.mxu1 %v5081_v23  ;;  %3064 = vmatmul.mubr.f32.gmra.mxu1 %v8228_v57  ;;  %v5075_v57 = vld [vmem:[%s9633_s3 + $0x408] sm:$0xff] }
 0x306   : > { %3181 = vmatpush1.msra.mxu1 %v5080_v6  ;;  %3492 = vmatmul.mubr.f32.gmra.mxu0 %v8532_v29  ;;  %v5099_v23 = vld [vmem:[%s9633_s3 + $0x4c8] sm:$0xff]  ;;  %v5098_v6 = vld [vmem:[%s9633_s3 + $0x4c0] sm:$0xff] }
 0x307   : > { %5046 = vmatprep.mubr.msk.f32.mxu1 %vm2834_vm1, %v8256_v44  ;;  %3182 = vmatprep.subr.mxu1 %v5079_v53  ;;  %v2647_v39 = vpop.permute.xlu0 %2646  ;;  %v5097_v53 = vld [vmem:[%s9633_s3 + $0x4b8] sm:$0xff] }
 0x308   : > { %3183 = vmatpush1.msra.mxu1 %v5078_v28  ;;  %v5096_v28 = vld [vmem:[%s9633_s3 + $0x4b0] sm:$0xff] }
 0x309   : > { %3184 = vmatprep.subr.mxu1 %v5077_v45  ;;  %v2649_v21 = vpop.permute.xlu1 %2648  ;;  %3070 = vmatmul.mubr.f32.gmra.mxu1 %v8262_v20  ;;  %v5094_v45 = vld [vmem:[%s9633_s3 + $0x4a0] sm:$0xff] }
 0x30a   : > { %v2667_v63 = vsel %vm2654_vm0, %v2647_v39, %v2649_v21  ;;  %v8564_v10 = vmax.f32 %v8208_v3, %v2649_v21  ;;  %3185 = vmatpush1.msra.mxu1 %v5076_v54  ;;  %5047 = vmatprep.mubr.msk.f32.mxu1 %vm2834_vm1, %v8281_v33  ;;  %v5071_v3 = vld [vmem:[%s9633_s3 + $0x3e8] sm:$0xff]  ;;  %v5093_v54 = vld [vmem:[%s9633_s3 + $0x498] sm:$0xff]  ;;  %v5090_v21 = vld [vmem:[%s9633_s3 + $0x480] sm:$0xff] }
 0x30b   : > { %v8572_v48 = vmax.f32 %v8202_v2, %v2667_v63  ;;  %3186 = vmatprep.subr.mxu1 %v5075_v57  ;;  %v5070_v2 = vld [vmem:[%s9633_s3 + $0x3e0] sm:$0xff]  ;;  %v5092_v57 = vld [vmem:[%s9633_s3 + $0x490] sm:$0xff]  ;;  %v5091_v39 = vld [vmem:[%s9633_s3 + $0x488] sm:$0xff] }
 0x30c   : > { %3187 = vmatpush1.msra.mxu1 %v5074_v61  ;;  %5181 = vmatprep.mubr.msk.f32.mxu0 %vm2834_vm1, %v8564_v10  ;;  %v5089_v61 = vld [vmem:[%s9633_s3 + $0x478] sm:$0xff]  ;;  %v5088_v63 = vld [vmem:[%s9633_s3 + $0x470] sm:$0xff] }
 0x30d   : > { %3188 = vmatprep.subr.mxu1 %v5073_v43  ;;  %3076 = vmatmul.mubr.f32.gmra.mxu1 %v8284_v1  ;;  %v5087_v43 = vld [vmem:[%s9633_s3 + $0x468] sm:$0xff] }
 0x30e   : > { %3189 = vmatpush1.msra.mxu1 %v5072_v40  ;;  %3498 = vmatmul.mubr.f32.gmra.mxu0 %v8572_v48  ;;  %v5086_v40 = vld [vmem:[%s9633_s3 + $0x460] sm:$0xff] }
 0x30f   : > { %5048 = vmatprep.mubr.msk.f32.mxu1 %vm2834_vm1, %v8312_v60  ;;  %3190 = vmatprep.subr.mxu1 %v5071_v3  ;;  %v5213_v3 = vld [vmem:[%s9633_s3 + $0x7b8] sm:$0xff] }
 0x310   : > { %3191 = vmatpush1.msra.mxu1 %v5070_v2  ;;  %v5212_v2 = vld [vmem:[%s9633_s3 + $0x7b0] sm:$0xff] }
 0x311   : > { %3192 = vmatprep.subr.mxu1 %v5069_v5  ;;  %3082 = vmatmul.mubr.f32.gmra.mxu1 %v8315_v41  ;;  %v5211_v5 = vld [vmem:[%s9633_s3 + $0x7a8] sm:$0xff] }
 0x312   : > { %3193 = vmatpush1.msra.mxu1 %v5068_v50  ;;  %5049 = vmatprep.mubr.msk.f32.mxu1 %vm2834_vm1, %v8343_v31  ;;  %v5210_v50 = vld [vmem:[%s9633_s3 + $0x7a0] sm:$0xff] }
 0x313   : > { %3194 = vmatprep.subr.mxu1 %v5067_v36  ;;  %v5209_v36 = vld [vmem:[%s9633_s3 + $0x798] sm:$0xff] }
 0x314   : > { %3195 = vmatpush1.msra.mxu1 %v5066_v51  ;;  %v5208_v51 = vld [vmem:[%s9633_s3 + $0x790] sm:$0xff] }
 0x315   : > { %3196 = vmatprep.subr.mxu1 %v5065_v47  ;;  %3088 = vmatmul.mubr.f32.gmra.mxu1 %v8346_v18  ;;  %v5205_v47 = vld [vmem:[%s9633_s3 + $0x778] sm:$0xff] }
 0x316   : > { %3197 = vmatpush1.msra.mxu1 %v5064_v4  ;;  %5050 = vmatprep.mubr.msk.f32.mxu1 %vm2834_vm1, %v8374_v55  ;;  %v5204_v4 = vld [vmem:[%s9633_s3 + $0x770] sm:$0xff] }
 0x317   : > { %3198 = vmatprep.subr.mxu1 %v5063_v9  ;;  %v5202_v9 = vld [vmem:[%s9633_s3 + $0x760] sm:$0xff] }
 0x318   : > { %3199 = vmatpush1.msra.mxu1 %v5062_v16  ;;  %v5201_v16 = vld [vmem:[%s9633_s3 + $0x758] sm:$0xff] }
 0x319   : > { %3200 = vmatprep.subr.mxu1 %v5061_v38  ;;  %3094 = vmatmul.mubr.f32.gmra.mxu1 %v8377_v27  ;;  %v5200_v38 = vld [vmem:[%s9633_s3 + $0x750] sm:$0xff] }
 0x31a   : > { %3201 = vmatpush1.msra.mxu1 %v5060_v14  ;;  %5051 = vmatprep.mubr.msk.f32.mxu1 %vm2834_vm1, %v8405_v56  ;;  %v5199_v14 = vld [vmem:[%s9633_s3 + $0x748] sm:$0xff] }
 0x31b   : > { %3202 = vmatprep.subr.mxu1 %v5059_v25  ;;  %v5198_v25 = vld [vmem:[%s9633_s3 + $0x740] sm:$0xff] }
 0x31c   : > { %3203 = vmatpush1.msra.mxu1 %v5058_v59  ;;  %v5197_v59 = vld [vmem:[%s9633_s3 + $0x738] sm:$0xff] }
 0x31d   : > { %3204 = vmatprep.subr.mxu1 %v5057_v46  ;;  %3100 = vmatmul.mubr.f32.gmra.mxu1 %v8408_v52  ;;  %v5196_v46 = vld [vmem:[%s9633_s3 + $0x730] sm:$0xff] }
 0x31e   : > { %3205 = vmatpush1.msra.mxu1 %v5056_v0  ;;  %5052 = vmatprep.mubr.msk.f32.mxu1 %vm2834_vm1, %v8436_v11  ;;  %v5195_v0 = vld [vmem:[%s9633_s3 + $0x728] sm:$0xff] }
 0x31f   : > { %3206 = vmatprep.subr.mxu1 %v5055_v37  ;;  %v5194_v37 = vld [vmem:[%s9633_s3 + $0x720] sm:$0xff] }
 0x320   : > { %3207 = vmatpush1.msra.mxu1 %v5054_v30  ;;  %v5193_v30 = vld [vmem:[%s9633_s3 + $0x718] sm:$0xff] }
 0x321   : > { %3218 = vmatprep.subr.mxu1 %v5107_v15  ;;  %3106 = vmatmul.mubr.f32.gmra.mxu1 %v8439_v32  ;;  %v5192_v15 = vld [vmem:[%s9633_s3 + $0x710] sm:$0xff] }
 0x322   : > { %3219 = vmatpush2.msra.mxu1 %v5106_v22  ;;  %5053 = vmatprep.mubr.msk.f32.mxu1 %vm2834_vm1, %v8467_v35  ;;  %v5191_v22 = vld [vmem:[%s9633_s3 + $0x708] sm:$0xff] }
 0x323   : > { %3220 = vmatprep.subr.mxu1 %v5105_v17  ;;  %v5190_v17 = vld [vmem:[%s9633_s3 + $0x700] sm:$0xff] }
 0x324   : > { %3221 = vmatpush2.msra.mxu1 %v5104_v26  ;;  %v5189_v26 = vld [vmem:[%s9633_s3 + $0x6f8] sm:$0xff] }
 0x325   : > { %3222 = vmatprep.subr.mxu1 %v5103_v24  ;;  %3112 = vmatmul.mubr.f32.gmra.mxu1 %v8470_v12  ;;  %v5188_v24 = vld [vmem:[%s9633_s3 + $0x6f0] sm:$0xff] }
 0x326   : > { %3223 = vmatpush2.msra.mxu1 %v5102_v34  ;;  %5108 = vmatprep.mubr.msk.f32.mxu1 %vm2834_vm1, %v8256_v44  ;;  %v5095_v44 = vld [vmem:[%s9633_s3 + $0x4a8] sm:$0xff] }
 0x327   : > { %3224 = vmatprep.subr.mxu1 %v5101_v62  ;;  %v5187_v34 = vld [vmem:[%s9633_s3 + $0x6e8] sm:$0xff]  ;;  %v5186_v62 = vld [vmem:[%s9633_s3 + $0x6e0] sm:$0xff] }
 0x328   : > { %3225 = vmatpush2.msra.mxu1 %v5100_v8  ;;  %v5185_v8 = vld [vmem:[%s9633_s3 + $0x6d8] sm:$0xff] }
 0x329   : > { %3226 = vmatprep.subr.mxu1 %v5099_v23  ;;  %v5184_v23 = vld [vmem:[%s9633_s3 + $0x6d0] sm:$0xff] }
 0x32a   : > { %3227 = vmatpush2.msra.mxu1 %v5098_v6  ;;  %v5183_v6 = vld [vmem:[%s9633_s3 + $0x6c8] sm:$0xff] }
 0x32b   : > { %3228 = vmatprep.subr.mxu1 %v5097_v53  ;;  %v5182_v53 = vld [vmem:[%s9633_s3 + $0x6c0] sm:$0xff] }
 0x32c   : > { %3229 = vmatpush2.msra.mxu1 %v5096_v28  ;;  %v5235_v28 = vld [vmem:[%s9633_s3 + $0x868] sm:$0xff] }
 0x32d   : > { %3230 = vmatprep.subr.mxu1 %v5095_v44  ;;  %v5234_v44 = vld [vmem:[%s9633_s3 + $0x860] sm:$0xff] }
 0x32e   : > { %3231 = vmatpush2.msra.mxu1 %v5094_v45  ;;  %v5233_v45 = vld [vmem:[%s9633_s3 + $0x858] sm:$0xff] }
 0x32f   : > { %3232 = vmatprep.subr.mxu1 %v5093_v54  ;;  %v5232_v54 = vld [vmem:[%s9633_s3 + $0x850] sm:$0xff] }
 0x330   : > { %3233 = vmatpush2.msra.mxu1 %v5092_v57  ;;  %v5231_v57 = vld [vmem:[%s9633_s3 + $0x848] sm:$0xff] }
 0x331   : > { %3234 = vmatprep.subr.mxu1 %v5091_v39  ;;  %v5230_v39 = vld [vmem:[%s9633_s3 + $0x840] sm:$0xff] }
 0x332   : > { %3235 = vmatpush2.msra.mxu1 %v5090_v21  ;;  %v5229_v21 = vld [vmem:[%s9633_s3 + $0x838] sm:$0xff] }
 0x333   : > { %3236 = vmatprep.subr.mxu1 %v5089_v61  ;;  %v5228_v61 = vld [vmem:[%s9633_s3 + $0x830] sm:$0xff] }
 0x334   : > { %3237 = vmatpush2.msra.mxu1 %v5088_v63  ;;  %v5227_v63 = vld [vmem:[%s9633_s3 + $0x828] sm:$0xff] }
 0x335   : > { %3238 = vmatprep.subr.mxu1 %v5087_v43  ;;  %v5226_v43 = vld [vmem:[%s9633_s3 + $0x820] sm:$0xff] }
 0x336   : > { %3239 = vmatpush2.msra.mxu1 %v5086_v40  ;;  %v5225_v40 = vld [vmem:[%s9633_s3 + $0x818] sm:$0xff] }
 0x337   : > { %3241 = vmatmul.mubr.f32.vlgmr.msra.gmra.mxu1 %v8262_v20  ;;  %3582 = vmatprep.subr.mxu1 %v5213_v3  ;;  %v5207_v20 = vld [vmem:[%s9633_s3 + $0x788] sm:$0xff]  ;;  %v5224_v3 = vld [vmem:[%s9633_s3 + $0x810] sm:$0xff] }
 0x338   : > { %5109 = vmatprep.mubr.msk.f32.mxu1 %vm2834_vm1, %v8281_v33  ;;  %3583 = vmatpush1.msra.mxu1 %v5212_v2  ;;  %v5206_v33 = vld [vmem:[%s9633_s3 + $0x780] sm:$0xff] }
 0x339   : > { %3584 = vmatprep.subr.mxu1 %v5211_v5  ;;  %v5222_v2 = vld [vmem:[%s9633_s3 + $0x800] sm:$0xff]  ;;  %v5221_v5 = vld [vmem:[%s9633_s3 + $0x7f8] sm:$0xff] }
 0x33a   : > { %3585 = vmatpush1.msra.mxu1 %v5210_v50  ;;  %v5220_v50 = vld [vmem:[%s9633_s3 + $0x7f0] sm:$0xff] }
 0x33b   : > { %3247 = vmatmul.mubr.f32.gmra.mxu1 %v8284_v1  ;;  %3586 = vmatprep.subr.mxu1 %v5209_v36  ;;  %v5203_v1 = vld [vmem:[%s9633_s3 + $0x768] sm:$0xff] }
 0x33c   : > { %5110 = vmatprep.mubr.msk.f32.mxu1 %vm2834_vm1, %v8312_v60  ;;  %3587 = vmatpush1.msra.mxu1 %v5208_v51  ;;  %v5219_v36 = vld [vmem:[%s9633_s3 + $0x7e8] sm:$0xff]  ;;  %v5218_v51 = vld [vmem:[%s9633_s3 + $0x7e0] sm:$0xff] }
 0x33d   : > { %3588 = vmatprep.subr.mxu1 %v5207_v20  ;;  %v5217_v20 = vld [vmem:[%s9633_s3 + $0x7d8] sm:$0xff] }
 0x33e   : > { %3589 = vmatpush1.msra.mxu1 %v5206_v33  ;;  %v5216_v33 = vld [vmem:[%s9633_s3 + $0x7d0] sm:$0xff] }
 0x33f   : > { %3253 = vmatmul.mubr.f32.gmra.mxu1 %v8315_v41  ;;  %3590 = vmatprep.subr.mxu1 %v5205_v47  ;;  %v5215_v47 = vld [vmem:[%s9633_s3 + $0x7c8] sm:$0xff] }
 0x340   : > { %5111 = vmatprep.mubr.msk.f32.mxu1 %vm2834_vm1, %v8343_v31  ;;  %3591 = vmatpush1.msra.mxu1 %v5204_v4  ;;  %v5214_v4 = vld [vmem:[%s9633_s3 + $0x7c0] sm:$0xff] }
 0x341   : > { %3592 = vmatprep.subr.mxu1 %v5203_v1 }
 0x342   : > { %3593 = vmatpush1.msra.mxu1 %v5202_v9 }
 0x343   : > { %3259 = vmatmul.mubr.f32.gmra.mxu1 %v8346_v18  ;;  %3594 = vmatprep.subr.mxu1 %v5201_v16 }
 0x344   : > { %5112 = vmatprep.mubr.msk.f32.mxu1 %vm2834_vm1, %v8374_v55  ;;  %3595 = vmatpush1.msra.mxu1 %v5200_v38 }
 0x345   : > { %3596 = vmatprep.subr.mxu1 %v5199_v14 }
 0x346   : > { %3597 = vmatpush1.msra.mxu1 %v5198_v25 }
 0x347   : > { %3265 = vmatmul.mubr.f32.gmra.mxu1 %v8377_v27  ;;  %3598 = vmatprep.subr.mxu1 %v5197_v59 }
 0x348   : > { %5113 = vmatprep.mubr.msk.f32.mxu1 %vm2834_vm1, %v8405_v56  ;;  %3599 = vmatpush1.msra.mxu1 %v5196_v46 }
 0x349   : > { %3600 = vmatprep.subr.mxu1 %v5195_v0 }
 0x34a   : > { %3601 = vmatpush1.msra.mxu1 %v5194_v37 }
 0x34b   : > { %3271 = vmatmul.mubr.f32.gmra.mxu1 %v8408_v52  ;;  %3602 = vmatprep.subr.mxu1 %v5193_v30 }
 0x34c   : > { %5114 = vmatprep.mubr.msk.f32.mxu1 %vm2834_vm1, %v8436_v11  ;;  %3603 = vmatpush1.msra.mxu1 %v5192_v15 }
 0x34d   : > { %3604 = vmatprep.subr.mxu1 %v5191_v22 }
 0x34e   : > { %3605 = vmatpush1.msra.mxu1 %v5190_v17 }
 0x34f   : > { %3277 = vmatmul.mubr.f32.gmra.mxu1 %v8439_v32  ;;  %3606 = vmatprep.subr.mxu1 %v5189_v26 }
 0x350   : > { %5115 = vmatprep.mubr.msk.f32.mxu1 %vm2834_vm1, %v8467_v35  ;;  %3607 = vmatpush1.msra.mxu1 %v5188_v24 }
 0x351   : > { %3608 = vmatprep.subr.mxu1 %v5187_v34 }
 0x352   : > { %3609 = vmatpush1.msra.mxu1 %v5186_v62 }
 0x353   : > { %3283 = vmatmul.mubr.f32.gmra.mxu1 %v8470_v12  ;;  %3610 = vmatprep.subr.mxu1 %v5185_v8 }
 0x354   : > { %5116 = vmatprep.mubr.msk.f32.mxu1 %vm2834_vm1, %v8498_v58  ;;  %3611 = vmatpush1.msra.mxu1 %v5184_v23 }
 0x355   : > { %3612 = vmatprep.subr.mxu1 %v5183_v6 }
 0x356   : > { %3613 = vmatpush1.msra.mxu1 %v5182_v53 }
 0x357   : > { %3289 = vmatmul.mubr.f32.gmra.mxu1 %v8501_v19  ;;  %3624 = vmatprep.subr.mxu1 %v5235_v28 }
 0x358   : > { %5117 = vmatprep.mubr.msk.f32.mxu1 %vm2834_vm1, %v8524_v49  ;;  %3625 = vmatpush2.msra.mxu1 %v5234_v44 }
 0x359   : > { %3626 = vmatprep.subr.mxu1 %v5233_v45 }
 0x35a   : > { %3627 = vmatpush2.msra.mxu1 %v5232_v54 }
 0x35b   : > { %3295 = vmatmul.mubr.f32.gmra.mxu1 %v8532_v29  ;;  %3628 = vmatprep.subr.mxu1 %v5231_v57 }
 0x35c   : > { %3629 = vmatpush2.msra.mxu1 %v5230_v39  ;;  %5236 = vmatprep.mubr.msk.f32.mxu1 %vm2834_vm1, %v8312_v60  ;;  %v5223_v60 = vld [vmem:[%s9633_s3 + $0x808] sm:$0xff] }
 0x35d   : > { %3630 = vmatprep.subr.mxu1 %v5229_v21 }
 0x35e   : > { %3631 = vmatpush2.msra.mxu1 %v5228_v61 }
 0x35f   : > { %3632 = vmatprep.subr.mxu1 %v5227_v63 }
 0x360   : > { %3633 = vmatpush2.msra.mxu1 %v5226_v43 }
 0x361   : > { %3634 = vmatprep.subr.mxu1 %v5225_v40 }
 0x362   : > { %3635 = vmatpush2.msra.mxu1 %v5224_v3  ;;  %v5261_v3 = vld [vmem:[%s9635_s5 + $0x108] sm:$0xff] }
 0x363   : > { %3636 = vmatprep.subr.mxu1 %v5223_v60 }
 0x364   : > { %3637 = vmatpush2.msra.mxu1 %v5222_v2  ;;  %v9640_v2 = vmov 0.0  }
 0x365   : > { %3638 = vmatprep.subr.mxu1 %v5221_v5  ;;  %3886 = vmatprep.subr.mxu0 %v9640_v2  ;;  %v5260_v5 = vld [vmem:[%s9635_s5 + $0x100] sm:$0xff] }
 0x366   : > { %3639 = vmatpush2.msra.mxu1 %v5220_v50  ;;  %3887 = vmatpush1.msra.mxu0 %v5261_v3 }
 0x367   : > { %3640 = vmatprep.subr.mxu1 %v5219_v36  ;;  %v5281_v36 = vld [vmem:[%s9635_s5 + $0x198] sm:$0xff]  ;;  %3888 = vmatprep.subr.mxu0 %v9640_v2 }
 0x368   : > { %3641 = vmatpush2.msra.mxu1 %v5218_v51  ;;  %3889 = vmatpush1.msra.mxu0 %v5260_v5 }
 0x369   : > { %3642 = vmatprep.subr.mxu1 %v5217_v20  ;;  %v5259_v20 = vld [vmem:[%s9635_s5 + $0xf8] sm:$0xff]  ;;  %3890 = vmatprep.subr.mxu0 %v9640_v2 }
 0x36a   : > { %3643 = vmatpush2.msra.mxu1 %v5216_v33  ;;  %v5280_v33 = vld [vmem:[%s9635_s5 + $0x190] sm:$0xff]  ;;  %3891 = vmatpush1.msra.mxu0 %v5259_v20 }
 0x36b   : > { %3644 = vmatprep.subr.mxu1 %v5215_v47  ;;  %3892 = vmatprep.subr.mxu0 %v9640_v2 }
 0x36c   : > { %3645 = vmatpush2.msra.mxu1 %v5214_v4  ;;  %v5279_v4 = vld [vmem:[%s9635_s5 + $0x188] sm:$0xff] }
 0x36d   : > { %3647 = vmatmul.mubr.f32.vlgmr.msra.gmra.mxu1 %v8315_v41  ;;  %4051 = vmatprep.subr.mxu1 %v9640_v2 }
 0x36e   : > { %5237 = vmatprep.mubr.msk.f32.mxu1 %vm2834_vm1, %v8343_v31  ;;  %v2653_v31 = vpop.permute.xlu1 %2652  ;;  %4052 = vmatpush1.msra.mxu1 %v5281_v36 }
 0x36f   : > { %4053 = vmatprep.subr.mxu1 %v9640_v2 }
 0x370   : > { %4054 = vmatpush1.msra.mxu1 %v5280_v33 }
 0x371   : > { %3653 = vmatmul.mubr.f32.gmra.mxu1 %v8346_v18  ;;  %v2651_v18 = vpop.permute.xlu0 %2650  ;;  %4055 = vmatprep.subr.mxu1 %v9640_v2 }
 0x372   : > { %5238 = vmatprep.mubr.msk.f32.mxu1 %vm2834_vm1, %v8374_v55  ;;  %4056 = vmatpush1.msra.mxu1 %v5279_v4 }
 0x373   : > { %4057 = vmatprep.subr.mxu1 %v9640_v2 }
 0x375   : > { %3659 = vmatmul.mubr.f32.gmra.mxu1 %v8377_v27  ;;  %v2668_v27 = vsel %vm2654_vm0, %v2651_v18, %v2653_v31  ;;  %v5258_v18 = vld [vmem:[%s9635_s5 + $0xf0] sm:$0xff] }
 0x376   : > { %5239 = vmatprep.mubr.msk.f32.mxu1 %vm2834_vm1, %v8405_v56  ;;  %v2724_v56 = vmax.f32 %v8219_v13, %v2653_v31  ;;  %3893 = vmatpush1.msra.mxu0 %v5258_v18 }
 0x377   : > { %v8934_v41 = vpop.f32.mrf.mxu1  ;;  %3894 = vmatprep.subr.mxu0 %v9640_v2 }
 0x379   : > { %3665 = vmatmul.mubr.f32.gmra.mxu1 %v8408_v52  ;;  %v8939_v55 = vpop.f32.mrf.mxu1 }
 0x37a   : > { %5240 = vmatprep.mubr.msk.f32.mxu1 %vm2834_vm1, %v8436_v11  ;;  %v2723_v11 = vmax.f32 %v8215_v42, %v2668_v27 }
 0x37d   : > { %3671 = vmatmul.mubr.f32.gmra.mxu1 %v8439_v32 }
 0x37e   : > { %5241 = vmatprep.mubr.msk.f32.mxu1 %vm2834_vm1, %v8467_v35 }
 0x37f   : > { %v8943_v52 = vpop.f32.mrf.mxu1 }
 0x381   : > { %3677 = vmatmul.mubr.f32.gmra.mxu1 %v8470_v12  ;;  %v8948_v32 = vpop.f32.mrf.mxu1 }
 0x382   : > { %5242 = vmatprep.mubr.msk.f32.mxu1 %vm2834_vm1, %v8498_v58 }
 0x385   : > { %3683 = vmatmul.mubr.f32.gmra.mxu1 %v8501_v19  ;;  %v8950_v35 = vpop.f32.mrf.mxu1  ;;  %v3445_v4 = vpop.f32.mrf.mxu0 }
 0x386   : > { %5243 = vmatprep.mubr.msk.f32.mxu1 %vm2834_vm1, %v8524_v49 }
 0x387   : > { %v2945_v12 = vpop.f32.mrf.mxu1  ;;  %v3447_v18 = vpop.f32.mrf.mxu0 }
 0x389   : > { %3689 = vmatmul.mubr.f32.gmra.mxu1 %v8532_v29 }
 0x38a   : > { %5244 = vmatprep.mubr.msk.f32.mxu1 %vm2834_vm1, %v8564_v10 }
 0x38d   : > { %3695 = vmatmul.mubr.f32.gmra.mxu1 %v8572_v48  ;;  %v2949_v58 = vpop.f32.mrf.mxu1 }
 0x38e   : > { %5245 = vmatprep.mubr.msk.f32.mxu1 %vm2834_vm1, %v2724_v56  ;;  %v5278_v56 = vld [vmem:[%s9635_s5 + $0x180] sm:$0xff] }
 0x38f   : > { %v2951_v19 = vpop.f32.mrf.mxu1  ;;  %4058 = vmatpush1.msra.mxu1 %v5278_v56 }
 0x390   : > { %4059 = vmatprep.subr.mxu1 %v9640_v2 }
 0x391   : > { %3701 = vmatmul.mubr.f32.gmra.mxu1 %v2723_v11 }
 0x395   : > { %v2955_v49 = vpop.f32.mrf.mxu1 }
 0x397   : > { %v2957_v29 = vpop.f32.mrf.mxu1 }
 0x39d   : > { %v2961_v10 = vpop.f32.mrf.mxu1 }
 0x39f   : > { %v2963_v13 = vpop.f32.mrf.mxu1 }
 0x3a5   : > { %v2967_v1 = vpop.f32.mrf.mxu1 }
 0x3a7   : > { %v2969_v9 = vpop.f32.mrf.mxu1 }
 0x3ad   : > { %v2973_v16 = vpop.f32.mrf.mxu1 }
 0x3af   : > { %v2975_v48 = vpop.f32.mrf.mxu1 }
 0x3b5   : > { %v2979_v38 = vpop.f32.mrf.mxu1 }
 0x3b7   : > { %v2981_v14 = vpop.f32.mrf.mxu1 }
 0x3bd   : > { %v2985_v25 = vpop.f32.mrf.mxu1 }
 0x3bf   : > { %v2987_v42 = vpop.f32.mrf.mxu1 }
 0x3c1   : > { %v8952_v59 = vpop.f32.mrf.mxu1 }
 0x3c3   : > { %v8954_v46 = vpop.f32.mrf.mxu1 }
 0x3c5   : > { %v8956_v0 = vpop.f32.mrf.mxu1 }
 0x3c7   : > { %v8958_v37 = vpop.f32.mrf.mxu1 }
 0x3c9   : > { %v8960_v30 = vpop.f32.mrf.mxu1 }
 0x3cb   : > { %v3073_v15 = vpop.f32.mrf.mxu1 }
 0x3cc   : > { %v8962_v22 = vadd.f32 %v3073_v15, %v2945_v12  ;;  %v5257_v12 = vld [vmem:[%s9635_s5 + $0xe8] sm:$0xff] }
 0x3cd   : > { %v3077_v17 = vpop.f32.mrf.mxu1  ;;  %3895 = vmatpush1.msra.mxu0 %v5257_v12 }
 0x3ce   : > { %v8964_v26 = vadd.f32 %v3077_v17, %v2949_v58  ;;  %3896 = vmatprep.subr.mxu0 %v9640_v2  ;;  %v5249_v17 = vld [vmem:[%s9635_s5 + $0xa8] sm:$0xff] }
 0x3cf   : > { %v3079_v24 = vpop.f32.mrf.mxu1 }
 0x3d0   : > { %v8966_v34 = vadd.f32 %v3079_v24, %v2951_v19  ;;  %v5277_v19 = vld [vmem:[%s9635_s5 + $0x178] sm:$0xff] }
 0x3d1   : > { %v3083_v62 = vpop.f32.mrf.mxu1  ;;  %4060 = vmatpush1.msra.mxu1 %v5277_v19 }
 0x3d2   : > { %v8968_v8 = vadd.f32 %v3083_v62, %v2955_v49  ;;  %v5256_v49 = vld [vmem:[%s9635_s5 + $0xe0] sm:$0xff]  ;;  %4061 = vmatprep.subr.mxu1 %v9640_v2 }
 0x3d3   : > { %v3085_v23 = vpop.f32.mrf.mxu1  ;;  %3897 = vmatpush1.msra.mxu0 %v5256_v49  ;;  %v5248_v62 = vld [vmem:[%s9635_s5 + $0xa0] sm:$0xff] }
 0x3d4   : > { %v8970_v6 = vadd.f32 %v3085_v23, %v2957_v29  ;;  %v5276_v29 = vld [vmem:[%s9635_s5 + $0x170] sm:$0xff]  ;;  %3898 = vmatprep.subr.mxu0 %v9640_v2 }
 0x3d5   : > { %v3089_v53 = vpop.f32.mrf.mxu1  ;;  %4062 = vmatpush1.msra.mxu1 %v5276_v29 }
 0x3d6   : > { %v8972_v28 = vadd.f32 %v3089_v53, %v2961_v10  ;;  %v5255_v10 = vld [vmem:[%s9635_s5 + $0xd8] sm:$0xff]  ;;  %4063 = vmatprep.subr.mxu1 %v9640_v2 }
 0x3d7   : > { %v3091_v44 = vpop.f32.mrf.mxu1  ;;  %3899 = vmatpush1.msra.mxu0 %v5255_v10  ;;  %v5247_v53 = vld [vmem:[%s9635_s5 + $0x98] sm:$0xff]  ;;  %v3060_v10 = vadd.f32 %v8952_v59, %v8934_v41  ;;  %v3068_v41 = vadd.f32 %v8958_v37, %v8948_v32  ;;  %v9805_v32 = vsub.s32 1, %v7692_v7 }
 0x3d8   : > { %v8974_v45 = vadd.f32 %v3091_v44, %v2963_v13  ;;  %v5275_v13 = vld [vmem:[%s9635_s5 + $0x168] sm:$0xff]  ;;  %3900 = vmatprep.subr.mxu0 %v9640_v2 }
 0x3d9   : > { %v3095_v54 = vpop.f32.mrf.mxu1  ;;  %4064 = vmatpush1.msra.mxu1 %v5275_v13 }
 0x3da   : > { %v8976_v57 = vadd.f32 %v3095_v54, %v2967_v1  ;;  %v5254_v1 = vld [vmem:[%s9635_s5 + $0xd0] sm:$0xff]  ;;  %4065 = vmatprep.subr.mxu1 %v9640_v2 }
 0x3db   : > { %v3097_v39 = vpop.f32.mrf.mxu1  ;;  %3901 = vmatpush1.msra.mxu0 %v5254_v1  ;;  %v5246_v54 = vld [vmem:[%s9635_s5 + $0x90] sm:$0xff] }
 0x3dc   : > { %v8978_v21 = vadd.f32 %v3097_v39, %v2969_v9  ;;  %v5274_v9 = vld [vmem:[%s9635_s5 + $0x160] sm:$0xff]  ;;  %3902 = vmatprep.subr.mxu0 %v9640_v2 }
 0x3dd   : > { %v3101_v61 = vpop.f32.mrf.mxu1  ;;  %4066 = vmatpush1.msra.mxu1 %v5274_v9  ;;  %v3062_v9 = vadd.f32 %v8954_v46, %v8939_v55  ;;  %v9804_v55 = vsub.s32 0, %v7692_v7 }
 0x3de   : > { %v8980_v63 = vadd.f32 %v3101_v61, %v2973_v16  ;;  %v5253_v16 = vld [vmem:[%s9635_s5 + $0xc8] sm:$0xff]  ;;  %4067 = vmatprep.subr.mxu1 %v9640_v2 }
 0x3df   : > { %v3103_v43 = vpop.f32.mrf.mxu1  ;;  %3903 = vmatpush1.msra.mxu0 %v5253_v16 }
 0x3e0   : > { %v8982_v40 = vadd.f32 %v3103_v43, %v2975_v48  ;;  %v5273_v48 = vld [vmem:[%s9635_s5 + $0x158] sm:$0xff]  ;;  %3904 = vmatprep.subr.mxu0 %v9640_v2 }
 0x3e1   : > { %v3107_v60 = vpop.f32.mrf.mxu1  ;;  %4068 = vmatpush1.msra.mxu1 %v5273_v48 }
 0x3e2   : > { %v8992_v50 = vadd.f32 %v3107_v60, %v2979_v38  ;;  %v5252_v38 = vld [vmem:[%s9635_s5 + $0xc0] sm:$0xff]  ;;  %4069 = vmatprep.subr.mxu1 %v9640_v2 }
 0x3e3   : > { %v3109_v51 = vpop.f32.mrf.mxu1  ;;  %3905 = vmatpush1.msra.mxu0 %v5252_v38  ;;  %v3066_v38 = vadd.f32 %v8956_v0, %v8943_v52  ;;  %v3072_v52 = vadd.f32 %v8960_v30, %v8950_v35 }
 0x3e4   : > { %v9004_v47 = vadd.f32 %v3109_v51, %v2981_v14  ;;  %v5272_v14 = vld [vmem:[%s9635_s5 + $0x150] sm:$0xff]  ;;  %3906 = vmatprep.subr.mxu0 %v9640_v2 }
 0x3e5   : > { %v3113_v31 = vpop.f32.mrf.mxu1  ;;  %4070 = vmatpush1.msra.mxu1 %v5272_v14 }
 0x3e6   : > { %v9014_v27 = vadd.f32 %v3113_v31, %v2985_v25  ;;  %v5251_v25 = vld [vmem:[%s9635_s5 + $0xb8] sm:$0xff]  ;;  %4071 = vmatprep.subr.mxu1 %v9640_v2 }
 0x3e7   : > { %v3115_v11 = vpop.f32.mrf.mxu1  ;;  %3907 = vmatpush1.msra.mxu0 %v5251_v25  ;;  %v3727_v25 = vld [vmem:[%s9634_s4] sm:$0x3] }
 0x3e8   : > { %v9024_v58 = vadd.f32 %v3115_v11, %v2987_v42  ;;  %v5250_v42 = vld [vmem:[%s9635_s5 + $0xb0] sm:$0xff]  ;;  %3908 = vmatprep.subr.mxu0 %v9640_v2  ;;  %v3451_v11 = vpop.f32.mrf.mxu0  ;;  %v9135_v46 = vrot.slane %v3727_v25, %v9804_v55  ;;  %v9141_v37 = vrot.slane %v3727_v25, %v9805_v32 }
 0x3e9   : > { %3909 = vmatpush1.msra.mxu0 %v5250_v42 }
 0x3ea   : > { %3910 = vmatprep.subr.mxu0 %v9640_v2  ;;  %v3453_v19 = vpop.f32.mrf.mxu0 }
 0x3eb   : > { %3911 = vmatpush1.msra.mxu0 %v5249_v17 }
 0x3ec   : > { %3912 = vmatprep.subr.mxu0 %v9640_v2  ;;  %v3457_v49 = vpop.f32.mrf.mxu0 }
 0x3ed   : > { %3913 = vmatpush1.msra.mxu0 %v5248_v62 }
 0x3ee   : > { %3914 = vmatprep.subr.mxu0 %v9640_v2  ;;  %v3459_v13 = vpop.f32.mrf.mxu0 }
 0x3ef   : > { %3915 = vmatpush1.msra.mxu0 %v5247_v53 }
 0x3f0   : > { %3916 = vmatprep.subr.mxu0 %v9640_v2  ;;  %v3463_v48 = vpop.f32.mrf.mxu0 }
 0x3f1   : > { %3917 = vmatpush1.msra.mxu0 %v5246_v54 }
 0x3f2   : > { %3946 = vmatprep.subr.mxu0 %v9640_v2  ;;  %v3465_v62 = vpop.f32.mrf.mxu0 }
 0x3f4   : > { %v3469_v54 = vpop.f32.mrf.mxu0 }
 0x3f6   : > { %v3471_v35 = vpop.f32.mrf.mxu0 }
 0x3f7   : > { %v3242_v15 = vpop.f32.mrf.mxu1 }
 0x3f8   : > { %v3301_v16 = vadd.f32 %v3242_v15, %v3060_v10 }
 0x3f9   : > { %v3244_v24 = vpop.f32.mrf.mxu1 }
 0x3fa   : > { %v3302_v14 = vadd.f32 %v3244_v24, %v3062_v9  ;;  %v3504_v17 = vadd.f32 %v3445_v4, %v3301_v16 }
 0x3fb   : > { %v3248_v23 = vpop.f32.mrf.mxu1 }
 0x3fc   : > { %v3303_v59 = vadd.f32 %v3248_v23, %v3066_v38  ;;  %v3505_v24 = vadd.f32 %v3447_v18, %v3302_v14 }
 0x3fd   : > { %v3250_v44 = vpop.f32.mrf.mxu1 }
 0x3fe   : > { %v3304_v0 = vadd.f32 %v3250_v44, %v3068_v41  ;;  %v3506_v23 = vadd.f32 %v3451_v11, %v3303_v59  ;;  %v5263_v11 = vld [vmem:[%s9635_s5 + $0x118] sm:$0xff]  ;;  %v9806_v41 = vmov 0.0  }
 0x3ff   : > { %v3254_v39 = vpop.f32.mrf.mxu1  ;;  %3947 = vmatpush2.msra.mxu0 %v5263_v11 }
 0x400   : > { %v3305_v9 = vadd.f32 %v3254_v39, %v3072_v52  ;;  %3948 = vmatprep.subr.mxu0 %v9806_v41 }
 0x401   : > { %v3256_v61 = vpop.f32.mrf.mxu1 }
 0x402   : > { %v3306_v4 = vadd.f32 %v3256_v61, %v8962_v22  ;;  %v3508_v7 = vadd.f32 %v3457_v49, %v3305_v9  ;;  %v5271_v22 = vld [vmem:[%s9635_s5 + $0x148] sm:$0xff]  ;;  %v3475_v61 = vpop.f32.mrf.mxu0 }
 0x403   : > { %v3260_v43 = vpop.f32.mrf.mxu1  ;;  %4072 = vmatpush1.msra.mxu1 %v5271_v22 }
 0x404   : > { %v3307_v30 = vadd.f32 %v3260_v43, %v8964_v26  ;;  %v3509_v26 = vadd.f32 %v3459_v13, %v3306_v4  ;;  %4073 = vmatprep.subr.mxu1 %v9806_v41 }
 0x405   : > { %v3262_v3 = vpop.f32.mrf.mxu1 }
 0x407   : > { %v9098_v60 = vpop.f32.mrf.mxu1 }
 0x408   : > { %v3309_v59 = vadd.f32 %v9098_v60, %v8968_v8  ;;  %v5269_v8 = vld [vmem:[%s9635_s5 + $0x138] sm:$0xff] }
 0x409   : > { %v9100_v5 = vpop.f32.mrf.mxu1 }
 0x40a   : > { %v3310_v4 = vadd.f32 %v9100_v5, %v8970_v6 }
 0x40b   : > { %v9102_v36 = vpop.f32.mrf.mxu1 }
 0x40c   : > { %v3513_v11 = vadd.f32 %v3471_v35, %v3310_v4 }
 0x40d   : > { %v9104_v51 = vpop.f32.mrf.mxu1 }
 0x40e   : > { %v3312_v6 = vadd.f32 %v9104_v51, %v8974_v45 }
 0x40f   : > { %v9106_v20 = vpop.f32.mrf.mxu1 }
 0x410   : > { %v3313_v45 = vadd.f32 %v9106_v20, %v8976_v57 }
 0x411   : > { %v9108_v33 = vpop.f32.mrf.mxu1 }
 0x412   : > { %v3314_v35 = vadd.f32 %v9108_v33, %v8978_v21 }
 0x413   : > { %v9110_v31 = vpop.f32.mrf.mxu1 }
 0x414   : > { %v3315_v21 = vadd.f32 %v9110_v31, %v8980_v63 }
 0x415   : > { %v9112_v56 = vpop.f32.mrf.mxu1 }
 0x417   : > { %v9114_v12 = vpop.f32.mrf.mxu1 }
 0x419   : > { %v9116_v29 = vpop.f32.mrf.mxu1 }
 0x41b   : > { %v9120_v1 = vpop.f32.mrf.mxu1 }
 0x41d   : > { %v9129_v42 = vpop.f32.mrf.mxu1 }
 0x41e   : > { %9803 = vst [vmem:[#allocation6_spill] sm:$0xff] %v9129_v42  ;;  %v3507_v42 = vadd.f32 %v3453_v19, %v3304_v0  ;;  %v3308_v19 = vadd.f32 %v3262_v3, %v8966_v34  ;;  %v5262_v0 = vld [vmem:[%s9635_s5 + $0x110] sm:$0xff] }
 0x41f   : > { %3949 = vmatpush2.msra.mxu0 %v5262_v0 }
 0x420   : > { %v3511_v9 = vadd.f32 %v3465_v62, %v3308_v19  ;;  %3959 = vmatprep.subr.mxu0 %v9806_v41  ;;  %v3311_v62 = vadd.f32 %v9102_v36, %v8972_v28 }
 0x422   : > { %v3514_v19 = vadd.f32 %v3475_v61, %v3311_v62  ;;  %v3317_v62 = vadd.f32 %v9114_v12, %v8992_v50  ;;  %v3319_v12 = vadd.f32 %v9120_v1, %v9014_v27 }
 0x42d   : > { %v3648_v53 = vpop.f32.mrf.mxu1 }
 0x42e   : > { %v3707_v15 = vadd.f32 %v3648_v53, %v3504_v17  ;;  %v3510_v53 = vadd.f32 %v3463_v48, %v3307_v30 }
 0x42f   : > { %v3650_v10 = vpop.f32.mrf.mxu1 }
 0x430   : > { %v3708_v2 = vadd.f32 %v3650_v10, %v3505_v24  ;;  %v3739_v38 = vadd.f32 %v9135_v46, %v3707_v15  ;;  %v5270_v15 = vld [vmem:[%s9635_s5 + $0x140] sm:$0xff]  ;;  %v3477_v24 = vpop.f32.mrf.mxu0 }
 0x431   : > { %v3654_v16 = vpop.f32.mrf.mxu1  ;;  %4074 = vmatpush1.msra.mxu1 %v5270_v15  ;;  %v3316_v15 = vadd.f32 %v9112_v56, %v8982_v40 }
 0x432   : > { %v3709_v55 = vadd.f32 %v3654_v16, %v3506_v23  ;;  %v3740_v18 = vadd.f32 %v9141_v37, %v3708_v2  ;;  %v3759_v2 = vmax.f32 %v3739_v38, 0.0  ;;  %4075 = vmatprep.subr.mxu1 %v9806_v41  ;;  %v3481_v23 = vpop.f32.mrf.mxu0 }
 0x433   : > { %v3656_v44 = vpop.f32.mrf.mxu1  ;;  %4076 = vmatpush1.msra.mxu1 %v5269_v8 }
 0x434   : > { %v3741_v39 = vadd.f32 %v9135_v46, %v3709_v55  ;;  %v3710_v14 = vadd.f32 %v3656_v44, %v3507_v42  ;;  %v3760_v52 = vmax.f32 %v3740_v18, 0.0  ;;  %v3512_v44 = vadd.f32 %v3469_v54, %v3309_v59  ;;  %4077 = vmatprep.subr.mxu1 %v9806_v41  ;;  %v5268_v18 = vld [vmem:[%s9635_s5 + $0x130] sm:$0xff]  ;;  %v5267_v54 = vld [vmem:[%s9635_s5 + $0x128] sm:$0xff] }
 0x435   : > { %v3660_v25 = vpop.f32.mrf.mxu1  ;;  %4078 = vmatpush1.msra.mxu1 %v5268_v18 }
 0x436   : > { %v3761_v43 = vmax.f32 %v3741_v39, 0.0  ;;  %v3742_v42 = vadd.f32 %v9141_v37, %v3710_v14  ;;  %v3711_v49 = vadd.f32 %v3660_v25, %v3508_v7  ;;  %4079 = vmatprep.subr.mxu1 %v9806_v41  ;;  %v3483_v7 = vpop.f32.mrf.mxu0 }
 0x437   : > { %v3662_v17 = vpop.f32.mrf.mxu1  ;;  %4080 = vmatpush1.msra.mxu1 %v5267_v54 }
 0x438   : > { %v9160_v34 = vmax.f32 %v3759_v2, %v3761_v43  ;;  %v3762_v3 = vmax.f32 %v3742_v42, 0.0  ;;  %v3712_v13 = vadd.f32 %v3662_v17, %v3509_v26  ;;  %v3743_v60 = vadd.f32 %v9135_v46, %v3711_v49  ;;  %4081 = vmatprep.subr.mxu1 %v9806_v41  ;;  %v5266_v2 = vld [vmem:[%s9635_s5 + $0x120] sm:$0xff]  ;;  %v3487_v43 = vpop.f32.mrf.mxu0  ;;  %v5283_v17 = vld [vmem:[%s9635_s5 + $0x1a8] sm:$0xff] }
 0x439   : > { %v3666_v10 = vpop.f32.mrf.mxu1  ;;  %v3515_v49 = vadd.f32 %v3477_v24, %v3312_v6  ;;  %4082 = vmatpush1.msra.mxu1 %v5266_v2  ;;  %v3517_v24 = vadd.f32 %v3483_v7, %v3314_v35  ;;  %v3518_v4 = vadd.f32 %v3487_v43, %v3315_v21  ;;  %v9807_v7 = vld [vmem:[#allocation6_spill] sm:$0xff] }
 0x43a   : > { %v3713_v48 = vadd.f32 %v3666_v10, %v3510_v53  ;;  %v9172_v32 = vmax.f32 %v3760_v52, %v3762_v3  ;;  %v3744_v38 = vadd.f32 %v9141_v37, %v3712_v13  ;;  %v3763_v28 = vmax.f32 %v3743_v60, 0.0  ;;  %4111 = vmatprep.subr.mxu1 %v9806_v41  ;;  %v5282_v13 = vld [vmem:[%s9635_s5 + $0x1a0] sm:$0xff]  ;;  %v3489_v0 = vpop.f32.mrf.mxu0 }
 0x43b   : > { %v3668_v16 = vpop.f32.mrf.mxu1  ;;  %4112 = vmatpush2.msra.mxu1 %v5283_v17  ;;  %v3516_v3 = vadd.f32 %v3481_v23, %v3313_v45  ;;  %v3519_v6 = vadd.f32 %v3489_v0, %v3316_v15 }
 0x43c   : > { %v3745_v55 = vadd.f32 %v9135_v46, %v3713_v48  ;;  %v3714_v30 = vadd.f32 %v3668_v16, %v3511_v9  ;;  %v3764_v51 = vmax.f32 %v3744_v38, 0.0  ;;  %4113 = vmatprep.subr.mxu1 %v9806_v41  ;;  %v3493_v48 = vpop.f32.mrf.mxu0  ;;  %v3318_v38 = vadd.f32 %v9116_v29, %v9004_v47 }
 0x43d   : > { %v3672_v5 = vpop.f32.mrf.mxu1  ;;  %4114 = vmatpush2.msra.mxu1 %v5282_v13 }
 0x43e   : > { %v3765_v36 = vmax.f32 %v3745_v55, 0.0  ;;  %v3746_v39 = vadd.f32 %v9141_v37, %v3714_v30  ;;  %v3715_v14 = vadd.f32 %v3672_v5, %v3512_v44  ;;  %4237 = vmatprep.subr.mxu1 %v9806_v41  ;;  %v3495_v50 = vpop.f32.mrf.mxu0 }
 0x43f   : > { %v3674_v22 = vpop.f32.mrf.mxu1 }
 0x440   : > { %v3766_v25 = vmax.f32 %v3746_v39, 0.0  ;;  %v9195_v26 = vmax.f32 %v3763_v28, %v3765_v36  ;;  %v3716_v42 = vadd.f32 %v3674_v22, %v3513_v11  ;;  %v3747_v57 = vadd.f32 %v9135_v46, %v3715_v14  ;;  %v3499_v54 = vpop.f32.mrf.mxu0 }
 0x441   : > { %v3678_v61 = vpop.f32.mrf.mxu1  ;;  %v3520_v14 = vadd.f32 %v3493_v48, %v3317_v62  ;;  %v3320_v11 = vadd.f32 %v9807_v7, %v9024_v58  ;;  %v3522_v2 = vadd.f32 %v3499_v54, %v3319_v12  ;;  %v3859_v62 = vld [vmem:[%s9635_s5 + $0x70] sm:$0xff]  ;;  %v3849_v7 = vld [vmem:[%s9635_s5 + $0x20] sm:$0xff] }
 0x442   : > { %v3717_v20 = vadd.f32 %v3678_v61, %v3514_v19  ;;  %3803 = vrot.lane.b32.xlu0 %v9195_v26, %s5499_s29  ;;  %v9206_v59 = vmax.f32 %v3764_v51, %v3766_v25  ;;  %v3748_v63 = vadd.f32 %v9141_v37, %v3716_v42  ;;  %v3767_v10 = vmax.f32 %v3747_v57, 0.0  ;;  %v5318_v12 = vld [vmem:[%s9635_s5 + $0x2b0] sm:$0xff] }
 0x443   : > { %v3680_v33 = vpop.f32.mrf.mxu1  ;;  %v3521_v19 = vadd.f32 %v3495_v50, %v3318_v38  ;;  %v5319_v50 = vld [vmem:[%s9635_s5 + $0x2b8] sm:$0xff] }
 0x444   : > { %v3749_v53 = vadd.f32 %v9135_v46, %v3717_v20  ;;  %v3718_v52 = vadd.f32 %v3680_v33, %v3515_v49  ;;  %3805 = vrot.lane.b32.xlu1 %v9206_v59, %s5499_s29  ;;  %v3768_v55 = vmax.f32 %v3748_v63, 0.0  ;;  %v3501_v49 = vpop.f32.mrf.mxu0 }
 0x445   : > { %v3684_v31 = vpop.f32.mrf.mxu1  ;;  %v3523_v17 = vadd.f32 %v3501_v49, %v3320_v11  ;;  %v5314_v11 = vld [vmem:[%s9635_s5 + $0x290] sm:$0xff]  ;;  %v3862_v49 = vld [vmem:[%s9635_s5 + $0x88] sm:$0xff] }
 0x446   : > { %v3769_v9 = vmax.f32 %v3749_v53, 0.0  ;;  %v3750_v8 = vadd.f32 %v9141_v37, %v3718_v52  ;;  %v3719_v60 = vadd.f32 %v3684_v31, %v3516_v3 }
 0x447   : > { %v3686_v23 = vpop.f32.mrf.mxu1 }
 0x448   : > { %v9228_v16 = vmax.f32 %v3767_v10, %v3769_v9  ;;  %v3770_v40 = vmax.f32 %v3750_v8, 0.0  ;;  %v3720_v56 = vadd.f32 %v3686_v23, %v3517_v24  ;;  %3801 = vrot.lane.b32.xlu1 %v9172_v32, %s5499_s29  ;;  %v3751_v44 = vadd.f32 %v9135_v46, %v3719_v60  ;;  %v3860_v23 = vld [vmem:[%s9635_s5 + $0x78] sm:$0xff] }
 0x449   : > { %v3690_v30 = vpop.f32.mrf.mxu1 }
 0x44a   : > { %v3721_v18 = vadd.f32 %v3690_v30, %v3518_v4  ;;  %v5425_v5 = vpack.i.bf16 %v9228_v16, %v9160_v34  ;;  %v9239_v36 = vmax.f32 %v3768_v55, %v3770_v40  ;;  %v3752_v39 = vadd.f32 %v9141_v37, %v3720_v56  ;;  %v3857_v56 = vld [vmem:[%s9635_s5 + $0x60] sm:$0xff]  ;;  %v3855_v30 = vld [vmem:[%s9635_s5 + $0x50] sm:$0xff] }
 0x44b   : > { %v3692_v28 = vpop.f32.mrf.mxu1  ;;  %v3771_v45 = vmax.f32 %v3751_v44, 0.0 }
 0x44c   : > { %v3753_v47 = vadd.f32 %v9135_v46, %v3721_v18  ;;  %v3722_v29 = vadd.f32 %v3692_v28, %v3519_v6  ;;  %5426 = vrot.lane.b32.xlu0 %v5425_v5, %s5499_s29  ;;  %v3772_v43 = vmax.f32 %v3752_v39, 0.0  ;;  %v3854_v5 = vld [vmem:[%s9635_s5 + $0x48] sm:$0xff]  ;;  %v3852_v28 = vld [vmem:[%s9635_s5 + $0x38] sm:$0xff]  ;;  %v3851_v39 = vld [vmem:[%s9635_s5 + $0x30] sm:$0xff] }
 0x44d   : > { %v3696_v22 = vpop.f32.mrf.mxu1 }
 0x44e   : > { %v3773_v51 = vmax.f32 %v3753_v47, 0.0  ;;  %v3754_v27 = vadd.f32 %v9141_v37, %v3722_v29  ;;  %v3723_v1 = vadd.f32 %v3696_v22, %v3520_v14  ;;  %v5316_v47 = vld [vmem:[%s9635_s5 + $0x2a0] sm:$0xff]  ;;  %v3850_v29 = vld [vmem:[%s9635_s5 + $0x28] sm:$0xff]  ;;  %v5315_v14 = vld [vmem:[%s9635_s5 + $0x298] sm:$0xff] }
 0x44f   : > { %v3698_v25 = vpop.f32.mrf.mxu1  ;;  %v3848_v22 = vld [vmem:[%s9635_s5 + $0x18] sm:$0xff] }
 0x450   : > { %v9247_v35 = vmax.f32 %v3771_v45, %v3773_v51  ;;  %v3774_v42 = vmax.f32 %v3754_v27, 0.0  ;;  %v3724_v61 = vadd.f32 %v3698_v25, %v3521_v19  ;;  %3809 = vrot.lane.b32.xlu0 %v9239_v36, %s5499_s29  ;;  %v3755_v58 = vadd.f32 %v9135_v46, %v3723_v1  ;;  %v5313_v19 = vld [vmem:[%s9635_s5 + $0x288] sm:$0xff]  ;;  %v3847_v51 = vld [vmem:[%s9635_s5 + $0x10] sm:$0xff]  ;;  %v5312_v27 = vld [vmem:[%s9635_s5 + $0x280] sm:$0xff] }
 0x451   : > { %v3702_v57 = vpop.f32.mrf.mxu1  ;;  %v3846_v25 = vld [vmem:[%s9635_s5 + $0x8] sm:$0xff] }
 0x452   : > { %v3725_v20 = vadd.f32 %v3702_v57, %v3522_v2  ;;  %v9252_v21 = vmax.f32 %v3772_v43, %v3774_v42  ;;  %v3756_v53 = vadd.f32 %v9141_v37, %v3724_v61  ;;  %v3775_v13 = vmax.f32 %v3755_v58, 0.0  ;;  %v5311_v43 = vld [vmem:[%s9635_s5 + $0x278] sm:$0xff]  ;;  %v3845_v42 = vld [vmem:[%s9635_s5] sm:$0xff]  ;;  %v5310_v61 = vld [vmem:[%s9635_s5 + $0x270] sm:$0xff] }
 0x453   : > { %v3704_v33 = vpop.f32.mrf.mxu1  ;;  %v5309_v58 = vld [vmem:[%s9635_s5 + $0x268] sm:$0xff] }
 0x454   : > { %v3757_v52 = vadd.f32 %v9135_v46, %v3725_v20  ;;  %v3726_v3 = vadd.f32 %v3704_v33, %v3523_v17  ;;  %3813 = vrot.lane.b32.xlu0 %v9252_v21, %s5499_s29  ;;  %v3776_v63 = vmax.f32 %v3756_v53, 0.0  ;;  %v3861_v20 = vld [vmem:[%s9635_s5 + $0x80] sm:$0xff] }
 0x455   : > { %v5308_v33 = vld [vmem:[%s9635_s5 + $0x260] sm:$0xff] }
 0x456   : > { %v3777_v0 = vmax.f32 %v3757_v52, 0.0  ;;  %v3758_v15 = vadd.f32 %v9141_v37, %v3726_v3  ;;  %v5300_v52 = vld [vmem:[%s9635_s5 + $0x228] sm:$0xff] }
 0x458   : > { %v9259_v31 = vmax.f32 %v3775_v13, %v3777_v0  ;;  %v3778_v24 = vmax.f32 %v3758_v15, 0.0  ;;  %v5307_v13 = vld [vmem:[%s9635_s5 + $0x258] sm:$0xff]  ;;  %v5305_v15 = vld [vmem:[%s9635_s5 + $0x248] sm:$0xff] }
 0x459   : > { %v5298_v0 = vld [vmem:[%s9635_s5 + $0x218] sm:$0xff] }
 0x45a   : > { %v5430_v10 = vpack.i.bf16 %v9259_v31, %v9247_v35  ;;  %v9263_v9 = vmax.f32 %v3776_v63, %v3778_v24  ;;  %v5297_v63 = vld [vmem:[%s9635_s5 + $0x210] sm:$0xff]  ;;  %v5304_v24 = vld [vmem:[%s9635_s5 + $0x240] sm:$0xff] }
 0x45c   : > { %5431 = vrot.lane.b32.xlu1 %v5430_v10, %s5499_s29 }
 0x460   : > { %3817 = vrot.lane.b32.xlu1 %v9263_v9, %s5499_s29 }
 0x4b4   : > { %v3804_v46 = vpop.permute.xlu0 %3803 }
 0x4b6   : > { %v3806_v8 = vpop.permute.xlu1 %3805 }
 0x4b7   : > { %v3821_v37 = vsel %vm3819_vm2, %v3804_v46, %v3806_v8  ;;  %v3838_v60 = vmax.f32 %v9206_v59, %v3806_v8  ;;  %v5321_v46 = vld [vmem:[%s9635_s5 + $0x2c8] sm:$0xff] }
 0x4b8   : > { %v3837_v48 = vmax.f32 %v9195_v26, %v3821_v37  ;;  %v3858_v26 = vld [vmem:[%s9635_s5 + $0x68] sm:$0xff]  ;;  %v5295_v37 = vld [vmem:[%s9635_s5 + $0x200] sm:$0xff] }
 0x4b9   : > { %5264 = vmatprep.mubr.msk.f32.mxu0 %vm3882_vm3, %v3838_v60  ;;  %v5320_v60 = vld [vmem:[%s9635_s5 + $0x2c0] sm:$0xff] }
 0x4ba   : > { %v9275_v4 = vpop.permute.xlu1 %3801  ;;  %3951 = vmatmul.mubr.f32.vlgmr.msra.gmra.mxu0 %v3837_v48  ;;  %v5294_v48 = vld [vmem:[%s9635_s5 + $0x1f8] sm:$0xff] }
 0x4bb   : > { %v3836_v40 = vmax.f32 %v9172_v32, %v9275_v4  ;;  %3960 = vmatpush1.msra.mxu0 %v3860_v23  ;;  %v3856_v32 = vld [vmem:[%s9635_s5 + $0x58] sm:$0xff] }
 0x4bc   : > { %3961 = vmatprep.subr.mxu0 %v9806_v41 }
 0x4bd   : > { %3962 = vmatpush1.msra.mxu0 %v3859_v62  ;;  %5265 = vmatprep.mubr.msk.f32.mxu0 %vm3882_vm3, %v3836_v40  ;;  %v5292_v62 = vld [vmem:[%s9635_s5 + $0x1e8] sm:$0xff]  ;;  %v5290_v40 = vld [vmem:[%s9635_s5 + $0x1d8] sm:$0xff] }
 0x4be   : > { %3963 = vmatprep.subr.mxu0 %v9806_v41  ;;  %v9288_v59 = vpop.permute.xlu0 %5426 }
 0x4bf   : > { %3964 = vmatpush1.msra.mxu0 %v3858_v26  ;;  %v5429_v38 = vunpack.i.h.bf16 %v9288_v59  ;;  %v5428_v2 = vunpack.i.l.bf16 %v9288_v59  ;;  %v5289_v26 = vld [vmem:[%s9635_s5 + $0x1d0] sm:$0xff]  ;;  %v5288_v59 = vld [vmem:[%s9635_s5 + $0x1c8] sm:$0xff] }
 0x4c0   : > { %3965 = vmatprep.subr.mxu0 %v9806_v41 }
 0x4c1   : > { %3966 = vmatpush1.msra.mxu0 %v3857_v56  ;;  %v3820_v57 = vsel %vm3819_vm2, %v5428_v2, %v9275_v4  ;;  %v5293_v4 = vld [vmem:[%s9635_s5 + $0x1f0] sm:$0xff]  ;;  %v5287_v56 = vld [vmem:[%s9635_s5 + $0x1c0] sm:$0xff] }
 0x4c2   : > { %3967 = vmatprep.subr.mxu0 %v9806_v41  ;;  %v3810_v55 = vpop.permute.xlu0 %3809  ;;  %v3835_v53 = vmax.f32 %v9160_v34, %v3820_v57  ;;  %v5299_v34 = vld [vmem:[%s9635_s5 + $0x220] sm:$0xff] }
 0x4c3   : > { %3968 = vmatpush1.msra.mxu0 %v3856_v32  ;;  %v3822_v44 = vsel %vm3819_vm2, %v5429_v38, %v3810_v55  ;;  %v3840_v18 = vmax.f32 %v9239_v36, %v3810_v55  ;;  %v5317_v36 = vld [vmem:[%s9635_s5 + $0x2a8] sm:$0xff]  ;;  %v5286_v32 = vld [vmem:[%s9635_s5 + $0x1b8] sm:$0xff]  ;;  %v5285_v55 = vld [vmem:[%s9635_s5 + $0x1b0] sm:$0xff] }
 0x4c4   : > { %v3839_v6 = vmax.f32 %v9228_v16, %v3822_v44  ;;  %3969 = vmatprep.subr.mxu0 %v9806_v41  ;;  %v3853_v16 = vld [vmem:[%s9635_s5 + $0x40] sm:$0xff] }
 0x4c5   : > { %3970 = vmatpush1.msra.mxu0 %v3855_v30  ;;  %5284 = vmatprep.mubr.msk.f32.mxu1 %vm3882_vm3, %v3840_v18  ;;  %v5302_v30 = vld [vmem:[%s9635_s5 + $0x238] sm:$0xff]  ;;  %v5301_v18 = vld [vmem:[%s9635_s5 + $0x230] sm:$0xff] }
 0x4c6   : > { %3971 = vmatprep.subr.mxu0 %v9806_v41  ;;  %4116 = vmatmul.mubr.f32.vlgmr.msra.gmra.mxu1 %v3839_v6  ;;  %v9406_v17 = vpop.permute.xlu0 %3813 }
 0x4c7   : > { %3972 = vmatpush1.msra.mxu0 %v3854_v5  ;;  %4238 = vmatpush1.msra.mxu1 %v5319_v50  ;;  %v3842_v3 = vmax.f32 %v9252_v21, %v9406_v17  ;;  %v5306_v21 = vld [vmem:[%s9635_s5 + $0x250] sm:$0xff]  ;;  %v4332_v5 = vld [vmem:[%s9637_s7 + $0x78] sm:$0xff] }
 0x4c8   : > { %3973 = vmatprep.subr.mxu0 %v9806_v41  ;;  %4239 = vmatprep.subr.mxu1 %v9806_v41  ;;  %v4331_v50 = vld [vmem:[%s9637_s7 + $0x70] sm:$0xff] }
 0x4c9   : > { %3974 = vmatpush1.msra.mxu0 %v3853_v16  ;;  %4240 = vmatpush1.msra.mxu1 %v5318_v12  ;;  %v4329_v16 = vld [vmem:[%s9637_s7 + $0x60] sm:$0xff]  ;;  %v4328_v12 = vld [vmem:[%s9637_s7 + $0x58] sm:$0xff] }
 0x4ca   : > { %3975 = vmatprep.subr.mxu0 %v9806_v41  ;;  %4241 = vmatprep.subr.mxu1 %v9806_v41 }
 0x4cb   : > { %3976 = vmatpush1.msra.mxu0 %v3852_v28  ;;  %4242 = vmatpush1.msra.mxu1 %v5317_v36  ;;  %v4327_v28 = vld [vmem:[%s9637_s7 + $0x50] sm:$0xff]  ;;  %v4326_v36 = vld [vmem:[%s9637_s7 + $0x48] sm:$0xff] }
 0x4cc   : > { %3977 = vmatprep.subr.mxu0 %v9806_v41  ;;  %4243 = vmatprep.subr.mxu1 %v9806_v41 }
 0x4cd   : > { %3978 = vmatpush1.msra.mxu0 %v3851_v39  ;;  %4244 = vmatpush1.msra.mxu1 %v5316_v47  ;;  %v4325_v39 = vld [vmem:[%s9637_s7 + $0x40] sm:$0xff]  ;;  %v4324_v47 = vld [vmem:[%s9637_s7 + $0x38] sm:$0xff] }
 0x4ce   : > { %3979 = vmatprep.subr.mxu0 %v9806_v41  ;;  %4245 = vmatprep.subr.mxu1 %v9806_v41  ;;  %v9346_v54 = vpop.permute.xlu1 %5431 }
 0x4cf   : > { %3980 = vmatpush1.msra.mxu0 %v3850_v29  ;;  %4246 = vmatpush1.msra.mxu1 %v5315_v14  ;;  %v5434_v10 = vunpack.i.h.bf16 %v9346_v54  ;;  %v5433_v38 = vunpack.i.l.bf16 %v9346_v54  ;;  %v4323_v29 = vld [vmem:[%s9637_s7 + $0x30] sm:$0xff]  ;;  %v4322_v14 = vld [vmem:[%s9637_s7 + $0x28] sm:$0xff]  ;;  %v4321_v54 = vld [vmem:[%s9637_s7 + $0x20] sm:$0xff] }
 0x4d0   : > { %3981 = vmatprep.subr.mxu0 %v9806_v41  ;;  %4247 = vmatprep.subr.mxu1 %v9806_v41 }
 0x4d1   : > { %3982 = vmatpush1.msra.mxu0 %v3849_v7  ;;  %4248 = vmatpush1.msra.mxu1 %v5314_v11  ;;  %v3823_v44 = vsel %vm3819_vm2, %v5433_v38, %v9406_v17  ;;  %v4320_v7 = vld [vmem:[%s9637_s7 + $0x18] sm:$0xff]  ;;  %v4319_v11 = vld [vmem:[%s9637_s7 + $0x10] sm:$0xff] }
 0x4d2   : > { %3983 = vmatprep.subr.mxu0 %v9806_v41  ;;  %4249 = vmatprep.subr.mxu1 %v9806_v41  ;;  %v9364_v45 = vpop.permute.xlu1 %3817  ;;  %v3841_v6 = vmax.f32 %v9247_v35, %v3823_v44  ;;  %v4330_v35 = vld [vmem:[%s9637_s7 + $0x68] sm:$0xff] }
 0x4d3   : > { %v3844_v1 = vmax.f32 %v9263_v9, %v9364_v45  ;;  %3984 = vmatpush1.msra.mxu0 %v3848_v22  ;;  %4250 = vmatpush1.msra.mxu1 %v5313_v19  ;;  %v5296_v9 = vld [vmem:[%s9635_s5 + $0x208] sm:$0xff]  ;;  %v3824_v8 = vsel %vm3819_vm2, %v5434_v10, %v9364_v45  ;;  %v4317_v19 = vld [vmem:[%s9637_s7] sm:$0xff] }
 0x4d4   : > { %3985 = vmatprep.subr.mxu0 %v9806_v41  ;;  %4251 = vmatprep.subr.mxu1 %v9806_v41  ;;  %v3843_v23 = vmax.f32 %v9259_v31, %v3824_v8  ;;  %v5291_v31 = vld [vmem:[%s9635_s5 + $0x1e0] sm:$0xff]  ;;  %v4318_v22 = vld [vmem:[%s9637_s7 + $0x8] sm:$0xff] }
 0x4d5   : > { %3986 = vmatpush1.msra.mxu0 %v3847_v51  ;;  %4252 = vmatpush1.msra.mxu1 %v5312_v27 }
 0x4d6   : > { %3987 = vmatprep.subr.mxu0 %v9806_v41  ;;  %4253 = vmatprep.subr.mxu1 %v9806_v41 }
 0x4d7   : > { %5322 = vmatprep.mubr.msk.f32.mxu1 %vm3882_vm3, %v3844_v1  ;;  %3988 = vmatpush1.msra.mxu0 %v3846_v25 }
 0x4d8   : > { %4254 = vmatpush1.msra.mxu1 %v5311_v43  ;;  %3989 = vmatprep.subr.mxu0 %v9806_v41 }
 0x4d9   : > { %4255 = vmatprep.subr.mxu1 %v9806_v41  ;;  %3990 = vmatpush1.msra.mxu0 %v3845_v42 }
 0x4da   : > { %4256 = vmatpush1.msra.mxu1 %v5310_v61  ;;  %4019 = vmatprep.subr.mxu0 %v9806_v41 }
 0x4db   : > { %4257 = vmatprep.subr.mxu1 %v9806_v41  ;;  %4020 = vmatpush2.msra.mxu0 %v3862_v49 }
 0x4dc   : > { %4258 = vmatpush1.msra.mxu1 %v5309_v58  ;;  %4021 = vmatprep.subr.mxu0 %v9806_v41 }
 0x4dd   : > { %4259 = vmatprep.subr.mxu1 %v9806_v41  ;;  %4022 = vmatpush2.msra.mxu0 %v3861_v20  ;;  %v5323_v20 = vld [vmem:[%s9636_s6] ss:$0 sm:$0xff] }
 0x4de   : > { %4260 = vmatpush1.msra.mxu1 %v5308_v33  ;;  %4024 = vmatmul.mubr.f32.vlgmr.msra.gmra.mxu0 %v3835_v53 }
 0x4df   : > { %4144 = vmatprep.subr.mxu0 %v9806_v41  ;;  %4261 = vmatprep.subr.mxu1 %v9806_v41 }
 0x4e0   : > { %4145 = vmatpush1.msra.mxu0 %v5300_v52  ;;  %5303 = vmatprep.mubr.msk.f32.mxu0 %vm3882_vm3, %v3842_v3  ;;  %v5324_v52 = vld [vmem:[%s9638_s8] ss:$0 sm:$0xff] }
 0x4e1   : > { %4262 = vmatpush1.msra.mxu1 %v5307_v13  ;;  %4146 = vmatprep.subr.mxu0 %v9806_v41 }
 0x4e2   : > { %4263 = vmatprep.subr.mxu1 %v9806_v41  ;;  %4147 = vmatpush1.msra.mxu0 %v5299_v34 }
 0x4e3   : > { %4264 = vmatpush1.msra.mxu1 %v5306_v21  ;;  %4148 = vmatprep.subr.mxu0 %v9806_v41 }
 0x4e4   : > { %4265 = vmatprep.subr.mxu1 %v9806_v41  ;;  %4149 = vmatpush1.msra.mxu0 %v5298_v0 }
 0x4e5   : > { %4266 = vmatpush1.msra.mxu1 %v5305_v15  ;;  %4150 = vmatprep.subr.mxu0 %v9806_v41 }
 0x4e6   : > { %4267 = vmatprep.subr.mxu1 %v9806_v41  ;;  %4151 = vmatpush1.msra.mxu0 %v5297_v63 }
 0x4e7   : > { %4268 = vmatpush1.msra.mxu1 %v5304_v24  ;;  %4152 = vmatprep.subr.mxu0 %v9806_v41 }
 0x4e8   : > { %4297 = vmatprep.subr.mxu1 %v9806_v41  ;;  %4153 = vmatpush1.msra.mxu0 %v5296_v9 }
 0x4e9   : > { %4298 = vmatpush2.msra.mxu1 %v5321_v46  ;;  %4154 = vmatprep.subr.mxu0 %v9806_v41 }
 0x4ea   : > { %4299 = vmatprep.subr.mxu1 %v9806_v41  ;;  %4155 = vmatpush1.msra.mxu0 %v5295_v37 }
 0x4eb   : > { %4300 = vmatpush2.msra.mxu1 %v5320_v60  ;;  %4156 = vmatprep.subr.mxu0 %v9806_v41 }
 0x4ec   : > { %4302 = vmatmul.mubr.f32.vlgmr.msra.gmra.mxu1 %v3843_v23  ;;  %4157 = vmatpush1.msra.mxu0 %v5294_v48 }
 0x4ed   : > { %4158 = vmatprep.subr.mxu0 %v9806_v41 }
 0x4ee   : > { %4159 = vmatpush1.msra.mxu0 %v5293_v4 }
 0x4ef   : > { %4160 = vmatprep.subr.mxu0 %v9806_v41 }
 0x4f0   : > { %4161 = vmatpush1.msra.mxu0 %v5292_v62 }
 0x4f1   : > { %4162 = vmatprep.subr.mxu0 %v9806_v41 }
 0x4f2   : > { %4163 = vmatpush1.msra.mxu0 %v5291_v31 }
 0x4f3   : > { %4164 = vmatprep.subr.mxu0 %v9806_v41 }
 0x4f4   : > { %4165 = vmatpush1.msra.mxu0 %v5290_v40 }
 0x4f5   : > { %4166 = vmatprep.subr.mxu0 %v9806_v41 }
 0x4f6   : > { %4167 = vmatpush1.msra.mxu0 %v5289_v26 }
 0x4f7   : > { %4168 = vmatprep.subr.mxu0 %v9806_v41 }
 0x4f8   : > { %4169 = vmatpush1.msra.mxu0 %v5288_v59 }
 0x4f9   : > { %4170 = vmatprep.subr.mxu0 %v9806_v41 }
 0x4fa   : > { %4171 = vmatpush1.msra.mxu0 %v5287_v56 }
 0x4fb   : > { %4172 = vmatprep.subr.mxu0 %v9806_v41 }
 0x4fc   : > { %4173 = vmatpush1.msra.mxu0 %v5286_v32 }
 0x4fd   : > { %4174 = vmatprep.subr.mxu0 %v9806_v41 }
 0x4fe   : > { %4175 = vmatpush1.msra.mxu0 %v5285_v55 }
 0x4ff   : > { %4204 = vmatprep.subr.mxu0 %v9806_v41 }
 0x500   : > { %4205 = vmatpush2.msra.mxu0 %v5302_v30 }
 0x501   : > { %4206 = vmatprep.subr.mxu0 %v9806_v41 }
 0x502   : > { %4207 = vmatpush2.msra.mxu0 %v5301_v18 }
 0x503   : > { %4209 = vmatmul.mubr.f32.vlgmr.msra.gmra.mxu0 %v3841_v6  ;;  %5347 = vmatprep.subr.mxu0 %v9806_v41 }
 0x504   : > { %5348 = vmatpush3.msra.mxu0 %v4332_v5  ;;  %5379 = vmatprep.mubr.msk.f32.mxu0 %vm5500_vm4, %v9806_v41 }
 0x505   : > { %5349 = vmatprep.subr.mxu0 %v9806_v41 }
 0x506   : > { %5350 = vmatpush3.msra.mxu0 %v4331_v50 }
 0x507   : > { %5351 = vmatprep.subr.mxu0 %v9806_v41 }
 0x508   : > { %5352 = vmatpush3.msra.mxu0 %v4330_v35 }
 0x509   : > { %5353 = vmatprep.subr.mxu0 %v9806_v41 }
 0x50a   : > { %5354 = vmatpush3.msra.mxu0 %v4329_v16 }
 0x50b   : > { %5355 = vmatprep.subr.mxu0 %v9806_v41 }
 0x50c   : > { %5356 = vmatpush3.msra.mxu0 %v4328_v12 }
 0x50d   : > { %5357 = vmatprep.subr.mxu0 %v9806_v41 }
 0x50e   : > { %5358 = vmatpush3.msra.mxu0 %v4327_v28 }
 0x50f   : > { %5359 = vmatprep.subr.mxu0 %v9806_v41 }
 0x510   : > { %5360 = vmatpush3.msra.mxu0 %v4326_v36 }
 0x511   : > { %5361 = vmatprep.subr.mxu0 %v9806_v41 }
 0x512   : > { %5362 = vmatpush3.msra.mxu0 %v4325_v39 }
 0x513   : > { %5363 = vmatprep.subr.mxu0 %v9806_v41 }
 0x514   : > { %5364 = vmatpush3.msra.mxu0 %v4324_v47 }
 0x515   : > { %5365 = vmatprep.subr.mxu0 %v9806_v41 }
 0x516   : > { %5366 = vmatpush3.msra.mxu0 %v4323_v29 }
 0x517   : > { %5367 = vmatprep.subr.mxu0 %v9806_v41 }
 0x518   : > { %5368 = vmatpush3.msra.mxu0 %v4322_v14 }
 0x519   : > { %5369 = vmatprep.subr.mxu0 %v9806_v41 }
 0x51a   : > { %5370 = vmatpush3.msra.mxu0 %v4321_v54 }
 0x51b   : > { %5371 = vmatprep.subr.mxu0 %v9806_v41 }
 0x51c   : > { %5372 = vmatpush3.msra.mxu0 %v4320_v7 }
 0x51d   : > { %5373 = vmatprep.subr.mxu0 %v9806_v41 }
 0x51e   : > { %5374 = vmatpush3.msra.mxu0 %v4319_v11 }
 0x51f   : > { %5375 = vmatprep.subr.mxu0 %v9806_v41 }
 0x520   : > { %5376 = vmatpush3.msra.mxu0 %v4318_v22 }
 0x521   : > { %5377 = vmatprep.subr.mxu0 %v9806_v41 }
 0x522   : > { %5378 = vmatpush3.msra.mxu0 %v4317_v19 }
 0x57a   : > { %v3952_v45 = vpop.f32.mrf.mxu0 }
 0x57c   : > { %v3954_v51 = vpop.f32.mrf.mxu0 }
 0x586   : > { %v4117_v27 = vpop.f32.mrf.mxu1 }
 0x588   : > { %v4119_v1 = vpop.f32.mrf.mxu1 }
 0x59e   : > { %v4025_v25 = vpop.f32.mrf.mxu0 }
 0x59f   : > { %v4026_v61 = vadd.f32 %v4025_v25, %v3952_v45 }
 0x5a0   : > { %v4027_v2 = vpop.f32.mrf.mxu0 }
 0x5a1   : > { %v4121_v49 = vadd.f32 %v4117_v27, %v4026_v61 }
 0x5ac   : > { %v4303_v43 = vpop.f32.mrf.mxu1 }
 0x5ae   : > { %v4305_v42 = vpop.f32.mrf.mxu1 }
 0x5c3   : > { %v4210_v57 = vpop.f32.mrf.mxu0 }
 0x5c4   : > { %v4214_v58 = vadd.f32 %v4210_v57, %v4121_v49 }
 0x5c5   : > { %v4212_v41 = vpop.f32.mrf.mxu0 }
 0x5c6   : > { %v4307_v17 = vadd.f32 %v4303_v43, %v4214_v58 }
 0x5c8   : > { %v4315_v33 = vadd.f32 %v5323_v20, %v4307_v17 }
 0x5ca   : > { %v4316_v53 = vmax.f32 %v4315_v33, 0.0 }
 0x5cc   : > { %5380 = vmatmul.mubr.f32.vlgmr.msra.gmra.mxu0 %v4316_v53 }
 0x68c   : > { %v4406_v3 = vpop.f32.mrf.mxu0 }
 0x68d   : > { %v4407_v13 = vadd.f32 %v5324_v52, %v4406_v3 }
 0x68e   : > { %v5381_v34 = vpop.f32.mrf.mxu0 }
 0x68f   : > { %v4410_v21 = vmax.f32 %v4407_v13, 0.0 }
 0x691   : > { %4411 = vst [vmem:[%s476_s26] sm:$0xff] %v4410_v21 }
 0x692   : > { %5448 = shalt.err (!%p5445_p5)
}
 0x693   : > { %s5449_s21 = scalar_lea.hbm %s4424_s14, 128  ;;  %s5453_s26 = scalar_lea.hbm %s9639_s9, 256 }
 0x694   : > { %p5450_p7 = scmp.ne.s32.totalorder %s4424_s14, %s5449_s21  ;;  %p5454_p12 = scmp.lt.s32.totalorder %s4424_s14, %s9639_s9 }
 0x695   : > { %p5455_p13 = scmp.lt.s32.totalorder %s5453_s26, %s5449_s21 }
 0x696   : > { %p5451_p10 = pnand %p5450_p7, %p5590_p6 }
 0x697   : > { %p5456_p0 = por %p5455_p13, %p5454_p12 }
 0x698   : > { %p5452_p11 = pneg %p5451_p10 }
 0x69a   : > { %p5457_p9 = pnand %p5456_p0, %p5452_p11 }
 0x69c   : > { %5460 = shalt.err (!%p5457_p9)
}
 0x69d   : > { %5382 = dma.vmem_to_hbm [thread:$0]  (%p5590_p6), %s4427_s22, 128, %s4424_s14, %s4413_s25  }
 0x69e PF: > { %s4438_s16 = sand.u32 1, %s5483_s30   ;;  %p9808_p1 = scmp.ge.s32.totalorder %s5495_s12, 2 }
 0x69f   : > { %s4439_s23 = scalar_lea.sflag [#allocation4], %s4438_s16 }
 0x6a0   : > { %p5385_p2 = pnand %p9808_p1, %p5594_p8 }
 0x6a2   : > { %p5386_p3 = pneg %p5385_p2 }
 0x6a4   : > { %5478 = dma.done.wait (%p5386_p3), %s4439_s23, 128  }
 0x6a5   : > { %5480 = vsyncadd (%p5386_p3), %s4439_s23, 4294967168  ;;  %p19_p9 = scmp.ge.s32.totalorder %s5575_s15, 4   ;;  %s9809_s30 = smov %s5487_s10 }
 0x6a6   : > { %s9810_s10 = smov %s5491_s11  ;;  %s9811_s11 = smov %s5588_s18 }
 0x6a7   : > { %s9812_s12 = smov %s5575_s15  ;;  %21 = sbr.rel (!%p19_p9) target bundleno = 3 (0x3), region = 135 }
 0x6ac   :  { %4444 = vsyncpa [#allocation4], 1 }
 0x6ad   :  { %4446 = vsyncpa [#allocation4 + $0x1], 1 }

</bundles_post_ra>
